<compile_context>
chip_gen: v6e
topology: v6e:2x2x1
jax: 0.10.0
libtpu: 0.0.40
codegen_flags: <defaults>
</compile_context>

<pallas_src>
import jax
import jax.numpy as jnp
import numpy as np
from jax.experimental import pallas as pl
from jax.experimental.pallas import tpu as pltpu

B = 2         # batch (clouds)
N = 64        # points per cloud
C_IN = 67     # 64 FPFH channels + 3 xyz channels
C_PACK = 128  # packed / lane-padded input channels
C3 = 1024     # conv3 output channels
CH = 256      # conv3 output-channel chunk
EPS = 1e-5


def _folded_layer(key, cin, cout):
    """Weight + (conv/linear bias, BN gamma/beta/mean/var) folded to scale/shift."""
    kw, kb, kg, kbt, km, kv = jax.random.split(key, 6)
    w = jax.random.normal(kw, (cin, cout), jnp.float32) * 0.1
    b = jax.random.normal(kb, (cout,), jnp.float32) * 0.1
    gamma = jax.random.uniform(kg, (cout,), jnp.float32, minval=0.5, maxval=1.5)
    beta = jax.random.normal(kbt, (cout,), jnp.float32) * 0.1
    mean = jax.random.normal(km, (cout,), jnp.float32) * 0.1
    var = jax.random.uniform(kv, (cout,), jnp.float32, minval=0.5, maxval=1.5)
    scale = gamma / jnp.sqrt(var + EPS)
    shift = beta + (b - mean) * scale
    return w, scale.reshape(1, cout), shift.reshape(1, cout)


def pointnet_kernel(xp_ref,
                    w1_ref, sc1_ref, sh1_ref,
                    w2_ref, sc2_ref, sh2_ref,
                    w3_ref, sc3_ref, sh3_ref,
                    scf1_ref, shf1_ref, scf2_ref, shf2_ref,
                    wf1_hbm, wf2_hbm,
                    feat_ref, g_ref, pf_ref,
                    wf1_vmem, wf2_vmem, dma_sem):
    bf16 = jnp.bfloat16

    # Kick off the fc-weight DMAs (the two largest transfers) so they overlap
    # conv1..conv3 compute instead of serializing in front of the body.
    cp1 = pltpu.make_async_copy(wf1_hbm, wf1_vmem, dma_sem.at[0])
    cp2 = pltpu.make_async_copy(wf2_hbm, wf2_vmem, dma_sem.at[1])
    cp1.start()
    cp2.start()

    xp = xp_ref[...]                                   # (B*N, 128) f32 packed input

    # conv1 + bn1 + relu, lifted into the packed 128-lane layout: only the xyz
    # rows (64:67) of w1p are nonzero and they feed output lanes 64:128; the
    # folded bn scale/shift are zero on lanes 0:64 so those lanes stay exactly 0.
    h1 = jnp.dot(xp.astype(bf16), w1_ref[...], preferred_element_type=jnp.float32)
    h1 = jnp.maximum(h1 * sc1_ref[...] + sh1_ref[...], 0.0)      # (B*N, 128)

    # FPFH branch: mask out the xyz / pad lanes (>= 64) of the packed input.
    lane = jax.lax.broadcasted_iota(jnp.int32, (B * N, C_PACK), 1)
    xf = jnp.where(lane < 64, xp, 0.0)                           # (B*N, 128)

    # Per-batch Frobenius norms -> per-row rsqrt scales (no activation slicing
    # or concatenation; everything stays one lane-dense (B*N, 128) tile).
    h1sq = jnp.sum(h1 * h1, axis=1, keepdims=True)               # (B*N, 1)
    xfsq = jnp.sum(xf * xf, axis=1, keepdims=True)               # (B*N, 1)
    s1_b0 = jnp.sum(h1sq[0:N], axis=0, keepdims=True)            # (1, 1)
    s1_b1 = jnp.sum(h1sq[N:2 * N], axis=0, keepdims=True)
    s2_b0 = jnp.sum(xfsq[0:N], axis=0, keepdims=True)
    s2_b1 = jnp.sum(xfsq[N:2 * N], axis=0, keepdims=True)
    row = jax.lax.broadcasted_iota(jnp.int32, (B * N, 1), 0)     # B == 2 select
    inv1_rows = jnp.where(row < N, jax.lax.rsqrt(s1_b0), jax.lax.rsqrt(s1_b1))
    inv2_rows = jnp.where(row < N, jax.lax.rsqrt(s2_b0), jax.lax.rsqrt(s2_b1))

    # Normalized point features.  Kernel lane layout: [FPFH | conv1 branch];
    # h1 lanes 0:64 are exactly zero and xf lanes 64:128 are exactly zero.
    pf = h1 * inv1_rows + xf * inv2_rows                         # (B*N, 128)
    # Emit pointfeat in the PyTorch channel order (conv1 branch first) via a
    # 64-lane rotate (XLU slot; swaps the two 64-lane halves).
    pf_ref[...] = pltpu.roll(pf, shift=64, axis=1)

    # conv2 + bn2 + relu: single merged K=128 matmul against a row-permuted w2.
    h2 = jnp.dot(pf.astype(bf16), w2_ref[...], preferred_element_type=jnp.float32)
    h2 = jnp.maximum(h2 * sc2_ref[...] + sh2_ref[...], 0.0)      # (B*N, 256)
    h2b = h2.astype(bf16)

    # conv3 + bn3 + per-batch max-pool, chunked over the 1024 output channels
    # so the (B*N, 1024) f32 intermediate never materializes.  bn3 is applied
    # per chunk BEFORE the max (no positivity assumption on the folded scale).
    for c in range(C3 // CH):
        cs = c * CH
        h3c = jnp.dot(h2b, w3_ref[:, cs:cs + CH],
                      preferred_element_type=jnp.float32)        # (B*N, CH)
        h3c = h3c * sc3_ref[:, cs:cs + CH] + sh3_ref[:, cs:cs + CH]
        for bb in range(B):
            g_ref[bb:bb + 1, cs:cs + CH] = jnp.max(
                h3c[bb * N:(bb + 1) * N], axis=0, keepdims=True)

    # fc1 + bn4 + relu (wf1 DMA hidden behind conv1..conv3).
    cp1.wait()
    g = g_ref[...]                                               # (B, 1024)
    f1 = jnp.dot(g.astype(bf16), wf1_vmem[...], preferred_element_type=jnp.float32)
    f2 = jnp.maximum(f1 * scf1_ref[...] + shf1_ref[...], 0.0)    # (B, 512)

    # fc2 + dropout(inference: identity) + bn5 + relu.
    cp2.wait()
    f3 = jnp.dot(f2.astype(bf16), wf2_vmem[...], preferred_element_type=jnp.float32)
    feat_ref[...] = jnp.maximum(f3 * scf2_ref[...] + shf2_ref[...], 0.0)  # (B, 256)


def pointnet_cls_fpfh(x, kparams):
    """x: (B, 67, N) float32 (PyTorch NCW). Returns (features, features1, pointfeat)."""
    (w1p, sc1p, sh1p, w2p, sc2, sh2, w3b, sc3, sh3,
     scf1, shf1, scf2, shf2, wf1b, wf2b) = kparams
    b, c, n = x.shape
    assert b == B and c == C_IN and n == N

    # Pack both clouds into one lane-dense (B*N, 128) tile:
    # lanes [0:64) = FPFH, [64:67) = xyz, rest zero pad.
    xt = jnp.transpose(x, (0, 2, 1)).reshape(b * n, c)
    xp = jnp.pad(xt, ((0, 0), (0, C_PACK - c)))

    vmem = pl.BlockSpec(memory_space=pltpu.MemorySpace.VMEM)
    anyspace = pl.BlockSpec(memory_space=pl.ANY)
    feats, g, pf = pl.pallas_call(
        pointnet_kernel,
        out_shape=(jax.ShapeDtypeStruct((b, 256), jnp.float32),       # features
                   jax.ShapeDtypeStruct((b, C3), jnp.float32),        # features1
                   jax.ShapeDtypeStruct((b * n, C_PACK), jnp.float32)),  # pointfeat rows
        in_specs=[vmem] * 14 + [anyspace, anyspace],
        out_specs=(vmem, vmem, vmem),
        scratch_shapes=[
            pltpu.VMEM((1024, 512), jnp.bfloat16),   # wf1 landing buffer
            pltpu.VMEM((512, 256), jnp.bfloat16),    # wf2 landing buffer
            pltpu.SemaphoreType.DMA((2,)),
        ],
    )(xp, w1p, sc1p, sh1p, w2p, sc2, sh2, w3b, sc3, sh3,
      scf1, shf1, scf2, shf2, wf1b, wf2b)

    # pointfeat back to the module's (B, 128, N) NCW layout.
    pointfeat = jnp.transpose(pf.reshape(b, n, C_PACK), (0, 2, 1))
    return feats, g, pointfeat


def make_params(key):
    k1, k2, k3, k4, k5 = jax.random.split(key, 5)
    w1, sc1, sh1 = _folded_layer(k1, 3, 64)          # conv1 + bn1
    w2, sc2, sh2 = _folded_layer(k2, 128, 256)       # conv2 + bn2
    w3, sc3, sh3 = _folded_layer(k3, 256, 1024)      # conv3 + bn3
    wf1, scf1, shf1 = _folded_layer(k4, 1024, 512)   # fc1 + bn4
    wf2, scf2, shf2 = _folded_layer(k5, 512, 256)    # fc2 + bn5

    ref_params = (w1, sc1, sh1, w2, sc2, sh2, w3, sc3, sh3,
                  wf1, scf1, shf1, wf2, scf2, shf2)

    bf16 = jnp.bfloat16
    # conv1 lifted into the packed layout: xyz rows 64:67 -> output lanes 64:128.
    w1p = (jnp.zeros((C_PACK, C_PACK), jnp.float32)
           .at[64:67, 64:128].set(w1).astype(bf16))
    sc1p = jnp.zeros((1, C_PACK), jnp.float32).at[:, 64:128].set(sc1)
    sh1p = jnp.zeros((1, C_PACK), jnp.float32).at[:, 64:128].set(sh1)
    # conv2 rows permuted to the kernel's pf lane layout:
    # lanes 0:64 = FPFH (PyTorch rows 64:128), lanes 64:128 = conv1 branch (rows 0:64).
    w2p = jnp.concatenate([w2[64:128, :], w2[0:64, :]], axis=0).astype(bf16)

    kparams = (w1p, sc1p, sh1p, w2p, sc2, sh2,
               w3.astype(bf16), sc3, sh3,
               scf1, shf1, scf2, shf2,
               wf1.astype(bf16), wf2.astype(bf16))
    return kparams, ref_params


def reference_f32(x, ref_params):
    """Pure-f32 JAX reference of the module forward pass."""
    (w1, sc1, sh1, w2, sc2, sh2, w3, sc3, sh3,
     wf1, scf1, shf1, wf2, scf2, shf2) = ref_params
    x1 = jnp.transpose(x[:, 64:, :], (0, 2, 1))      # (B, N, 3)
    x2 = jnp.transpose(x[:, :64, :], (0, 2, 1))      # (B, N, 64)
    h1 = jnp.maximum(jnp.einsum('bnc,cd->bnd', x1, w1) * sc1 + sh1, 0.0)
    n1 = jnp.sqrt(jnp.sum(h1 ** 2, axis=(1, 2), keepdims=True))
    n2 = jnp.sqrt(jnp.sum(x2 ** 2, axis=(1, 2), keepdims=True))
    pf = jnp.concatenate([h1 / n1, x2 / n2], axis=-1)            # (B, N, 128)
    h2 = jnp.maximum(jnp.einsum('bnc,cd->bnd', pf, w2) * sc2 + sh2, 0.0)
    h3 = jnp.einsum('bnc,cd->bnd', h2, w3) * sc3 + sh3
    g = jnp.max(h3, axis=1)                                      # (B, 1024)
    f2 = jnp.maximum(g @ wf1 * scf1 + shf1, 0.0)
    feats = jnp.maximum(f2 @ wf2 * scf2 + shf2, 0.0)
    return feats, g, jnp.transpose(pf, (0, 2, 1))


def reference_bf16(x, ref_params):
    """Reference mirroring the kernel's precision policy (bf16 matmul operands,
    f32 accumulation and f32 element-wise math)."""
    (w1, sc1, sh1, w2, sc2, sh2, w3, sc3, sh3,
     wf1, scf1, shf1, wf2, scf2, shf2) = ref_params
    bf16 = jnp.bfloat16

    def mm3(a, w):
        return jnp.einsum('bnc,cd->bnd', a.astype(bf16), w.astype(bf16),
                          preferred_element_type=jnp.float32)

    def mm2(a, w):
        return jnp.dot(a.astype(bf16), w.astype(bf16),
                       preferred_element_type=jnp.float32)

    x1 = jnp.transpose(x[:, 64:, :], (0, 2, 1))
    x2 = jnp.transpose(x[:, :64, :], (0, 2, 1))
    h1 = jnp.maximum(mm3(x1, w1) * sc1 + sh1, 0.0)
    inv1 = jax.lax.rsqrt(jnp.sum(h1 * h1, axis=(1, 2), keepdims=True))
    inv2 = jax.lax.rsqrt(jnp.sum(x2 * x2, axis=(1, 2), keepdims=True))
    pf = jnp.concatenate([h1 * inv1, x2 * inv2], axis=-1)
    h2 = jnp.maximum(mm3(pf, w2) * sc2 + sh2, 0.0)
    h3 = mm3(h2, w3) * sc3 + sh3
    g = jnp.max(h3, axis=1)
    f2 = jnp.maximum(mm2(g, wf1) * scf1 + shf1, 0.0)
    feats = jnp.maximum(mm2(f2, wf2) * scf2 + shf2, 0.0)
    return feats, g, jnp.transpose(pf, (0, 2, 1))


if __name__ == "__main__":
    key = jax.random.PRNGKey(0)
    kx, kp = jax.random.split(key)
    x = jax.random.normal(kx, (B, C_IN, N), jnp.float32)   # (B, 67, N), NCW like PyTorch
    kparams, ref_params = make_params(kp)

    feats, feats1, pointfeat = jax.block_until_ready(pointnet_cls_fpfh(x, kparams))
    assert feats.shape == (B, 256)
    assert feats1.shape == (B, 1024)
    assert pointfeat.shape == (B, 128, N)

    # Strict check against a reference with the kernel's exact precision policy.
    rb_f, rb_g, rb_p = [np.asarray(a) for a in
                        jax.block_until_ready(reference_bf16(x, ref_params))]
    np.testing.assert_allclose(np.asarray(feats), rb_f, rtol=1e-2, atol=1e-3)
    np.testing.assert_allclose(np.asarray(feats1), rb_g, rtol=1e-2, atol=1e-3)
    np.testing.assert_allclose(np.asarray(pointfeat), rb_p, rtol=1e-2, atol=1e-3)

    # Looser check against the pure-f32 module semantics (bounds bf16 drift).
    rf_f, _, _ = [np.asarray(a) for a in
                  jax.block_until_ready(reference_f32(x, ref_params))]
    np.testing.assert_allclose(np.asarray(feats), rf_f, rtol=5e-2, atol=5e-2)

    print("KERNEL_OK")
</pallas_src>

<mosaic_0001>
module attributes {stable_mosaic.version = 11 : i64} {
  func.func @pointnet_kernel(%arg0: memref<128x128xf32, #tpu.memory_space<vmem>>, %arg1: memref<128x128xbf16, #tpu.memory_space<vmem>>, %arg2: memref<1x128xf32, #tpu.memory_space<vmem>>, %arg3: memref<1x128xf32, #tpu.memory_space<vmem>>, %arg4: memref<128x256xbf16, #tpu.memory_space<vmem>>, %arg5: memref<1x256xf32, #tpu.memory_space<vmem>>, %arg6: memref<1x256xf32, #tpu.memory_space<vmem>>, %arg7: memref<256x1024xbf16, #tpu.memory_space<vmem>>, %arg8: memref<1x1024xf32, #tpu.memory_space<vmem>>, %arg9: memref<1x1024xf32, #tpu.memory_space<vmem>>, %arg10: memref<1x512xf32, #tpu.memory_space<vmem>>, %arg11: memref<1x512xf32, #tpu.memory_space<vmem>>, %arg12: memref<1x256xf32, #tpu.memory_space<vmem>>, %arg13: memref<1x256xf32, #tpu.memory_space<vmem>>, %arg14: memref<1024x512xbf16, #tpu.memory_space<any>>, %arg15: memref<512x256xbf16, #tpu.memory_space<any>>, %arg16: memref<2x256xf32, #tpu.memory_space<vmem>>, %arg17: memref<2x1024xf32, #tpu.memory_space<vmem>>, %arg18: memref<128x128xf32, #tpu.memory_space<vmem>>, %arg19: memref<1024x512xbf16, #tpu.memory_space<vmem>>, %arg20: memref<512x256xbf16, #tpu.memory_space<vmem>>, %arg21: memref<2x!tpu.dma_semaphore, #tpu.memory_space<semaphore_mem>>) attributes {dimension_semantics = [], scalar_prefetch = 0 : i64, scratch_operands = 3 : i64, tpu.core_type = #tpu.core_type<tc>} {
    %c0_i32 = arith.constant 0 : i32
    %0 = tpu.memref_slice %arg21[%c0_i32] : memref<2x!tpu.dma_semaphore, #tpu.memory_space<semaphore_mem>> -> memref<1x!tpu.dma_semaphore, #tpu.memory_space<semaphore_mem>>
    %1 = tpu.memref_squeeze %0 : memref<1x!tpu.dma_semaphore, #tpu.memory_space<semaphore_mem>> -> memref<!tpu.dma_semaphore, #tpu.memory_space<semaphore_mem>>
    tpu.enqueue_dma source(%arg14 : memref<1024x512xbf16, #tpu.memory_space<any>>) target(%arg19 : memref<1024x512xbf16, #tpu.memory_space<vmem>>) target_semaphore(%1 : memref<!tpu.dma_semaphore, #tpu.memory_space<semaphore_mem>>)
    %c1_i32 = arith.constant 1 : i32
    %2 = tpu.memref_slice %arg21[%c1_i32] : memref<2x!tpu.dma_semaphore, #tpu.memory_space<semaphore_mem>> -> memref<1x!tpu.dma_semaphore, #tpu.memory_space<semaphore_mem>>
    %3 = tpu.memref_squeeze %2 : memref<1x!tpu.dma_semaphore, #tpu.memory_space<semaphore_mem>> -> memref<!tpu.dma_semaphore, #tpu.memory_space<semaphore_mem>>
    tpu.enqueue_dma source(%arg15 : memref<512x256xbf16, #tpu.memory_space<any>>) target(%arg20 : memref<512x256xbf16, #tpu.memory_space<vmem>>) target_semaphore(%3 : memref<!tpu.dma_semaphore, #tpu.memory_space<semaphore_mem>>)
    %c0 = arith.constant 0 : index
    %c0_0 = arith.constant 0 : index
    %4 = vector.load %arg0[%c0, %c0_0] : memref<128x128xf32, #tpu.memory_space<vmem>>, vector<128x128xf32>
    %5 = arith.truncf %4 : vector<128x128xf32> to vector<128x128xbf16>
    %c0_1 = arith.constant 0 : index
    %c0_2 = arith.constant 0 : index
    %6 = vector.load %arg1[%c0_1, %c0_2] : memref<128x128xbf16, #tpu.memory_space<vmem>>, vector<128x128xbf16>
    %cst = arith.constant dense<0.000000e+00> : vector<128x128xf32>
    %7 = tpu.matmul %5, %6, %cst {dimension_numbers = #tpu.dot_dimension_numbers<[1], [0], [0], [1], [0, 0, 1, 1], [], []>} : vector<128x128xbf16>, vector<128x128xbf16>, vector<128x128xf32> -> vector<128x128xf32>
    %c0_3 = arith.constant 0 : index
    %c0_4 = arith.constant 0 : index
    %8 = vector.load %arg2[%c0_3, %c0_4] : memref<1x128xf32, #tpu.memory_space<vmem>>, vector<1x128xf32>
    %9 = vector.broadcast %8 : vector<1x128xf32> to vector<128x128xf32>
    %10 = arith.mulf %7, %9 : vector<128x128xf32>
    %c0_5 = arith.constant 0 : index
    %c0_6 = arith.constant 0 : index
    %11 = vector.load %arg3[%c0_5, %c0_6] : memref<1x128xf32, #tpu.memory_space<vmem>>, vector<1x128xf32>
    %12 = vector.broadcast %11 : vector<1x128xf32> to vector<128x128xf32>
    %13 = arith.addf %10, %12 : vector<128x128xf32>
    %cst_7 = arith.constant 0.000000e+00 : f32
    %14 = vector.broadcast %cst_7 : f32 to vector<128x128xf32>
    %15 = arith.maximumf %13, %14 : vector<128x128xf32>
    %16 = tpu.iota {dimensions = array<i32: 1>} : vector<128x128xi32>
    %c64_i32 = arith.constant 64 : i32
    %17 = vector.broadcast %c64_i32 : i32 to vector<128x128xi32>
    %18 = arith.cmpi slt, %16, %17 : vector<128x128xi32>
    %cst_8 = arith.constant 0.000000e+00 : f32
    %19 = vector.broadcast %cst_8 : f32 to vector<128x128xf32>
    %20 = arith.select %18, %4, %19 : vector<128x128xi1>, vector<128x128xf32>
    %21 = arith.mulf %15, %15 : vector<128x128xf32>
    %cst_9 = arith.constant dense<0.000000e+00> : vector<128xf32>
    %22 = vector.multi_reduction <add>, %21, %cst_9 [1] : vector<128x128xf32> to vector<128xf32>
    %23 = vector.shape_cast %22 : vector<128xf32> to vector<128x1xf32>
    %24 = arith.mulf %20, %20 : vector<128x128xf32>
    %cst_10 = arith.constant dense<0.000000e+00> : vector<128xf32>
    %25 = vector.multi_reduction <add>, %24, %cst_10 [1] : vector<128x128xf32> to vector<128xf32>
    %26 = vector.shape_cast %25 : vector<128xf32> to vector<128x1xf32>
    %27 = vector.extract_strided_slice %23 {offsets = [0, 0], sizes = [64, 1], strides = [1, 1]} : vector<128x1xf32> to vector<64x1xf32>
    %cst_11 = arith.constant dense<0.000000e+00> : vector<1xf32>
    %28 = vector.multi_reduction <add>, %27, %cst_11 [0] : vector<64x1xf32> to vector<1xf32>
    %29 = vector.shape_cast %28 : vector<1xf32> to vector<1x1xf32>
    %30 = vector.extract_strided_slice %23 {offsets = [64, 0], sizes = [64, 1], strides = [1, 1]} : vector<128x1xf32> to vector<64x1xf32>
    %cst_12 = arith.constant dense<0.000000e+00> : vector<1xf32>
    %31 = vector.multi_reduction <add>, %30, %cst_12 [0] : vector<64x1xf32> to vector<1xf32>
    %32 = vector.shape_cast %31 : vector<1xf32> to vector<1x1xf32>
    %33 = vector.extract_strided_slice %26 {offsets = [0, 0], sizes = [64, 1], strides = [1, 1]} : vector<128x1xf32> to vector<64x1xf32>
    %cst_13 = arith.constant dense<0.000000e+00> : vector<1xf32>
    %34 = vector.multi_reduction <add>, %33, %cst_13 [0] : vector<64x1xf32> to vector<1xf32>
    %35 = vector.shape_cast %34 : vector<1xf32> to vector<1x1xf32>
    %36 = vector.extract_strided_slice %26 {offsets = [64, 0], sizes = [64, 1], strides = [1, 1]} : vector<128x1xf32> to vector<64x1xf32>
    %cst_14 = arith.constant dense<0.000000e+00> : vector<1xf32>
    %37 = vector.multi_reduction <add>, %36, %cst_14 [0] : vector<64x1xf32> to vector<1xf32>
    %38 = vector.shape_cast %37 : vector<1xf32> to vector<1x1xf32>
    %39 = tpu.iota {dimensions = array<i32: 0>} : vector<128x1xi32>
    %c64_i32_15 = arith.constant 64 : i32
    %40 = vector.broadcast %c64_i32_15 : i32 to vector<128x1xi32>
    %41 = arith.cmpi slt, %39, %40 : vector<128x1xi32>
    %42 = math.rsqrt %29 : vector<1x1xf32>
    %43 = math.rsqrt %32 : vector<1x1xf32>
    %44 = vector.shape_cast %42 : vector<1x1xf32> to vector<1x1xf32>
    %45 = vector.broadcast %44 : vector<1x1xf32> to vector<128x1xf32>
    %46 = vector.shape_cast %43 : vector<1x1xf32> to vector<1x1xf32>
    %47 = vector.broadcast %46 : vector<1x1xf32> to vector<128x1xf32>
    %48 = arith.select %41, %45, %47 : vector<128x1xi1>, vector<128x1xf32>
    %c64_i32_16 = arith.constant 64 : i32
    %49 = vector.broadcast %c64_i32_16 : i32 to vector<128x1xi32>
    %50 = arith.cmpi slt, %39, %49 : vector<128x1xi32>
    %51 = math.rsqrt %35 : vector<1x1xf32>
    %52 = math.rsqrt %38 : vector<1x1xf32>
    %53 = vector.shape_cast %51 : vector<1x1xf32> to vector<1x1xf32>
    %54 = vector.broadcast %53 : vector<1x1xf32> to vector<128x1xf32>
    %55 = vector.shape_cast %52 : vector<1x1xf32> to vector<1x1xf32>
    %56 = vector.broadcast %55 : vector<1x1xf32> to vector<128x1xf32>
    %57 = arith.select %50, %54, %56 : vector<128x1xi1>, vector<128x1xf32>
    %58 = vector.broadcast %48 : vector<128x1xf32> to vector<128x128xf32>
    %59 = arith.mulf %15, %58 : vector<128x128xf32>
    %60 = vector.broadcast %57 : vector<128x1xf32> to vector<128x128xf32>
    %61 = arith.mulf %20, %60 : vector<128x128xf32>
    %62 = arith.addf %59, %61 : vector<128x128xf32>
    %c64_i32_17 = arith.constant 64 : i32
    %63 = tpu.dynamic_rotate %62 by %c64_i32_17 dim 1 : vector<128x128xf32>, i32 -> vector<128x128xf32>
    %c0_18 = arith.constant 0 : index
    %c0_19 = arith.constant 0 : index
    %64 = vector.load %arg18[%c0_18, %c0_19] : memref<128x128xf32, #tpu.memory_space<vmem>>, vector<128x128xf32>
    tpu.vector_store %arg18[%c0_18, %c0_19], %63 {strides = array<i32>} : memref<128x128xf32, #tpu.memory_space<vmem>>, vector<128x128xf32>,
    %65 = arith.truncf %62 : vector<128x128xf32> to vector<128x128xbf16>
    %c0_20 = arith.constant 0 : index
    %c0_21 = arith.constant 0 : index
    %66 = vector.load %arg4[%c0_20, %c0_21] : memref<128x256xbf16, #tpu.memory_space<vmem>>, vector<128x256xbf16>
    %cst_22 = arith.constant dense<0.000000e+00> : vector<128x256xf32>
    %67 = tpu.matmul %65, %66, %cst_22 {dimension_numbers = #tpu.dot_dimension_numbers<[1], [0], [0], [1], [0, 0, 1, 1], [], []>} : vector<128x128xbf16>, vector<128x256xbf16>, vector<128x256xf32> -> vector<128x256xf32>
    %c0_23 = arith.constant 0 : index
    %c0_24 = arith.constant 0 : index
    %68 = vector.load %arg5[%c0_23, %c0_24] : memref<1x256xf32, #tpu.memory_space<vmem>>, vector<1x256xf32>
    %69 = vector.broadcast %68 : vector<1x256xf32> to vector<128x256xf32>
    %70 = arith.mulf %67, %69 : vector<128x256xf32>
    %c0_25 = arith.constant 0 : index
    %c0_26 = arith.constant 0 : index
    %71 = vector.load %arg6[%c0_25, %c0_26] : memref<1x256xf32, #tpu.memory_space<vmem>>, vector<1x256xf32>
    %72 = vector.broadcast %71 : vector<1x256xf32> to vector<128x256xf32>
    %73 = arith.addf %70, %72 : vector<128x256xf32>
    %cst_27 = arith.constant 0.000000e+00 : f32
    %74 = vector.broadcast %cst_27 : f32 to vector<128x256xf32>
    %75 = arith.maximumf %73, %74 : vector<128x256xf32>
    %76 = arith.truncf %75 : vector<128x256xf32> to vector<128x256xbf16>
    %c0_28 = arith.constant 0 : index
    %c0_29 = arith.constant 0 : index
    %77 = vector.load %arg7[%c0_28, %c0_29] : memref<256x1024xbf16, #tpu.memory_space<vmem>>, vector<256x256xbf16>
    %cst_30 = arith.constant dense<0.000000e+00> : vector<128x256xf32>
    %78 = tpu.matmul %76, %77, %cst_30 {dimension_numbers = #tpu.dot_dimension_numbers<[1], [0], [0], [1], [0, 0, 1, 1], [], []>} : vector<128x256xbf16>, vector<256x256xbf16>, vector<128x256xf32> -> vector<128x256xf32>
    %c0_31 = arith.constant 0 : index
    %c0_32 = arith.constant 0 : index
    %79 = vector.load %arg8[%c0_31, %c0_32] : memref<1x1024xf32, #tpu.memory_space<vmem>>, vector<1x256xf32>
    %80 = vector.broadcast %79 : vector<1x256xf32> to vector<128x256xf32>
    %81 = arith.mulf %78, %80 : vector<128x256xf32>
    %c0_33 = arith.constant 0 : index
    %c0_34 = arith.constant 0 : index
    %82 = vector.load %arg9[%c0_33, %c0_34] : memref<1x1024xf32, #tpu.memory_space<vmem>>, vector<1x256xf32>
    %83 = vector.broadcast %82 : vector<1x256xf32> to vector<128x256xf32>
    %84 = arith.addf %81, %83 : vector<128x256xf32>
    %85 = vector.extract_strided_slice %84 {offsets = [0, 0], sizes = [64, 256], strides = [1, 1]} : vector<128x256xf32> to vector<64x256xf32>
    %cst_35 = arith.constant dense<0xFF800000> : vector<256xf32>
    %86 = vector.multi_reduction <maximumf>, %85, %cst_35 [0] : vector<64x256xf32> to vector<256xf32>
    %87 = vector.shape_cast %86 : vector<256xf32> to vector<1x256xf32>
    %c0_36 = arith.constant 0 : index
    %c0_37 = arith.constant 0 : index
    %88 = vector.load %arg17[%c0_36, %c0_37] : memref<2x1024xf32, #tpu.memory_space<vmem>>, vector<1x256xf32>
    tpu.vector_store %arg17[%c0_36, %c0_37], %87 {strides = array<i32>} : memref<2x1024xf32, #tpu.memory_space<vmem>>, vector<1x256xf32>,
    %89 = vector.extract_strided_slice %84 {offsets = [64, 0], sizes = [64, 256], strides = [1, 1]} : vector<128x256xf32> to vector<64x256xf32>
    %cst_38 = arith.constant dense<0xFF800000> : vector<256xf32>
    %90 = vector.multi_reduction <maximumf>, %89, %cst_38 [0] : vector<64x256xf32> to vector<256xf32>
    %91 = vector.shape_cast %90 : vector<256xf32> to vector<1x256xf32>
    %c1 = arith.constant 1 : index
    %c0_39 = arith.constant 0 : index
    %92 = vector.load %arg17[%c1, %c0_39] : memref<2x1024xf32, #tpu.memory_space<vmem>>, vector<1x256xf32>
    tpu.vector_store %arg17[%c1, %c0_39], %91 {strides = array<i32>} : memref<2x1024xf32, #tpu.memory_space<vmem>>, vector<1x256xf32>,
    %c0_40 = arith.constant 0 : index
    %c256 = arith.constant 256 : index
    %93 = vector.load %arg7[%c0_40, %c256] : memref<256x1024xbf16, #tpu.memory_space<vmem>>, vector<256x256xbf16>
    %cst_41 = arith.constant dense<0.000000e+00> : vector<128x256xf32>
    %94 = tpu.matmul %76, %93, %cst_41 {dimension_numbers = #tpu.dot_dimension_numbers<[1], [0], [0], [1], [0, 0, 1, 1], [], []>} : vector<128x256xbf16>, vector<256x256xbf16>, vector<128x256xf32> -> vector<128x256xf32>
    %c0_42 = arith.constant 0 : index
    %c256_43 = arith.constant 256 : index
    %95 = vector.load %arg8[%c0_42, %c256_43] : memref<1x1024xf32, #tpu.memory_space<vmem>>, vector<1x256xf32>
    %96 = vector.broadcast %95 : vector<1x256xf32> to vector<128x256xf32>
    %97 = arith.mulf %94, %96 : vector<128x256xf32>
    %c0_44 = arith.constant 0 : index
    %c256_45 = arith.constant 256 : index
    %98 = vector.load %arg9[%c0_44, %c256_45] : memref<1x1024xf32, #tpu.memory_space<vmem>>, vector<1x256xf32>
    %99 = vector.broadcast %98 : vector<1x256xf32> to vector<128x256xf32>
    %100 = arith.addf %97, %99 : vector<128x256xf32>
    %101 = vector.extract_strided_slice %100 {offsets = [0, 0], sizes = [64, 256], strides = [1, 1]} : vector<128x256xf32> to vector<64x256xf32>
    %cst_46 = arith.constant dense<0xFF800000> : vector<256xf32>
    %102 = vector.multi_reduction <maximumf>, %101, %cst_46 [0] : vector<64x256xf32> to vector<256xf32>
    %103 = vector.shape_cast %102 : vector<256xf32> to vector<1x256xf32>
    %c0_47 = arith.constant 0 : index
    %c256_48 = arith.constant 256 : index
    %104 = vector.load %arg17[%c0_47, %c256_48] : memref<2x1024xf32, #tpu.memory_space<vmem>>, vector<1x256xf32>
    tpu.vector_store %arg17[%c0_47, %c256_48], %103 {strides = array<i32>} : memref<2x1024xf32, #tpu.memory_space<vmem>>, vector<1x256xf32>,
    %105 = vector.extract_strided_slice %100 {offsets = [64, 0], sizes = [64, 256], strides = [1, 1]} : vector<128x256xf32> to vector<64x256xf32>
    %cst_49 = arith.constant dense<0xFF800000> : vector<256xf32>
    %106 = vector.multi_reduction <maximumf>, %105, %cst_49 [0] : vector<64x256xf32> to vector<256xf32>
    %107 = vector.shape_cast %106 : vector<256xf32> to vector<1x256xf32>
    %c1_50 = arith.constant 1 : index
    %c256_51 = arith.constant 256 : index
    %108 = vector.load %arg17[%c1_50, %c256_51] : memref<2x1024xf32, #tpu.memory_space<vmem>>, vector<1x256xf32>
    tpu.vector_store %arg17[%c1_50, %c256_51], %107 {strides = array<i32>} : memref<2x1024xf32, #tpu.memory_space<vmem>>, vector<1x256xf32>,
    %c0_52 = arith.constant 0 : index
    %c512 = arith.constant 512 : index
    %109 = vector.load %arg7[%c0_52, %c512] : memref<256x1024xbf16, #tpu.memory_space<vmem>>, vector<256x256xbf16>
    %cst_53 = arith.constant dense<0.000000e+00> : vector<128x256xf32>
    %110 = tpu.matmul %76, %109, %cst_53 {dimension_numbers = #tpu.dot_dimension_numbers<[1], [0], [0], [1], [0, 0, 1, 1], [], []>} : vector<128x256xbf16>, vector<256x256xbf16>, vector<128x256xf32> -> vector<128x256xf32>
    %c0_54 = arith.constant 0 : index
    %c512_55 = arith.constant 512 : index
    %111 = vector.load %arg8[%c0_54, %c512_55] : memref<1x1024xf32, #tpu.memory_space<vmem>>, vector<1x256xf32>
    %112 = vector.broadcast %111 : vector<1x256xf32> to vector<128x256xf32>
    %113 = arith.mulf %110, %112 : vector<128x256xf32>
    %c0_56 = arith.constant 0 : index
    %c512_57 = arith.constant 512 : index
    %114 = vector.load %arg9[%c0_56, %c512_57] : memref<1x1024xf32, #tpu.memory_space<vmem>>, vector<1x256xf32>
    %115 = vector.broadcast %114 : vector<1x256xf32> to vector<128x256xf32>
    %116 = arith.addf %113, %115 : vector<128x256xf32>
    %117 = vector.extract_strided_slice %116 {offsets = [0, 0], sizes = [64, 256], strides = [1, 1]} : vector<128x256xf32> to vector<64x256xf32>
    %cst_58 = arith.constant dense<0xFF800000> : vector<256xf32>
    %118 = vector.multi_reduction <maximumf>, %117, %cst_58 [0] : vector<64x256xf32> to vector<256xf32>
    %119 = vector.shape_cast %118 : vector<256xf32> to vector<1x256xf32>
    %c0_59 = arith.constant 0 : index
    %c512_60 = arith.constant 512 : index
    %120 = vector.load %arg17[%c0_59, %c512_60] : memref<2x1024xf32, #tpu.memory_space<vmem>>, vector<1x256xf32>
    tpu.vector_store %arg17[%c0_59, %c512_60], %119 {strides = array<i32>} : memref<2x1024xf32, #tpu.memory_space<vmem>>, vector<1x256xf32>,
    %121 = vector.extract_strided_slice %116 {offsets = [64, 0], sizes = [64, 256], strides = [1, 1]} : vector<128x256xf32> to vector<64x256xf32>
    %cst_61 = arith.constant dense<0xFF800000> : vector<256xf32>
    %122 = vector.multi_reduction <maximumf>, %121, %cst_61 [0] : vector<64x256xf32> to vector<256xf32>
    %123 = vector.shape_cast %122 : vector<256xf32> to vector<1x256xf32>
    %c1_62 = arith.constant 1 : index
    %c512_63 = arith.constant 512 : index
    %124 = vector.load %arg17[%c1_62, %c512_63] : memref<2x1024xf32, #tpu.memory_space<vmem>>, vector<1x256xf32>
    tpu.vector_store %arg17[%c1_62, %c512_63], %123 {strides = array<i32>} : memref<2x1024xf32, #tpu.memory_space<vmem>>, vector<1x256xf32>,
    %c0_64 = arith.constant 0 : index
    %c768 = arith.constant 768 : index
    %125 = vector.load %arg7[%c0_64, %c768] : memref<256x1024xbf16, #tpu.memory_space<vmem>>, vector<256x256xbf16>
    %cst_65 = arith.constant dense<0.000000e+00> : vector<128x256xf32>
    %126 = tpu.matmul %76, %125, %cst_65 {dimension_numbers = #tpu.dot_dimension_numbers<[1], [0], [0], [1], [0, 0, 1, 1], [], []>} : vector<128x256xbf16>, vector<256x256xbf16>, vector<128x256xf32> -> vector<128x256xf32>
    %c0_66 = arith.constant 0 : index
    %c768_67 = arith.constant 768 : index
    %127 = vector.load %arg8[%c0_66, %c768_67] : memref<1x1024xf32, #tpu.memory_space<vmem>>, vector<1x256xf32>
    %128 = vector.broadcast %127 : vector<1x256xf32> to vector<128x256xf32>
    %129 = arith.mulf %126, %128 : vector<128x256xf32>
    %c0_68 = arith.constant 0 : index
    %c768_69 = arith.constant 768 : index
    %130 = vector.load %arg9[%c0_68, %c768_69] : memref<1x1024xf32, #tpu.memory_space<vmem>>, vector<1x256xf32>
    %131 = vector.broadcast %130 : vector<1x256xf32> to vector<128x256xf32>
    %132 = arith.addf %129, %131 : vector<128x256xf32>
    %133 = vector.extract_strided_slice %132 {offsets = [0, 0], sizes = [64, 256], strides = [1, 1]} : vector<128x256xf32> to vector<64x256xf32>
    %cst_70 = arith.constant dense<0xFF800000> : vector<256xf32>
    %134 = vector.multi_reduction <maximumf>, %133, %cst_70 [0] : vector<64x256xf32> to vector<256xf32>
    %135 = vector.shape_cast %134 : vector<256xf32> to vector<1x256xf32>
    %c0_71 = arith.constant 0 : index
    %c768_72 = arith.constant 768 : index
    %136 = vector.load %arg17[%c0_71, %c768_72] : memref<2x1024xf32, #tpu.memory_space<vmem>>, vector<1x256xf32>
    tpu.vector_store %arg17[%c0_71, %c768_72], %135 {strides = array<i32>} : memref<2x1024xf32, #tpu.memory_space<vmem>>, vector<1x256xf32>,
    %137 = vector.extract_strided_slice %132 {offsets = [64, 0], sizes = [64, 256], strides = [1, 1]} : vector<128x256xf32> to vector<64x256xf32>
    %cst_73 = arith.constant dense<0xFF800000> : vector<256xf32>
    %138 = vector.multi_reduction <maximumf>, %137, %cst_73 [0] : vector<64x256xf32> to vector<256xf32>
    %139 = vector.shape_cast %138 : vector<256xf32> to vector<1x256xf32>
    %c1_74 = arith.constant 1 : index
    %c768_75 = arith.constant 768 : index
    %140 = vector.load %arg17[%c1_74, %c768_75] : memref<2x1024xf32, #tpu.memory_space<vmem>>, vector<1x256xf32>
    tpu.vector_store %arg17[%c1_74, %c768_75], %139 {strides = array<i32>} : memref<2x1024xf32, #tpu.memory_space<vmem>>, vector<1x256xf32>,
    %c0_i32_76 = arith.constant 0 : i32
    %141 = tpu.memref_slice %arg21[%c0_i32_76] : memref<2x!tpu.dma_semaphore, #tpu.memory_space<semaphore_mem>> -> memref<1x!tpu.dma_semaphore, #tpu.memory_space<semaphore_mem>>
    %142 = tpu.memref_squeeze %141 : memref<1x!tpu.dma_semaphore, #tpu.memory_space<semaphore_mem>> -> memref<!tpu.dma_semaphore, #tpu.memory_space<semaphore_mem>>
    tpu.wait_dma2 semaphore(%142 : memref<!tpu.dma_semaphore, #tpu.memory_space<semaphore_mem>>) src(%arg14 : memref<1024x512xbf16, #tpu.memory_space<any>>) dst(%arg19 : memref<1024x512xbf16, #tpu.memory_space<vmem>>)
    %c0_77 = arith.constant 0 : index
    %c0_78 = arith.constant 0 : index
    %143 = vector.load %arg17[%c0_77, %c0_78] : memref<2x1024xf32, #tpu.memory_space<vmem>>, vector<2x1024xf32>
    %144 = arith.truncf %143 : vector<2x1024xf32> to vector<2x1024xbf16>
    %c0_79 = arith.constant 0 : index
    %c0_80 = arith.constant 0 : index
    %145 = vector.load %arg19[%c0_79, %c0_80] : memref<1024x512xbf16, #tpu.memory_space<vmem>>, vector<1024x512xbf16>
    %cst_81 = arith.constant dense<0.000000e+00> : vector<2x512xf32>
    %146 = tpu.matmul %144, %145, %cst_81 {dimension_numbers = #tpu.dot_dimension_numbers<[1], [0], [0], [1], [0, 0, 1, 1], [], []>} : vector<2x1024xbf16>, vector<1024x512xbf16>, vector<2x512xf32> -> vector<2x512xf32>
    %c0_82 = arith.constant 0 : index
    %c0_83 = arith.constant 0 : index
    %147 = vector.load %arg10[%c0_82, %c0_83] : memref<1x512xf32, #tpu.memory_space<vmem>>, vector<1x512xf32>
    %148 = vector.broadcast %147 : vector<1x512xf32> to vector<2x512xf32>
    %149 = arith.mulf %146, %148 : vector<2x512xf32>
    %c0_84 = arith.constant 0 : index
    %c0_85 = arith.constant 0 : index
    %150 = vector.load %arg11[%c0_84, %c0_85] : memref<1x512xf32, #tpu.memory_space<vmem>>, vector<1x512xf32>
    %151 = vector.broadcast %150 : vector<1x512xf32> to vector<2x512xf32>
    %152 = arith.addf %149, %151 : vector<2x512xf32>
    %cst_86 = arith.constant 0.000000e+00 : f32
    %153 = vector.broadcast %cst_86 : f32 to vector<2x512xf32>
    %154 = arith.maximumf %152, %153 : vector<2x512xf32>
    %c1_i32_87 = arith.constant 1 : i32
    %155 = tpu.memref_slice %arg21[%c1_i32_87] : memref<2x!tpu.dma_semaphore, #tpu.memory_space<semaphore_mem>> -> memref<1x!tpu.dma_semaphore, #tpu.memory_space<semaphore_mem>>
    %156 = tpu.memref_squeeze %155 : memref<1x!tpu.dma_semaphore, #tpu.memory_space<semaphore_mem>> -> memref<!tpu.dma_semaphore, #tpu.memory_space<semaphore_mem>>
    tpu.wait_dma2 semaphore(%156 : memref<!tpu.dma_semaphore, #tpu.memory_space<semaphore_mem>>) src(%arg15 : memref<512x256xbf16, #tpu.memory_space<any>>) dst(%arg20 : memref<512x256xbf16, #tpu.memory_space<vmem>>)
    %157 = arith.truncf %154 : vector<2x512xf32> to vector<2x512xbf16>
    %c0_88 = arith.constant 0 : index
    %c0_89 = arith.constant 0 : index
    %158 = vector.load %arg20[%c0_88, %c0_89] : memref<512x256xbf16, #tpu.memory_space<vmem>>, vector<512x256xbf16>
    %cst_90 = arith.constant dense<0.000000e+00> : vector<2x256xf32>
    %159 = tpu.matmul %157, %158, %cst_90 {dimension_numbers = #tpu.dot_dimension_numbers<[1], [0], [0], [1], [0, 0, 1, 1], [], []>} : vector<2x512xbf16>, vector<512x256xbf16>, vector<2x256xf32> -> vector<2x256xf32>
    %c0_91 = arith.constant 0 : index
    %c0_92 = arith.constant 0 : index
    %160 = vector.load %arg12[%c0_91, %c0_92] : memref<1x256xf32, #tpu.memory_space<vmem>>, vector<1x256xf32>
    %161 = vector.broadcast %160 : vector<1x256xf32> to vector<2x256xf32>
    %162 = arith.mulf %159, %161 : vector<2x256xf32>
    %c0_93 = arith.constant 0 : index
    %c0_94 = arith.constant 0 : index
    %163 = vector.load %arg13[%c0_93, %c0_94] : memref<1x256xf32, #tpu.memory_space<vmem>>, vector<1x256xf32>
    %164 = vector.broadcast %163 : vector<1x256xf32> to vector<2x256xf32>
    %165 = arith.addf %162, %164 : vector<2x256xf32>
    %cst_95 = arith.constant 0.000000e+00 : f32
    %166 = vector.broadcast %cst_95 : f32 to vector<2x256xf32>
    %167 = arith.maximumf %165, %166 : vector<2x256xf32>
    %c0_96 = arith.constant 0 : index
    %c0_97 = arith.constant 0 : index
    %168 = vector.load %arg16[%c0_96, %c0_97] : memref<2x256xf32, #tpu.memory_space<vmem>>, vector<2x256xf32>
    tpu.vector_store %arg16[%c0_96, %c0_97], %167 {strides = array<i32>} : memref<2x256xf32, #tpu.memory_space<vmem>>, vector<2x256xf32>,
    return
  }
}

</mosaic_0001>

<bundles_post_ra>
// kernel: tpu_custom_call.1
= control target key start
LH: loop header
LB: loop body
LE: loop exit
PB: predicated region body
PF: predicated region fallthrough
CT: control target
= control target key end

     0   :  { %s8300_s0 = inlined_call_operand.hbm [shape: f32[128,128], index: 0, kind: input, shape index: {}]   ;;  %s8301_s1 = inlined_call_operand.hbm [shape: bf16[128,128], index: 1, kind: input, shape index: {}]   ;;  %s8302_s2 = inlined_call_operand.hbm [shape: f32[1,128], index: 2, kind: input, shape index: {}]   ;;  %s8303_s3 = inlined_call_operand.hbm [shape: f32[1,128], index: 3, kind: input, shape index: {}]   ;;  %s8304_s4 = inlined_call_operand.hbm [shape: bf16[128,256], index: 4, kind: input, shape index: {}]   ;;  %s8305_s5 = inlined_call_operand.hbm [shape: f32[1,256], index: 5, kind: input, shape index: {}]   ;;  %s8306_s6 = inlined_call_operand.hbm [shape: f32[1,256], index: 6, kind: input, shape index: {}]   ;;  %s8307_s7 = inlined_call_operand.hbm [shape: bf16[256,1024], index: 7, kind: input, shape index: {}]   ;;  %s8308_s8 = inlined_call_operand.vmem [shape: f32[1,1024], index: 8, kind: input, shape index: {}]   ;;  %s8309_s9 = inlined_call_operand.vmem [shape: f32[1,1024], index: 9, kind: input, shape index: {}]   ;;  %s8310_s10 = inlined_call_operand.hbm [shape: f32[1,512], index: 10, kind: input, shape index: {}]   ;;  %s8311_s11 = inlined_call_operand.vmem [shape: f32[1,512], index: 11, kind: input, shape index: {}]   ;;  %s8312_s12 = inlined_call_operand.hbm [shape: f32[1,256], index: 12, kind: input, shape index: {}]   ;;  %s8313_s13 = inlined_call_operand.vmem [shape: f32[1,256], index: 13, kind: input, shape index: {}]   ;;  %s8314_s14 = inlined_call_operand.hbm [shape: bf16[1024,512], index: 14, kind: input, shape index: {}]   ;;  %s8315_s15 = inlined_call_operand.hbm [shape: bf16[512,256], index: 15, kind: input, shape index: {}]   ;;  %s8316_s16 = inlined_call_operand.hbm [shape: f32[2,256], index: 16, kind: output, shape index: {0}]   ;;  %s8317_s17 = inlined_call_operand.hbm [shape: f32[2,1024], index: 17, kind: output, shape index: {1}]   ;;  %s8318_s18 = inlined_call_operand.hbm [shape: f32[128,128], index: 18, kind: output, shape index: {2}]  }
   0x1   :  { %8319 = sst [smem:[#allocation42_spill]] %s8300_s0 }
   0x2   :  { %8320 = sst [smem:[#allocation43_spill]] %s8301_s1 }
   0x3   :  { %8321 = sst [smem:[#allocation44_spill]] %s8302_s2 }
   0x4   :  { %24 = vsyncpa [#allocation6], 0 }
   0x5   :  { %25 = vsyncpa [#allocation9], 0 }
   0x6   :  { %26 = vsyncpa [#allocation12], 0 }
   0x7   :  { %27 = vsyncpa [#allocation15], 0 }
   0x8   :  { %28 = vsyncpa [#allocation18], 0 }
   0x9   :  { %29 = vsyncpa [#allocation21], 0 }
   0xa   :  { %30 = vsyncpa [#allocation7], 0 }
   0xb   :  { %31 = vsyncpa [#allocation24], 0  ;;  %s7024_s27 = smov [#allocation8]  }
   0xc   :  { %s49_s28 = sshll.u32 %s7024_s27, 4  ;;  %s50_s28 = int_to_ptr.vmem [resolvable:$true] %s49_s28 }
   0xd   :  { %s6712_s29 = scalar_lea.vmem %s50_s28, 1024  ;;  %p6717_p1 = scmp.lt.s32.totalorder %s50_s28, %s50_s28 }
   0xe   :  { %p6713_p0 = scmp.ne.s32.totalorder %s50_s28, %s6712_s29  ;;  %p6718_p2 = scmp.lt.s32.totalorder %s6712_s29, %s6712_s29 }
  0x10   :  { %p6719_p3 = por %p6718_p2, %p6717_p1 }
  0x12   :  { %p6720_p4 = pnand %p6719_p3, %p6713_p0 }
  0x14   :  { %6723 = shalt.err (!%p6720_p4)
}
  0x15   :  { %s7025_s30 = smov 64   ;;  %s7026_s0 = smov 4  }
  0x16   :  { %s8322_s20 = sld [smem:[#allocation43_spill]]  ;;  %s7027_s21 = smov [#allocation11]  }
  0x17   :  { %s72_s22 = sshll.u32 %s7027_s21, 4  ;;  %s7028_s2 = smov [#allocation14]   ;;  %s73_s22 = int_to_ptr.vmem [resolvable:$true] %s72_s22 }
  0x18   :  { %s94_s23 = sshll.u32 %s7028_s2, 4  ;;  %s6732_s24 = scalar_lea.vmem %s73_s22, 16  ;;  %s95_s23 = int_to_ptr.vmem [resolvable:$true] %s94_s23 }
  0x19   :  { %p6733_p5 = scmp.ne.s32.totalorder %s73_s22, %s6732_s24  ;;  %s6736_s25 = scalar_lea.vmem %s73_s22, 32 }
  0x1a   :  { %p6737_p6 = scmp.lt.s32.totalorder %s73_s22, %s73_s22  ;;  %p6738_p7 = scmp.lt.s32.totalorder %s6736_s25, %s6732_s24 }
  0x1c   :  { %55 = dma.hbm_to_vmem [thread:$0]  %s8322_s20, 1024, %s50_s28, [#allocation9], %s7025_s30, %s7025_s30, %s7026_s0  }
  0x1d   :  { %p6739_p8 = por %p6738_p7, %p6737_p6 }
  0x1f   :  { %p6740_p9 = pnand %p6739_p8, %p6733_p5 }
  0x21   :  { %6743 = shalt.err (!%p6740_p9)
}
  0x22   :  { %75 = dma.hbm_to_vmem [thread:$0]  %s8303_s3, 16, %s73_s22, [#allocation12]  }
  0x23   :  { %s6752_s29 = scalar_lea.vmem %s95_s23, 32  ;;  %p6757_p11 = scmp.lt.s32.totalorder %s95_s23, %s95_s23 }
  0x24   :  { %p6753_p10 = scmp.ne.s32.totalorder %s95_s23, %s6752_s29  ;;  %p6758_p12 = scmp.lt.s32.totalorder %s6752_s29, %s6752_s29 }
  0x26   :  { %p6759_p13 = por %p6758_p12, %p6757_p11 }
  0x28   :  { %p6760_p0 = pnand %p6759_p13, %p6753_p10 }
  0x2a   :  { %6763 = shalt.err (!%p6760_p0)
}
  0x2b   :  { %97 = dma.hbm_to_vmem [thread:$0]  %s8305_s5, 32, %s95_s23, [#allocation15]  }
  0x2c   :  { %s7029_s19 = smov [#allocation17]  }
  0x2d   :  { %s113_s1 = sshll.u32 %s7029_s19, 4  ;;  %s114_s1 = int_to_ptr.vmem [resolvable:$true] %s113_s1 }
  0x2e   :  { %s6772_s20 = scalar_lea.vmem %s114_s1, 16384  ;;  %p6777_p2 = scmp.lt.s32.totalorder %s114_s1, %s114_s1 }
  0x2f   :  { %p6773_p1 = scmp.ne.s32.totalorder %s114_s1, %s6772_s20  ;;  %p6778_p3 = scmp.lt.s32.totalorder %s6772_s20, %s6772_s20 }
  0x31   :  { %p6779_p4 = por %p6778_p3, %p6777_p2 }
  0x33   :  { %p6780_p5 = pnand %p6779_p4, %p6773_p1 }
  0x35   :  { %6783 = shalt.err (!%p6780_p5)
}
  0x36   :  { %s7030_s3 = smov 512   ;;  %s7031_s21 = smov 32  }
  0x37   :  { %119 = dma.hbm_to_vmem [thread:$0]  %s8307_s7, 16384, %s114_s1, [#allocation18], %s7030_s3, %s7030_s3, %s7031_s21  }
  0x38   :  { %s7032_s24 = smov [#allocation5]  }
  0x39   :  { %s37_s25 = sshll.u32 %s7032_s24, 4  ;;  %s38_s25 = int_to_ptr.vmem [resolvable:$true] %s37_s25 }
  0x3a   :  { %s6792_s5 = scalar_lea.vmem %s38_s25, 2048  ;;  %p6797_p7 = scmp.lt.s32.totalorder %s38_s25, %s38_s25 }
  0x3b   :  { %p6793_p6 = scmp.ne.s32.totalorder %s38_s25, %s6792_s5  ;;  %p6798_p8 = scmp.lt.s32.totalorder %s6792_s5, %s6792_s5 }
  0x3d   :  { %p6799_p9 = por %p6798_p8, %p6797_p7 }
  0x3f   :  { %p6800_p10 = pnand %p6799_p9, %p6793_p6 }
  0x41   :  { %6803 = shalt.err (!%p6800_p10)
}
  0x42   :  { %s7033_s23 = smov 128   ;;  %s7034_s26 = smov 8  }
  0x43   :  { %s8323_s28 = sld [smem:[#allocation42_spill]]  ;;  %s7035_s7 = smov [#allocation10]  }
  0x44   :  { %s62_s0 = sshll.u32 %s7035_s7, 4  ;;  %s7036_s19 = smov [#allocation13]   ;;  %s63_s0 = int_to_ptr.vmem [resolvable:$true] %s62_s0 }
  0x45   :  { %s81_s1 = sshll.u32 %s7036_s19, 4  ;;  %s6812_s20 = scalar_lea.vmem %s63_s0, 16  ;;  %s82_s1 = int_to_ptr.vmem [resolvable:$true] %s81_s1 }
  0x46   :  { %p6813_p11 = scmp.ne.s32.totalorder %s63_s0, %s6812_s20  ;;  %s6816_s3 = scalar_lea.vmem %s63_s0, 32 }
  0x47   :  { %p6817_p12 = scmp.lt.s32.totalorder %s63_s0, %s63_s0  ;;  %p6818_p13 = scmp.lt.s32.totalorder %s6816_s3, %s6812_s20 }
  0x49   :  { %43 = dma.hbm_to_vmem [thread:$0]  %s8323_s28, 2048, %s38_s25, [#allocation6], %s7033_s23, %s7033_s23, %s7034_s26  }
  0x4a   :  { %p6819_p0 = por %p6818_p13, %p6817_p12 }
  0x4c   :  { %p6820_p1 = pnand %p6819_p0, %p6813_p11 }
  0x4e   :  { %6823 = shalt.err (!%p6820_p1)
}
  0x4f   :  { %s8324_s2 = sld [smem:[#allocation44_spill]]  ;;  %s6832_s24 = scalar_lea.vmem %s82_s1, 2048 }
  0x50   :  { %p6833_p2 = scmp.ne.s32.totalorder %s82_s1, %s6832_s24  ;;  %p6837_p3 = scmp.lt.s32.totalorder %s82_s1, %s82_s1 }
  0x51   :  { %p6838_p4 = scmp.lt.s32.totalorder %s6832_s24, %s6832_s24 }
  0x53   :  { %p6839_p5 = por %p6838_p4, %p6837_p3 }
  0x55   :  { %65 = dma.hbm_to_vmem [thread:$0]  %s8324_s2, 16, %s63_s0, [#allocation9]  }
  0x56   :  { %p6840_p6 = pnand %p6839_p5, %p6833_p2 }
  0x58   :  { %6843 = shalt.err (!%p6840_p6)
}
  0x59   :  { %87 = dma.hbm_to_vmem [thread:$0]  %s8304_s4, 2048, %s82_s1, [#allocation12], %s7033_s23, %s7033_s23, %s7034_s26  }
  0x5a   :  { %s7037_s27 = smov [#allocation16]   ;;  %s7038_s28 = smov [#allocation19]  }
  0x5b   :  { %s104_s29 = sshll.u32 %s7037_s27, 4  ;;  %s130_s7 = sshll.u32 %s7038_s28, 4  ;;  %s105_s29 = int_to_ptr.vmem [resolvable:$true] %s104_s29  ;;  %s131_s7 = int_to_ptr.vmem [resolvable:$true] %s130_s7 }
  0x5c   :  { %s6852_s0 = scalar_lea.vmem %s105_s29, 32  ;;  %p6857_p8 = scmp.lt.s32.totalorder %s105_s29, %s105_s29 }
  0x5d   :  { %p6853_p7 = scmp.ne.s32.totalorder %s105_s29, %s6852_s0  ;;  %p6858_p9 = scmp.lt.s32.totalorder %s6852_s0, %s6852_s0 }
  0x5f   :  { %p6859_p10 = por %p6858_p9, %p6857_p8 }
  0x61   :  { %p6860_p11 = pnand %p6859_p10, %p6853_p7 }
  0x63   :  { %6863 = shalt.err (!%p6860_p11)
}
  0x64   :  { %107 = dma.hbm_to_vmem [thread:$0]  %s8306_s6, 32, %s105_s29, [#allocation15]  }
  0x65   :  { %s6872_s3 = scalar_lea.vmem %s131_s7, 64  ;;  %p6877_p13 = scmp.lt.s32.totalorder %s131_s7, %s131_s7 }
  0x66   :  { %p6873_p12 = scmp.ne.s32.totalorder %s131_s7, %s6872_s3  ;;  %p6878_p0 = scmp.lt.s32.totalorder %s6872_s3, %s6872_s3 }
  0x68   :  { %p6879_p1 = por %p6878_p0, %p6877_p13 }
  0x6a   :  { %p6880_p2 = pnand %p6879_p1, %p6873_p12 }
  0x6c   :  { %6883 = shalt.err (!%p6880_p2)
}
  0x6d   :  { %133 = dma.hbm_to_vmem [thread:$0]  %s8310_s10, 64, %s131_s7, [#allocation18]  }
  0x6e   :  { %s7039_s21 = smov [#allocation20]  }
  0x6f   :  { %s142_s22 = sshll.u32 %s7039_s21, 4  ;;  %s143_s22 = int_to_ptr.vmem [resolvable:$true] %s142_s22 }
  0x70   :  { %s6892_s2 = scalar_lea.vmem %s143_s22, 32  ;;  %p6897_p4 = scmp.lt.s32.totalorder %s143_s22, %s143_s22 }
  0x71   :  { %p6893_p3 = scmp.ne.s32.totalorder %s143_s22, %s6892_s2  ;;  %p6898_p5 = scmp.lt.s32.totalorder %s6892_s2, %s6892_s2 }
  0x73   :  { %p6899_p6 = por %p6898_p5, %p6897_p4 }
  0x75   :  { %p6900_p7 = pnand %p6899_p6, %p6893_p3 }
  0x77   :  { %6903 = shalt.err (!%p6900_p7)
}
  0x78   :  { %145 = dma.hbm_to_vmem [thread:$0]  %s8312_s12, 32, %s143_s22, [#allocation21]  }
  0x79   :  { %7004 = dma.done.wait [#allocation6], 2048  }
  0x7a   :  { %7005 = vsyncadd [#allocation6], 4294965248 }
  0x7b   :  { %7006 = dma.done.wait [#allocation9], 1040  }
  0x7c   :  { %7007 = vsyncadd [#allocation9], 4294966256 }
  0x7d   :  { %7008 = dma.done.wait [#allocation12], 2064  }
  0x7e   :  { %7009 = vsyncadd [#allocation12], 4294965232 }
  0x7f   :  { %7010 = dma.done.wait [#allocation15], 64  }
  0x80   :  { %7011 = vsyncadd [#allocation15], 4294967232 }
  0x81   :  { %7012 = dma.done.wait [#allocation18], 16448  }
  0x82   :  { %7013 = vsyncadd [#allocation18], 4294950848 }
  0x83   :  { %7014 = dma.done.wait [#allocation21], 32  }
  0x84   :  { %7015 = vsyncadd [#allocation21], 4294967264  ;;  %v449_v0 = vlaneseq  ;;  %v6182_v1 = vld [vmem:[#allocation8 + $0x38] sm:$0xff]   ;;  %v6183_v2 = vld [vmem:[#allocation8 + $0x30] sm:$0xff]   ;;  %s7042_s7 = smov [#allocation2]   ;;  %s7043_s19 = smov [#allocation3]  }
  0x85   :  { %6126 = vmatprep.subr.bf16.mxu0 %v6182_v1  ;;  %v6184_v4 = vld [vmem:[#allocation8 + $0x28] sm:$0xff]   ;;  %v6185_v5 = vld [vmem:[#allocation8 + $0x20] sm:$0xff]   ;;  %v6186_v12 = vld [vmem:[#allocation8 + $0x18] sm:$0xff]   ;;  %s186_s0 = sshll.u32 %s7042_s7, 4  ;;  %s198_s20 = sshll.u32 %s7043_s19, 4  ;;  %s187_s0 = int_to_ptr.vmem [resolvable:$true] %s186_s0  ;;  %s199_s20 = int_to_ptr.vmem [resolvable:$true] %s198_s20 }
  0x86   :  { %v7182_v3 = vand.u32 127, %v449_v0  ;;  %6127 = vmatpush3.bf16.msra.mxu0 %v6182_v1  ;;  %v202_v6 = vld [vmem:[#allocation5] sm:$0xff]  ;;  %v203_v7 = vld [vmem:[#allocation5 + $0x8] sm:$0xff]  ;;  %v204_v13 = vld [vmem:[#allocation5 + $0x10] sm:$0xff]  ;;  %s6912_s3 = scalar_lea.vmem %s187_s0, 32768  ;;  %p6917_p9 = scmp.lt.s32.totalorder %s187_s0, %s187_s0 }
  0x87   :  { %6128 = vmatprep.subr.bf16.mxu0 %v6183_v2  ;;  %v218_v8 = vpack.c.bf16 %v203_v7, %v202_v6  ;;  %v6187_v16 = vld [vmem:[#allocation8 + $0x10] sm:$0xff]   ;;  %v205_v17 = vld [vmem:[#allocation5 + $0x18] sm:$0xff]  ;;  %v6188_v20 = vld [vmem:[#allocation8 + $0x8] sm:$0xff]   ;;  %p6913_p8 = scmp.ne.s32.totalorder %s187_s0, %s6912_s3  ;;  %p6918_p10 = scmp.lt.s32.totalorder %s6912_s3, %s6912_s3 }
  0x88   :  { %vm451_vm0 = vcmp.lt.s32.totalorder %v7182_v3, 64  ;;  %v6189_v22 = vld [vmem:[#allocation8] sm:$0xff]   ;;  %v207_v24 = vld [vmem:[#allocation5 + $0x28] sm:$0xff]  ;;  %v219_v25 = vpack.c.bf16 %v205_v17, %v204_v13  ;;  %v208_v27 = vld [vmem:[#allocation5 + $0x30] sm:$0xff] }
  0x89   :  { %v7187_v9 = vsel %vm451_vm0, %v203_v7, 0.0  ;;  %v7191_v10 = vsel %vm451_vm0, %v202_v6, 0.0  ;;  %6142 = vmatprep.mubr.bf16.mxu0 %v218_v8  ;;  %v7199_v15 = vsel %vm451_vm0, %v204_v13, 0.0  ;;  %v7205_v19 = vsel %vm451_vm0, %v205_v17, 0.0  ;;  %v206_v23 = vld [vmem:[#allocation5 + $0x20] sm:$0xff]  ;;  %v209_v28 = vld [vmem:[#allocation5 + $0x38] sm:$0xff]  ;;  %p6919_p11 = por %p6918_p10, %p6917_p9 }
  0x8a   :  { %6129 = vmatpush3.bf16.msra.mxu0 %v6183_v2  ;;  %v516_v11 = vmul.f32 %v7191_v10, %v7191_v10  ;;  %v517_v14 = vmul.f32 %v7187_v9, %v7187_v9  ;;  %v518_v18 = vmul.f32 %v7199_v15, %v7199_v15  ;;  %v519_v21 = vmul.f32 %v7205_v19, %v7205_v19  ;;  %v7209_v29 = vld [vmem:[#allocation5 + $0x40] sm:$0xff]  ;;  %v211_v30 = vld [vmem:[#allocation5 + $0x48] sm:$0xff]  ;;  %v212_v33 = vld [vmem:[#allocation5 + $0x50] sm:$0xff] }
  0x8b   :  { %6130 = vmatprep.subr.bf16.mxu0 %v6184_v4  ;;  %v220_v26 = vpack.c.bf16 %v207_v24, %v206_v23  ;;  %v221_v31 = vpack.c.bf16 %v209_v28, %v208_v27  ;;  %v222_v32 = vpack.c.bf16 %v211_v30, %v7209_v29  ;;  %v213_v34 = vld [vmem:[#allocation5 + $0x58] sm:$0xff]  ;;  %v214_v35 = vld [vmem:[#allocation5 + $0x60] sm:$0xff]  ;;  %v7212_v36 = vld [vmem:[#allocation5 + $0x68] sm:$0xff]  ;;  %v7223_v42 = vsel %vm451_vm0, %v206_v23, 0.0  ;;  %p6920_p12 = pnand %p6919_p11, %p6913_p8 }
  0x8c   :  { %532 = vadd.xlane.f32.xlu1 %v516_v11  ;;  %v223_v37 = vpack.c.bf16 %v213_v34, %v212_v33  ;;  %v224_v38 = vpack.c.bf16 %v7212_v36, %v214_v35  ;;  %v7215_v39 = vld [vmem:[#allocation5 + $0x70] sm:$0xff]  ;;  %v7217_v40 = vld [vmem:[#allocation5 + $0x78] sm:$0xff]  ;;  %v520_v43 = vmul.f32 %v7223_v42, %v7223_v42  ;;  %v7229_v44 = vsel %vm451_vm0, %v207_v24, 0.0  ;;  %v7269_v58 = vld [vmem:[#allocation10] ss:$0 sm:$0xff] }
  0x8d   :  { %v225_v41 = vpack.c.bf16 %v7217_v40, %v7215_v39  ;;  %v521_v45 = vmul.f32 %v7229_v44, %v7229_v44  ;;  %v7235_v46 = vsel %vm451_vm0, %v208_v27, 0.0  ;;  %v7241_v48 = vsel %vm451_vm0, %v209_v28, 0.0  ;;  %v7271_v60 = vld [vmem:[#allocation11] ss:$0 sm:$0xff] }
  0x8e   :  { %6131 = vmatpush3.bf16.msra.mxu0 %v6184_v4  ;;  %v522_v47 = vmul.f32 %v7235_v46, %v7235_v46  ;;  %v523_v49 = vmul.f32 %v7241_v48, %v7241_v48  ;;  %v7247_v50 = vsel %vm451_vm0, %v211_v30, 0.0  ;;  %v7253_v52 = vsel %vm451_vm0, %v212_v33, 0.0 }
  0x8f   :  { %6132 = vmatprep.subr.bf16.mxu0 %v6185_v5  ;;  %v525_v51 = vmul.f32 %v7247_v50, %v7247_v50  ;;  %v526_v53 = vmul.f32 %v7253_v52, %v7253_v52  ;;  %v7259_v54 = vsel %vm451_vm0, %v213_v34, 0.0  ;;  %v7265_v56 = vsel %vm451_vm0, %v214_v35, 0.0 }
  0x90   :  { %534 = vadd.xlane.f32.xlu1 %v517_v14  ;;  %v527_v55 = vmul.f32 %v7259_v54, %v7259_v54  ;;  %v528_v57 = vmul.f32 %v7265_v56, %v7265_v56 }
  0x92   :  { %6133 = vmatpush3.bf16.msra.mxu0 %v6185_v5 }
  0x93   :  { %6134 = vmatprep.subr.bf16.mxu0 %v6186_v12 }
  0x94   :  { %536 = vadd.xlane.f32.xlu1 %v518_v18 }
  0x96   :  { %6135 = vmatpush3.bf16.msra.mxu0 %v6186_v12 }
  0x97   :  { %6136 = vmatprep.subr.bf16.mxu0 %v6187_v16 }
  0x98   :  { %538 = vadd.xlane.f32.xlu1 %v519_v21 }
  0x9a   :  { %6137 = vmatpush3.bf16.msra.mxu0 %v6187_v16 }
  0x9b   :  { %6138 = vmatprep.subr.bf16.mxu0 %v6188_v20 }
  0x9c   :  { %540 = vadd.xlane.f32.xlu1 %v520_v43 }
  0x9e   :  { %6139 = vmatpush3.bf16.msra.mxu0 %v6188_v20 }
  0x9f   :  { %6140 = vmatprep.subr.bf16.mxu0 %v6189_v22 }
  0xa0   :  { %542 = vadd.xlane.f32.xlu1 %v521_v45 }
  0xa2   :  { %6141 = vmatpush3.bf16.msra.mxu0 %v6189_v22 }
  0xa4   :  { %544 = vadd.xlane.f32.xlu1 %v522_v47 }
  0xa5   :  { %6143 = vmatmul.mubr.bf16.vlgmr.msra.gmra.mxu0 %v219_v25 }
  0xa6   :  { %6146 = vmatprep.mubr.bf16.mxu0 %v220_v26 }
  0xa8   :  { %546 = vadd.xlane.f32.xlu1 %v523_v49 }
  0xac   :  { %550 = vadd.xlane.f32.xlu1 %v525_v51 }
  0xad   :  { %6147 = vmatmul.mubr.bf16.gmra.mxu0 %v221_v31 }
  0xae   :  { %6150 = vmatprep.mubr.bf16.mxu0 %v222_v32 }
  0xb0   :  { %552 = vadd.xlane.f32.xlu1 %v526_v53 }
  0xb4   :  { %554 = vadd.xlane.f32.xlu1 %v527_v55 }
  0xb5   :  { %6151 = vmatmul.mubr.bf16.gmra.mxu0 %v223_v37 }
  0xb6   :  { %6154 = vmatprep.mubr.bf16.mxu0 %v224_v38 }
  0xb8   :  { %556 = vadd.xlane.f32.xlu1 %v528_v57 }
  0xbd   :  { %6155 = vmatmul.mubr.bf16.gmra.mxu0 %v225_v41 }
 0x165   :  { %v6144_v59 = vpop.f32.mrf.mxu0 }
 0x166   :  { %v396_v61 = vmul.f32 %v6144_v59, %v7269_v58  ;;  %v7322_v59 = vsel %vm451_vm0, %v7212_v36, 0.0  ;;  %v7336_v36 = vsel %vm451_vm0, %v7215_v39, 0.0  ;;  %v7352_v39 = vsel %vm451_vm0, %v7217_v40, 0.0 }
 0x167   :  { %v324_v62 = vpop.f32.mrf.mxu0 }
 0x168   :  { %v394_v63 = vmul.f32 %v7269_v58, %v324_v62  ;;  %v419_v1 = vadd.f32 %v7271_v60, %v396_v61 }
 0x169   :  { %v6145_v2 = vpop.f32.mrf.mxu0 }
 0x16a   :  { %v417_v4 = vadd.f32 %v7271_v60, %v394_v63  ;;  %v397_v5 = vmul.f32 %v6145_v2, %v7269_v58  ;;  %v7278_v6 = vmax.f32 %v419_v1, 0.0  ;;  %v529_v2 = vmul.f32 %v7322_v59, %v7322_v59 }
 0x16b   :  { %v327_v7 = vpop.f32.mrf.mxu0 }
 0x16c   :  { %v7280_v8 = vmax.f32 %v417_v4, 0.0  ;;  %v420_v11 = vadd.f32 %v7271_v60, %v397_v5  ;;  %v395_v12 = vmul.f32 %v7269_v58, %v327_v7  ;;  %v470_v13 = vmul.f32 %v7278_v6, %v7278_v6 }
 0x16d   :  { %v6148_v14 = vpop.f32.mrf.mxu0  ;;  %v7342_v5 = vsel %vm451_vm0, %v7209_v29, 0.0 }
 0x16e   :  { %488 = vadd.xlane.f32.xlu0 %v470_v13  ;;  %v400_v16 = vmul.f32 %v6148_v14, %v7269_v58  ;;  %v7287_v18 = vmax.f32 %v420_v11, 0.0  ;;  %v418_v20 = vadd.f32 %v7271_v60, %v395_v12  ;;  %v468_v21 = vmul.f32 %v7280_v8, %v7280_v8 }
 0x16f   :  { %v340_v17 = vpop.f32.mrf.mxu0  ;;  %v530_v12 = vmul.f32 %v7336_v36, %v7336_v36  ;;  %v524_v29 = vmul.f32 %v7342_v5, %v7342_v5 }
 0x170   :  { %v423_v23 = vadd.f32 %v7271_v60, %v400_v16  ;;  %v7293_v25 = vmax.f32 %v418_v20, 0.0  ;;  %v398_v26 = vmul.f32 %v7269_v58, %v340_v17  ;;  %v471_v27 = vmul.f32 %v7287_v18, %v7287_v18 }
 0x171   :  { %v6149_v22 = vpop.f32.mrf.mxu0  ;;  %v531_v20 = vmul.f32 %v7352_v39, %v7352_v39 }
 0x172   :  { %484 = vadd.xlane.f32.xlu0 %v468_v21  ;;  %v7298_v30 = vmax.f32 %v423_v23, 0.0  ;;  %v421_v32 = vadd.f32 %v7271_v60, %v398_v26  ;;  %v469_v34 = vmul.f32 %v7293_v25, %v7293_v25  ;;  %v401_v43 = vmul.f32 %v6149_v22, %v7269_v58 }
 0x173   :  { %v343_v24 = vpop.f32.mrf.mxu0 }
 0x174   :  { %v399_v33 = vmul.f32 %v7269_v58, %v343_v24  ;;  %v474_v37 = vmul.f32 %v7298_v30, %v7298_v30  ;;  %v7306_v41 = vmax.f32 %v421_v32, 0.0  ;;  %v424_v51 = vadd.f32 %v7271_v60, %v401_v43  ;;  %v6190_v32 = vld [vmem:[#allocation13 + $0x74] ss:$8 sps:$4 sm:$0xff]  }
 0x175   :  { %v6152_v28 = vpop.f32.mrf.mxu0  ;;  %885 = vmatprep.subr.bf16.mxu1 %v6190_v32 }
 0x176   :  { %490 = vadd.xlane.f32.xlu0 %v471_v27  ;;  %v422_v45 = vadd.f32 %v7271_v60, %v399_v33  ;;  %v472_v55 = vmul.f32 %v7306_v41, %v7306_v41  ;;  %v404_v61 = vmul.f32 %v6152_v28, %v7269_v58  ;;  %v7327_v63 = vmax.f32 %v424_v51, 0.0 }
 0x177   :  { %v356_v31 = vpop.f32.mrf.mxu0 }
 0x178   :  { %v7313_v53 = vmax.f32 %v422_v45, 0.0  ;;  %v427_v4 = vadd.f32 %v7271_v60, %v404_v61  ;;  %v402_v7 = vmul.f32 %v7269_v58, %v356_v31  ;;  %v475_v11 = vmul.f32 %v7327_v63, %v7327_v63  ;;  %v6193_v45 = vld [vmem:[#allocation13 + $0x64] ss:$8 sps:$4 sm:$0xff]  }
 0x179   :  { %v6153_v35 = vpop.f32.mrf.mxu0 }
 0x17a   :  { %486 = vadd.xlane.f32.xlu0 %v469_v34  ;;  %v473_v1 = vmul.f32 %v7313_v53, %v7313_v53  ;;  %v7354_v14 = vmax.f32 %v427_v4, 0.0  ;;  %v425_v16 = vadd.f32 %v7271_v60, %v402_v7  ;;  %v405_v17 = vmul.f32 %v6153_v35, %v7269_v58  ;;  %v6192_v34 = vld [vmem:[#allocation13 + $0x70] ss:$8 sps:$4 sm:$0xff]  }
 0x17b   :  { %v359_v38 = vpop.f32.mrf.mxu0  ;;  %886 = vmatpush1.bf16.msra.mxu1 %v6192_v34 }
 0x17c   :  { %v403_v47 = vmul.f32 %v7269_v58, %v359_v38  ;;  %v478_v40 = vmul.f32 %v7354_v14, %v7354_v14  ;;  %v7365_v22 = vmax.f32 %v425_v16, 0.0  ;;  %v428_v23 = vadd.f32 %v7271_v60, %v405_v17  ;;  %887 = vmatprep.subr.bf16.mxu1 %v6193_v45  ;;  %v6204_v16 = vld [vmem:[#allocation13 + $0x30] ss:$8 sps:$4 sm:$0xff]   ;;  %v6205_v17 = vld [vmem:[#allocation13 + $0x24] ss:$8 sps:$4 sm:$0xff]  }
 0x17d   :  { %v6156_v13 = vpop.f32.mrf.mxu0 }
 0x17e   :  { %496 = vadd.xlane.f32.xlu0 %v474_v37  ;;  %v426_v49 = vadd.f32 %v7271_v60, %v403_v47  ;;  %v408_v3 = vmul.f32 %v6156_v13, %v7269_v58  ;;  %v7369_v27 = vmax.f32 %v428_v23, 0.0  ;;  %v476_v31 = vmul.f32 %v7365_v22, %v7365_v22  ;;  %v6195_v47 = vld [vmem:[#allocation13 + $0x60] ss:$8 sps:$4 sm:$0xff]  }
 0x17f   :  { %v372_v21 = vpop.f32.mrf.mxu0  ;;  %888 = vmatpush1.bf16.msra.mxu1 %v6195_v47  ;;  %v6213_v23 = vld [vmem:[#allocation13] ss:$8 sps:$4 sm:$0xff]  }
 0x180   :  { %v7317_v57 = vmax.f32 %v426_v49, 0.0  ;;  %v431_v26 = vadd.f32 %v7271_v60, %v408_v3  ;;  %v406_v28 = vmul.f32 %v7269_v58, %v372_v21  ;;  %v479_v43 = vmul.f32 %v7369_v27, %v7369_v27  ;;  %v6208_v21 = vld [vmem:[#allocation13 + $0x14] ss:$8 sps:$4 sm:$0xff]   ;;  %v6210_v3 = vld [vmem:[#allocation13 + $0x10] ss:$8 sps:$4 sm:$0xff]  }
 0x181   :  { %v6157_v24 = vpop.f32.mrf.mxu0 }
 0x182   :  { %492 = vadd.xlane.f32.xlu0 %v472_v55  ;;  %v477_v62 = vmul.f32 %v7317_v57, %v7317_v57  ;;  %v7374_v35 = vmax.f32 %v431_v26, 0.0  ;;  %v429_v37 = vadd.f32 %v7271_v60, %v406_v28  ;;  %v409_v55 = vmul.f32 %v6157_v24, %v7269_v58  ;;  %v533_v26 = vpop.xlane.xlu1 %532 }
 0x183   :  { %v375_v33 = vpop.f32.mrf.mxu0  ;;  %v7040_v24 = vmov 0  }
 0x184   :  { %502 = vadd.xlane.f32.xlu1 %v477_v62  ;;  %v407_v38 = vmul.f32 %v7269_v58, %v375_v33  ;;  %v482_v49 = vmul.f32 %v7374_v35, %v7374_v35  ;;  %v7382_v51 = vmax.f32 %v429_v37, 0.0  ;;  %v6196_v62 = vld [vmem:[#allocation13 + $0x54] ss:$8 sps:$4 sm:$0xff]   ;;  %917 = vmatprep.mubr.bf16.mxu1 %v7040_v24 }
 0x185   :  { %889 = vmatprep.subr.bf16.mxu1 %v6196_v62 }
 0x186   :  { %494 = vadd.xlane.f32.xlu0 %v473_v1  ;;  %v430_v61 = vadd.f32 %v7271_v60, %v407_v38  ;;  %v6198_v1 = vld [vmem:[#allocation13 + $0x50] ss:$8 sps:$4 sm:$0xff]   ;;  %v480_v7 = vmul.f32 %v7382_v51, %v7382_v51  ;;  %v535_v28 = vpop.xlane.xlu1 %534 }
 0x187   :  { %890 = vmatpush1.bf16.msra.mxu1 %v6198_v1  ;;  %v590_v37 = vadd.f32 %v535_v28, %v533_v26 }
 0x188   :  { %558 = vadd.xlane.f32.xlu1 %v529_v2  ;;  %v432_v2 = vadd.f32 %v7271_v60, %v409_v55  ;;  %v7387_v4 = vmax.f32 %v430_v61, 0.0 }
 0x18a   :  { %498 = vadd.xlane.f32.xlu0 %v475_v11  ;;  %v6199_v11 = vld [vmem:[#allocation13 + $0x44] ss:$8 sps:$4 sm:$0xff]   ;;  %v7391_v58 = vmax.f32 %v432_v2, 0.0  ;;  %v481_v13 = vmul.f32 %v7387_v4, %v7387_v4 }
 0x18b   :  { %891 = vmatprep.subr.bf16.mxu1 %v6199_v11 }
 0x18c   :  { %560 = vadd.xlane.f32.xlu1 %v530_v12  ;;  %v6201_v12 = vld [vmem:[#allocation13 + $0x40] ss:$8 sps:$4 sm:$0xff]   ;;  %v483_v60 = vmul.f32 %v7391_v58, %v7391_v58 }
 0x18d   :  { %892 = vmatpush1.bf16.msra.mxu1 %v6201_v12 }
 0x18e   :  { %548 = vadd.xlane.f32.xlu0 %v524_v29  ;;  %v6202_v29 = vld [vmem:[#allocation13 + $0x34] ss:$8 sps:$4 sm:$0xff]  }
 0x18f   :  { %893 = vmatprep.subr.bf16.mxu1 %v6202_v29 }
 0x190   :  { %562 = vadd.xlane.f32.xlu1 %v531_v20  ;;  %v6207_v20 = vld [vmem:[#allocation13 + $0x20] ss:$8 sps:$4 sm:$0xff]  }
 0x191   :  { %894 = vmatpush1.bf16.msra.mxu1 %v6204_v16 }
 0x192   :  { %504 = vadd.xlane.f32.xlu0 %v478_v40  ;;  %895 = vmatprep.subr.bf16.mxu1 %v6205_v17  ;;  %v6211_v40 = vld [vmem:[#allocation13 + $0x4] ss:$8 sps:$4 sm:$0xff]  }
 0x195   :  { %896 = vmatpush1.bf16.msra.mxu1 %v6207_v20 }
 0x196   :  { %500 = vadd.xlane.f32.xlu0 %v476_v31  ;;  %897 = vmatprep.subr.bf16.mxu1 %v6208_v21  ;;  %v537_v31 = vpop.xlane.xlu1 %536 }
 0x199   :  { %898 = vmatpush1.bf16.msra.mxu1 %v6210_v3 }
 0x19a   :  { %506 = vadd.xlane.f32.xlu0 %v479_v43  ;;  %899 = vmatprep.subr.bf16.mxu1 %v6211_v40  ;;  %v539_v32 = vpop.xlane.xlu1 %538  ;;  %v591_v43 = vadd.f32 %v590_v37, %v537_v31 }
 0x19c   :  { %v592_v45 = vadd.f32 %v591_v43, %v539_v32 }
 0x19d   :  { %900 = vmatpush1.bf16.msra.mxu1 %v6213_v23 }
 0x19e   :  { %512 = vadd.xlane.f32.xlu0 %v482_v49  ;;  %v541_v33 = vpop.xlane.xlu1 %540 }
 0x19f   :  { %v593_v49 = vadd.f32 %v592_v45, %v541_v33 }
 0x1a2   :  { %508 = vadd.xlane.f32.xlu0 %v480_v7  ;;  %v543_v34 = vpop.xlane.xlu1 %542 }
 0x1a3   :  { %v594_v62 = vadd.f32 %v593_v49, %v543_v34 }
 0x1a6   :  { %510 = vadd.xlane.f32.xlu0 %v481_v13  ;;  %v545_v38 = vpop.xlane.xlu1 %544 }
 0x1a7   :  { %v595_v7 = vadd.f32 %v594_v62, %v545_v38 }
 0x1aa   :  { %514 = vadd.xlane.f32.xlu0 %v483_v60  ;;  %v547_v47 = vpop.xlane.xlu1 %546 }
 0x1ab   :  { %v596_v12 = vadd.f32 %v595_v7, %v547_v47 }
 0x1ad   :  { %v597_v60 = vrot.slane %v596_v12, 4 }
 0x1ae   :  { %v551_v61 = vpop.xlane.xlu1 %550 }
 0x1af   :  { %v598_v3 = vadd.f32 %v597_v60, %v596_v12 }
 0x1b1   :  { %v599_v28 = vrot.slane %v598_v3, 2 }
 0x1b2   :  { %v553_v2 = vpop.xlane.xlu1 %552 }
 0x1b3   :  { %v600_v37 = vadd.f32 %v599_v28, %v598_v3 }
 0x1b5   :  { %v601_v49 = vrot.slane %v600_v37, 1 }
 0x1b6   :  { %v555_v29 = vpop.xlane.xlu1 %554 }
 0x1b7   :  { %v602_v12 = vadd.f32 %v601_v49, %v600_v37 }
 0x1b9   :  { %6214 = vrsqrt.f32 %v602_v12 }
 0x1ba   :  { %v557_v21 = vpop.xlane.xlu1 %556 }
 0x1c6   :  { %v7398_v49 = vpop.eup %6214 }
 0x1c7   :  { %v701_v12 = vmul.f32 %v7398_v49, %v7191_v10 }
 0x1f7   :  { %v489_v55 = vpop.xlane.xlu0 %488 }
 0x1fb   :  { %v485_v1 = vpop.xlane.xlu0 %484 }
 0x1ff   :  { %v491_v11 = vpop.xlane.xlu0 %490 }
 0x203   :  { %v487_v13 = vpop.xlane.xlu0 %486 }
 0x204   :  { %v564_v16 = vadd.f32 %v487_v13, %v485_v1 }
 0x206   :  { %v565_v20 = vadd.f32 %v564_v16, %v489_v55 }
 0x207   :  { %v497_v17 = vpop.xlane.xlu0 %496 }
 0x208   :  { %v566_v23 = vadd.f32 %v565_v20, %v491_v11 }
 0x20b   :  { %v493_v40 = vpop.xlane.xlu0 %492 }
 0x20c   :  { %v567_v26 = vadd.f32 %v566_v23, %v493_v40 }
 0x20d   :  { %v503_v32 = vpop.xlane.xlu1 %502 }
 0x20f   :  { %v495_v31 = vpop.xlane.xlu0 %494 }
 0x210   :  { %v568_v33 = vadd.f32 %v567_v26, %v495_v31 }
 0x211   :  { %v559_v45 = vpop.xlane.xlu1 %558 }
 0x212   :  { %v569_v34 = vadd.f32 %v568_v33, %v497_v17 }
 0x213   :  { %v499_v38 = vpop.xlane.xlu0 %498 }
 0x214   :  { %v570_v43 = vadd.f32 %v569_v34, %v499_v38 }
 0x215   :  { %v561_v11 = vpop.xlane.xlu1 %560 }
 0x216   :  { %v571_v47 = vrot.slane %v570_v43, 4 }
 0x217   :  { %v549_v62 = vpop.xlane.xlu0 %548 }
 0x218   :  { %v572_v1 = vadd.f32 %v571_v47, %v570_v43  ;;  %v603_v7 = vadd.f32 %v551_v61, %v549_v62 }
 0x219   :  { %v563_v28 = vpop.xlane.xlu1 %562 }
 0x21a   :  { %v573_v55 = vrot.slane %v572_v1, 2  ;;  %v604_v13 = vadd.f32 %v603_v7, %v553_v2 }
 0x21b   :  { %v505_v16 = vpop.xlane.xlu0 %504 }
 0x21c   :  { %v574_v60 = vadd.f32 %v573_v55, %v572_v1  ;;  %v605_v20 = vadd.f32 %v604_v13, %v555_v29 }
 0x21e   :  { %v575_v40 = vrot.slane %v574_v60, 1  ;;  %v606_v23 = vadd.f32 %v605_v20, %v557_v21 }
 0x21f   :  { %v501_v17 = vpop.xlane.xlu0 %500 }
 0x220   :  { %v576_v3 = vadd.f32 %v575_v40, %v574_v60  ;;  %v607_v26 = vadd.f32 %v606_v23, %v559_v45  ;;  %v577_v34 = vadd.f32 %v503_v32, %v501_v17  ;;  %v702_v45 = vmul.f32 %v7398_v49, %v7187_v9 }
 0x221   :  { %v703_v9 = vmul.f32 %v7398_v49, %v7199_v15 }
 0x222   :  { %6216 = vrsqrt.f32 %v576_v3  ;;  %v608_v31 = vadd.f32 %v607_v26, %v561_v11  ;;  %v578_v2 = vadd.f32 %v577_v34, %v505_v16 }
 0x223   :  { %v507_v33 = vpop.xlane.xlu0 %506 }
 0x224   :  { %v609_v38 = vadd.f32 %v608_v31, %v563_v28  ;;  %v579_v29 = vadd.f32 %v578_v2, %v507_v33  ;;  %v1149_v31 = vld [vmem:[#allocation17 + $0x1e0] sm:$0xff]  ;;  %v1636_v33 = vld [vmem:[#allocation17 + $0x1c8] sm:$0xff] }
 0x226   :  { %v610_v61 = vrot.slane %v609_v38, 4 }
 0x227   :  { %v513_v43 = vpop.xlane.xlu0 %512 }
 0x228   :  { %v611_v37 = vadd.f32 %v610_v61, %v609_v38  ;;  %v1637_v61 = vld [vmem:[#allocation17 + $0x1e8] sm:$0xff] }
 0x22a   :  { %v612_v1 = vrot.slane %v611_v37, 2 }
 0x22b   :  { %v509_v47 = vpop.xlane.xlu0 %508 }
 0x22c   :  { %v580_v62 = vadd.f32 %v579_v29, %v509_v47  ;;  %v613_v23 = vadd.f32 %v612_v1, %v611_v37  ;;  %v5705_v37 = vcombine.low %v1636_v33, %v1637_v61  ;;  %v706_v1 = vmul.f32 %v7398_v49, %v7229_v44 }
 0x22e   :  { %v614_v34 = vrot.slane %v613_v23, 1 }
 0x22f   :  { %v6217_v21 = vpop.eup %6216  ;;  %v511_v7 = vpop.xlane.xlu0 %510 }
 0x230   :  { %v581_v55 = vadd.f32 %v580_v62, %v511_v7  ;;  %v686_v13 = vmul.f32 %v6217_v21, %v7293_v25  ;;  %v685_v32 = vmul.f32 %v6217_v21, %v7280_v8  ;;  %v687_v16 = vmul.f32 %v6217_v21, %v7278_v6 }
 0x231   :  { %v689_v40 = vmul.f32 %v6217_v21, %v7306_v41  ;;  %v705_v25 = vmul.f32 %v7398_v49, %v7223_v42  ;;  %v688_v10 = vmul.f32 %v6217_v21, %v7287_v18  ;;  %v704_v6 = vmul.f32 %v7398_v49, %v7205_v19  ;;  %v1148_v42 = vld [vmem:[#allocation17 + $0x1c0] sm:$0xff] }
 0x232   :  { %v582_v11 = vadd.f32 %v581_v55, %v513_v43  ;;  %v718_v60 = vadd.f32 %v702_v45, %v686_v13  ;;  %v717_v20 = vadd.f32 %v701_v12, %v685_v32  ;;  %v719_v26 = vadd.f32 %v703_v9, %v687_v16  ;;  %v1632_v9 = vld [vmem:[#allocation17 + $0x148] sm:$0xff] }
 0x233   :  { %v515_v17 = vpop.xlane.xlu0 %514  ;;  %v721_v28 = vadd.f32 %v705_v25, %v689_v40  ;;  %v691_v15 = vmul.f32 %v6217_v21, %v7298_v30  ;;  %v720_v18 = vadd.f32 %v704_v6, %v688_v10  ;;  %v707_v19 = vmul.f32 %v7398_v49, %v7235_v46  ;;  %v1635_v40 = vld [vmem:[#allocation17 + $0x1a8] sm:$0xff] }
 0x234   :  { %v583_v3 = vadd.f32 %v582_v11, %v515_v17  ;;  %735 = vrot.lane.b32.xlu1 %v718_v60, %s7025_s30  ;;  %v781_v8 = vpack.c.bf16 %v718_v60, %v717_v20  ;;  %733 = vrot.lane.b32.xlu0 %v717_v20, %s7025_s30  ;;  %v5673_v43 = vcombine.low %v1148_v42, %v1149_v31  ;;  %v1146_v11 = vld [vmem:[#allocation17 + $0x180] sm:$0xff]  ;;  %v1633_v10 = vld [vmem:[#allocation17 + $0x168] sm:$0xff] }
 0x235   :  { %v5674_v2 = vcombine.high %v1148_v42, %v1149_v31  ;;  %v5706_v30 = vcombine.high %v1636_v33, %v1637_v61  ;;  %v723_v29 = vadd.f32 %v707_v19, %v691_v15  ;;  %v690_v62 = vmul.f32 %v6217_v21, %v7313_v53  ;;  %v1147_v60 = vld [vmem:[#allocation17 + $0x1a0] sm:$0xff] }
 0x236   :  { %v584_v41 = vrot.slane %v583_v3, 4  ;;  %918 = vmatmul.mubr.bf16.vlgmr.msra.gmra.mxu1 %v781_v8  ;;  %v615_v7 = vadd.f32 %v614_v34, %v613_v23  ;;  %v782_v55 = vpack.c.bf16 %v720_v18, %v719_v26  ;;  %v692_v32 = vmul.f32 %v6217_v21, %v7327_v63  ;;  %v1634_v63 = vld [vmem:[#allocation17 + $0x188] sm:$0xff]  ;;  %v1142_v61 = vld [vmem:[#allocation17 + $0x100] sm:$0xff] }
 0x237   :  { %927 = vmatprep.mubr.bf16.mxu1 %v7040_v24  ;;  %1326 = vmatprep.subr.bf16.mxu0 %v5674_v2  ;;  %v722_v13 = vadd.f32 %v706_v1, %v690_v62  ;;  %v708_v53 = vmul.f32 %v7398_v49, %v7241_v48  ;;  %v5671_v21 = vcombine.low %v1146_v11, %v1147_v60  ;;  %v1144_v48 = vld [vmem:[#allocation17 + $0x140] sm:$0xff]  ;;  %v1630_v2 = vld [vmem:[#allocation17 + $0x108] sm:$0xff] }
 0x238   :  { %v585_v38 = vadd.f32 %v584_v41, %v583_v3  ;;  %737 = vrot.lane.b32.xlu1 %v719_v26, %s7025_s30  ;;  %741 = vrot.lane.b32.xlu0 %v721_v28, %s7025_s30  ;;  %6218 = vrsqrt.f32 %v615_v7  ;;  %v5672_v20 = vcombine.high %v1146_v11, %v1147_v60  ;;  %v5703_v23 = vcombine.low %v1634_v63, %v1635_v40  ;;  %v1145_v49 = vld [vmem:[#allocation17 + $0x160] sm:$0xff] }
 0x239   :  { %1814 = vmatprep.subr.bf16.mxu1 %v5706_v30  ;;  %1327 = vmatpush1.bf16.msra.mxu0 %v5673_v43  ;;  %v724_v12 = vadd.f32 %v708_v53, %v692_v32  ;;  %v783_v16 = vpack.c.bf16 %v722_v13, %v721_v28  ;;  %v5704_v17 = vcombine.high %v1634_v63, %v1635_v40  ;;  %v1143_v43 = vld [vmem:[#allocation17 + $0x120] sm:$0xff]  ;;  %v1626_v63 = vld [vmem:[#allocation17 + $0x88] sm:$0xff] }
 0x23a   :  { %v586_v47 = vrot.slane %v585_v38, 2  ;;  %1815 = vmatpush1.bf16.msra.mxu1 %v5705_v37  ;;  %1328 = vmatprep.subr.bf16.mxu0 %v5672_v20  ;;  %v5669_v3 = vcombine.low %v1144_v48, %v1145_v49  ;;  %v5670_v8 = vcombine.high %v1144_v48, %v1145_v49  ;;  %v5701_v41 = vcombine.low %v1632_v9, %v1633_v10  ;;  %v1140_v37 = vld [vmem:[#allocation17 + $0xc0] sm:$0xff]  ;;  %v1624_v48 = vld [vmem:[#allocation17 + $0x48] sm:$0xff] }
 0x23b   :  { %1816 = vmatprep.subr.bf16.mxu1 %v5704_v17  ;;  %v784_v25 = vpack.c.bf16 %v724_v12, %v723_v29  ;;  %v5702_v26 = vcombine.high %v1632_v9, %v1633_v10  ;;  %v5667_v1 = vcombine.low %v1142_v61, %v1143_v43  ;;  %v1138_v32 = vld [vmem:[#allocation17 + $0x80] sm:$0xff]  ;;  %v1625_v49 = vld [vmem:[#allocation17 + $0x68] sm:$0xff] }
 0x23c   :  { %v587_v45 = vadd.f32 %v586_v47, %v585_v38  ;;  %739 = vrot.lane.b32.xlu1 %v720_v18, %s7025_s30  ;;  %745 = vrot.lane.b32.xlu0 %v723_v29, %s7025_s30  ;;  %v1629_v47 = vld [vmem:[#allocation17 + $0xe8] sm:$0xff]  ;;  %v1137_v40 = vld [vmem:[#allocation17 + $0x60] sm:$0xff] }
 0x23d   :  { %1329 = vmatpush1.bf16.msra.mxu0 %v5671_v21  ;;  %v1627_v21 = vld [vmem:[#allocation17 + $0xa8] sm:$0xff]  ;;  %v1134_v10 = vld [vmem:[#allocation17] sm:$0xff] }
 0x23e   :  { %v588_v46 = vrot.slane %v587_v45, 1  ;;  %928 = vmatmul.mubr.bf16.gmra.mxu1 %v782_v55  ;;  %1330 = vmatprep.subr.bf16.mxu0 %v5670_v8  ;;  %v5696_v17 = vcombine.high %v1626_v63, %v1627_v21  ;;  %v5695_v8 = vcombine.low %v1626_v63, %v1627_v21  ;;  %v1645_v63 = vld [vmem:[#allocation17 + $0x2e8] sm:$0xff] }
 0x23f   :  { %937 = vmatprep.mubr.bf16.mxu1 %v7040_v24  ;;  %1817 = vmatpush1.bf16.msra.mxu1 %v5703_v23 }
 0x240   :  { %v589_v44 = vadd.f32 %v588_v46, %v587_v45  ;;  %743 = vrot.lane.b32.xlu1 %v722_v13, %s7025_s30  ;;  %1818 = vmatprep.subr.bf16.mxu1 %v5702_v26  ;;  %v1623_v26 = vld [vmem:[#allocation17 + $0x28] sm:$0xff] }
 0x241   :  { %1331 = vmatpush1.bf16.msra.mxu0 %v5669_v3 }
 0x242   :  { %6220 = vrsqrt.f32 %v589_v44 }
 0x243   :  { %1819 = vmatpush1.bf16.msra.mxu1 %v5701_v41  ;;  %v1135_v41 = vld [vmem:[#allocation17 + $0x20] sm:$0xff] }
 0x244   :  { %747 = vrot.lane.b32.xlu1 %v724_v12, %s7025_s30 }
 0x245   :  { %v7435_v6 = vpop.eup %6218 }
 0x246   :  { %938 = vmatmul.mubr.bf16.gmra.mxu1 %v783_v16  ;;  %v710_v42 = vmul.f32 %v7435_v6, %v7247_v50  ;;  %v709_v33 = vmul.f32 %v7435_v6, %v7342_v5  ;;  %v1631_v50 = vld [vmem:[#allocation17 + $0x128] sm:$0xff] }
 0x247   :  { %947 = vmatprep.mubr.bf16.mxu1 %v7040_v24  ;;  %v5699_v45 = vcombine.low %v1630_v2, %v1631_v50  ;;  %v5700_v55 = vcombine.high %v1630_v2, %v1631_v50  ;;  %v1162_v2 = vld [vmem:[#allocation17 + $0x380] sm:$0xff] }
 0x249   :  { %1820 = vmatprep.subr.bf16.mxu1 %v5700_v55  ;;  %v1158_v55 = vld [vmem:[#allocation17 + $0x300] sm:$0xff] }
 0x24a   :  { %1821 = vmatpush1.bf16.msra.mxu1 %v5699_v45 }
 0x24e   :  { %948 = vmatmul.mubr.bf16.gmra.mxu1 %v784_v25 }
 0x24f   :  { %v6221_v28 = vpop.eup %6220  ;;  %957 = vmatprep.mubr.bf16.mxu1 %v7040_v24 }
 0x250   :  { %v694_v15 = vmul.f32 %v6221_v28, %v7317_v57  ;;  %v693_v31 = vmul.f32 %v6221_v28, %v7365_v22  ;;  %v696_v34 = vmul.f32 %v6221_v28, %v7369_v27  ;;  %v695_v19 = vmul.f32 %v6221_v28, %v7354_v14  ;;  %v1141_v22 = vld [vmem:[#allocation17 + $0xe0] sm:$0xff]  ;;  %v1628_v14 = vld [vmem:[#allocation17 + $0xc8] sm:$0xff] }
 0x251   :  { %v712_v57 = vmul.f32 %v7435_v6, %v7259_v54  ;;  %v711_v27 = vmul.f32 %v7435_v6, %v7253_v52  ;;  %v698_v30 = vmul.f32 %v6221_v28, %v7387_v4  ;;  %v697_v62 = vmul.f32 %v6221_v28, %v7382_v51  ;;  %v1139_v52 = vld [vmem:[#allocation17 + $0xa0] sm:$0xff] }
 0x252   :  { %v726_v38 = vadd.f32 %v710_v42, %v694_v15  ;;  %v725_v18 = vadd.f32 %v709_v33, %v693_v31  ;;  %v5668_v54 = vcombine.high %v1142_v61, %v1143_v43  ;;  %v5666_v46 = vcombine.high %v1140_v37, %v1141_v22  ;;  %v1164_v42 = vld [vmem:[#allocation17 + $0x3c0] sm:$0xff] }
 0x253   :  { %v728_v29 = vadd.f32 %v712_v57, %v696_v34  ;;  %v727_v7 = vadd.f32 %v711_v27, %v695_v19  ;;  %v5698_v13 = vcombine.high %v1628_v14, %v1629_v47  ;;  %v714_v51 = vmul.f32 %v7435_v6, %v7322_v59  ;;  %v1136_v59 = vld [vmem:[#allocation17 + $0x40] sm:$0xff]  ;;  %v1653_v19 = vld [vmem:[#allocation17 + $0x3e8] sm:$0xff] }
 0x254   :  { %751 = vrot.lane.b32.xlu1 %v726_v38, %s7025_s30  ;;  %749 = vrot.lane.b32.xlu0 %v725_v18, %s7025_s30  ;;  %v785_v5 = vpack.c.bf16 %v726_v38, %v725_v18  ;;  %v713_v4 = vmul.f32 %v7435_v6, %v7265_v56  ;;  %v700_v44 = vmul.f32 %v6221_v28, %v7391_v58  ;;  %v1165_v31 = vld [vmem:[#allocation17 + $0x3e0] sm:$0xff]  ;;  %v1652_v18 = vld [vmem:[#allocation17 + $0x3c8] sm:$0xff] }
 0x255   :  { %1332 = vmatprep.subr.bf16.mxu0 %v5668_v54  ;;  %v699_v53 = vmul.f32 %v6221_v28, %v7374_v35  ;;  %v5665_v12 = vcombine.low %v1140_v37, %v1141_v22  ;;  %v730_v16 = vadd.f32 %v714_v51, %v698_v30  ;;  %v5664_v60 = vcombine.high %v1138_v32, %v1139_v52  ;;  %v1163_v57 = vld [vmem:[#allocation17 + $0x3a0] sm:$0xff]  ;;  %v1650_v22 = vld [vmem:[#allocation17 + $0x388] sm:$0xff] }
 0x256   :  { %958 = vmatmul.mubr.bf16.gmra.mxu1 %v785_v5  ;;  %1333 = vmatpush1.bf16.msra.mxu0 %v5667_v1  ;;  %v729_v11 = vadd.f32 %v713_v4, %v697_v62  ;;  %v5697_v20 = vcombine.low %v1628_v14, %v1629_v47  ;;  %v786_v23 = vpack.c.bf16 %v728_v29, %v727_v7  ;;  %v1651_v5 = vld [vmem:[#allocation17 + $0x3a8] sm:$0xff]  ;;  %v1160_v14 = vld [vmem:[#allocation17 + $0x340] sm:$0xff] }
 0x257   :  { %967 = vmatprep.mubr.bf16.mxu1 %v7040_v24  ;;  %1334 = vmatprep.subr.bf16.mxu0 %v5666_v46  ;;  %v716_v56 = vmul.f32 %v7435_v6, %v7352_v39  ;;  %v715_v35 = vmul.f32 %v7435_v6, %v7336_v36  ;;  %v5663_v58 = vcombine.low %v1138_v32, %v1139_v52  ;;  %v1622_v6 = vld [vmem:[#allocation17 + $0x8] sm:$0xff]  ;;  %v1161_v47 = vld [vmem:[#allocation17 + $0x360] sm:$0xff] }
 0x258   :  { %755 = vrot.lane.b32.xlu1 %v728_v29, %s7025_s30  ;;  %753 = vrot.lane.b32.xlu0 %v727_v7, %s7025_s30  ;;  %v5662_v3 = vcombine.high %v1136_v59, %v1137_v40  ;;  %v5694_v36 = vcombine.high %v1624_v48, %v1625_v49  ;;  %v5661_v39 = vcombine.low %v1136_v59, %v1137_v40  ;;  %v1648_v1 = vld [vmem:[#allocation17 + $0x348] sm:$0xff]  ;;  %v1159_v46 = vld [vmem:[#allocation17 + $0x320] sm:$0xff] }
 0x259   :  { %1822 = vmatprep.subr.bf16.mxu1 %v5698_v13  ;;  %v732_v9 = vadd.f32 %v716_v56, %v700_v44  ;;  %v731_v25 = vadd.f32 %v715_v35, %v699_v53  ;;  %v5660_v28 = vcombine.high %v1134_v10, %v1135_v41  ;;  %v5693_v15 = vcombine.low %v1624_v48, %v1625_v49  ;;  %v1649_v54 = vld [vmem:[#allocation17 + $0x368] sm:$0xff]  ;;  %v1156_v53 = vld [vmem:[#allocation17 + $0x2c0] sm:$0xff] }
 0x25a   :  { %1335 = vmatpush1.bf16.msra.mxu0 %v5665_v12  ;;  %1823 = vmatpush1.bf16.msra.mxu1 %v5697_v20  ;;  %v787_v33 = vpack.c.bf16 %v730_v16, %v729_v11  ;;  %v5692_v34 = vcombine.high %v1622_v6, %v1623_v26  ;;  %v5659_v38 = vcombine.low %v1134_v10, %v1135_v41  ;;  %v1646_v52 = vld [vmem:[#allocation17 + $0x308] sm:$0xff]  ;;  %v1157_v12 = vld [vmem:[#allocation17 + $0x2e0] sm:$0xff] }
 0x25b   :  { %1336 = vmatprep.subr.bf16.mxu0 %v5664_v60  ;;  %1824 = vmatprep.subr.bf16.mxu1 %v5696_v17  ;;  %v5690_v61 = vcombine.high %v1164_v42, %v1165_v31  ;;  %v5691_v43 = vcombine.low %v1622_v6, %v1623_v26  ;;  %v5722_v50 = vcombine.high %v1652_v18, %v1653_v19  ;;  %v1647_v51 = vld [vmem:[#allocation17 + $0x328] sm:$0xff]  ;;  %v1154_v56 = vld [vmem:[#allocation17 + $0x280] sm:$0xff] }
 0x25c   :  { %759 = vrot.lane.b32.xlu1 %v730_v16, %s7025_s30  ;;  %757 = vrot.lane.b32.xlu0 %v729_v11, %s7025_s30  ;;  %v5689_v37 = vcombine.low %v1164_v42, %v1165_v31  ;;  %v5688_v27 = vcombine.high %v1162_v2, %v1163_v57  ;;  %v5721_v30 = vcombine.low %v1652_v18, %v1653_v19  ;;  %v1644_v60 = vld [vmem:[#allocation17 + $0x2c8] sm:$0xff]  ;;  %v1155_v35 = vld [vmem:[#allocation17 + $0x2a0] sm:$0xff]  ;;  %v7473_v19 = vld [vmem:[#allocation17 + $0x1d0] sm:$0xff] }
 0x25d   :  { %v788_v29 = vpack.c.bf16 %v732_v9, %v731_v25  ;;  %v5720_v62 = vcombine.high %v1650_v22, %v1651_v5  ;;  %v5686_v7 = vcombine.high %v1160_v14, %v1161_v47  ;;  %v5719_v45 = vcombine.low %v1650_v22, %v1651_v5  ;;  %v1643_v49 = vld [vmem:[#allocation17 + $0x2a8] sm:$0xff] }
 0x25e   :  { %968 = vmatmul.mubr.bf16.gmra.mxu1 %v786_v23  ;;  %1337 = vmatpush1.bf16.msra.mxu0 %v5663_v58  ;;  %v5718_v13 = vcombine.high %v1648_v1, %v1649_v54  ;;  %v5685_v32 = vcombine.low %v1160_v14, %v1161_v47  ;;  %v5684_v4 = vcombine.high %v1158_v55, %v1159_v46  ;;  %v1642_v58 = vld [vmem:[#allocation17 + $0x288] sm:$0xff] }
 0x25f   :  { %977 = vmatprep.mubr.bf16.mxu1 %v7040_v24  ;;  %1338 = vmatprep.subr.bf16.mxu0 %v5662_v3  ;;  %v5717_v44 = vcombine.low %v1648_v1, %v1649_v54  ;;  %v5716_v16 = vcombine.high %v1646_v52, %v1647_v51  ;;  %v5683_v11 = vcombine.low %v1158_v55, %v1159_v46  ;;  %v1152_v3 = vld [vmem:[#allocation17 + $0x240] sm:$0xff]  ;;  %v1640_v10 = vld [vmem:[#allocation17 + $0x248] sm:$0xff] }
 0x260   :  { %763 = vrot.lane.b32.xlu1 %v732_v9, %s7025_s30  ;;  %761 = vrot.lane.b32.xlu0 %v731_v25, %s7025_s30  ;;  %v5682_v21 = vcombine.high %v1156_v53, %v1157_v12  ;;  %v5715_v20 = vcombine.low %v1646_v52, %v1647_v51  ;;  %v5714_v59 = vcombine.high %v1644_v60, %v1645_v63  ;;  %v1638_v42 = vld [vmem:[#allocation17 + $0x208] sm:$0xff]  ;;  %v7490_v52 = vshrl.u32 %v449_v0, 7 }
 0x261   :  { %1825 = vmatpush1.bf16.msra.mxu1 %v5695_v8  ;;  %v5681_v40 = vcombine.low %v1156_v53, %v1157_v12  ;;  %v5713_v23 = vcombine.low %v1644_v60, %v1645_v63  ;;  %v5679_v17 = vcombine.low %v1154_v56, %v1155_v35  ;;  %v5680_v48 = vcombine.high %v1154_v56, %v1155_v35  ;;  %v1153_v8 = vld [vmem:[#allocation17 + $0x260] sm:$0xff] }
 0x262   :  { %1826 = vmatprep.subr.bf16.mxu1 %v5694_v36  ;;  %1339 = vmatpush1.bf16.msra.mxu0 %v5661_v39  ;;  %v5712_v9 = vcombine.high %v1642_v58, %v1643_v49  ;;  %v5711_v25 = vcombine.low %v1642_v58, %v1643_v49  ;;  %v5678_v41 = vcombine.high %v1152_v3, %v1153_v8  ;;  %v1641_v36 = vld [vmem:[#allocation17 + $0x268] sm:$0xff]  ;;  %v7493_v51 = vsub.s32 1, %v7490_v52 }
 0x263   :  { %1340 = vmatprep.subr.bf16.mxu0 %v5660_v28  ;;  %v5677_v39 = vcombine.low %v1152_v3, %v1153_v8  ;;  %v5710_v6 = vcombine.high %v1640_v10, %v1641_v36  ;;  %v5709_v26 = vcombine.low %v1640_v10, %v1641_v36  ;;  %v1150_v28 = vld [vmem:[#allocation17 + $0x200] sm:$0xff]  ;;  %v2119_v8 = vld [vmem:[#allocation17 + $0x190] sm:$0xff] }
 0x265   :  { %1827 = vmatpush1.bf16.msra.mxu1 %v5693_v15  ;;  %v1151_v15 = vld [vmem:[#allocation17 + $0x220] sm:$0xff] }
 0x266   :  { %978 = vmatmul.mubr.bf16.gmra.mxu1 %v787_v33  ;;  %1828 = vmatprep.subr.bf16.mxu1 %v5692_v34  ;;  %v5675_v31 = vcombine.low %v1150_v28, %v1151_v15  ;;  %v5676_v33 = vcombine.high %v1150_v28, %v1151_v15  ;;  %v1639_v34 = vld [vmem:[#allocation17 + $0x228] sm:$0xff] }
 0x267   :  { %987 = vmatprep.mubr.bf16.mxu1 %v7040_v24  ;;  %1341 = vmatpush1.bf16.msra.mxu0 %v5659_v38  ;;  %v5687_v24 = vcombine.low %v1162_v2, %v1163_v57  ;;  %v5708_v38 = vcombine.high %v1638_v42, %v1639_v34  ;;  %v5707_v18 = vcombine.low %v1638_v42, %v1639_v34  ;;  %v7481_v57 = vld [vmem:[#allocation17 + $0x1f8] sm:$0xff] }
 0x268   :  { %1342 = vmatprep.subr.bf16.mxu0 %v5690_v61  ;;  %v7475_v61 = vld [vmem:[#allocation17 + $0x1f0] sm:$0xff] }
 0x269   :  { %1829 = vmatpush1.bf16.msra.mxu1 %v5691_v43  ;;  %v7477_v43 = vld [vmem:[#allocation17 + $0x1d8] sm:$0xff]  ;;  %v5738_v2 = vcombine.high %v7473_v19, %v7475_v61 }
 0x26a   :  { %1830 = vmatprep.subr.bf16.mxu1 %v5722_v50  ;;  %v5737_v50 = vcombine.low %v7473_v19, %v7475_v61  ;;  %v5770_v22 = vcombine.high %v7477_v43, %v7481_v57  ;;  %v2600_v19 = vld [vmem:[#allocation17 + $0x118] sm:$0xff] }
 0x26b   :  { %1343 = vmatpush2.bf16.msra.mxu0 %v5689_v37  ;;  %v5769_v37 = vcombine.low %v7477_v43, %v7481_v57  ;;  %v2601_v61 = vld [vmem:[#allocation17 + $0x138] sm:$0xff] }
 0x26c   :  { %1344 = vmatprep.subr.bf16.mxu0 %v5688_v27 }
 0x26d   :  { %1831 = vmatpush2.bf16.msra.mxu1 %v5721_v30 }
 0x26e   :  { %988 = vmatmul.mubr.bf16.gmra.mxu1 %v788_v29  ;;  %1832 = vmatprep.subr.bf16.mxu1 %v5720_v62 }
 0x26f   :  { %1345 = vmatpush2.bf16.msra.mxu0 %v5687_v24 }
 0x270   :  { %1346 = vmatprep.subr.bf16.mxu0 %v5686_v7 }
 0x271   :  { %1833 = vmatpush2.bf16.msra.mxu1 %v5719_v45 }
 0x272   :  { %1834 = vmatprep.subr.bf16.mxu1 %v5718_v13 }
 0x273   :  { %1347 = vmatpush2.bf16.msra.mxu0 %v5685_v32 }
 0x274   :  { %1348 = vmatprep.subr.bf16.mxu0 %v5684_v4  ;;  %v7496_v4 = vsub.s32 0, %v7490_v52 }
 0x275   :  { %1835 = vmatpush2.bf16.msra.mxu1 %v5717_v44  ;;  %v998_v44 = vld [vmem:[#allocation14] sm:$0x3] }
 0x276   :  { %1836 = vmatprep.subr.bf16.mxu1 %v5716_v16  ;;  %v7499_v53 = vrot.slane %v998_v44, %v7493_v51  ;;  %v7502_v16 = vrot.slane %v998_v44, %v7496_v4 }
 0x277   :  { %1349 = vmatpush2.bf16.msra.mxu0 %v5683_v11  ;;  %v1042_v11 = vld [vmem:[#allocation16] sm:$0x3] }
 0x278   :  { %1350 = vmatprep.subr.bf16.mxu0 %v5682_v21  ;;  %v7506_v21 = vrot.slane %v1042_v11, %v7493_v51 }
 0x279   :  { %1837 = vmatpush2.bf16.msra.mxu1 %v5715_v20 }
 0x27a   :  { %1838 = vmatprep.subr.bf16.mxu1 %v5714_v59  ;;  %v7510_v59 = vrot.slane %v1042_v11, %v7496_v4 }
 0x27b   :  { %1351 = vmatpush2.bf16.msra.mxu0 %v5681_v40 }
 0x27c   :  { %1352 = vmatprep.subr.bf16.mxu0 %v5680_v48 }
 0x27d   :  { %1839 = vmatpush2.bf16.msra.mxu1 %v5713_v23 }
 0x27e   :  { %1840 = vmatprep.subr.bf16.mxu1 %v5712_v9 }
 0x27f   :  { %1353 = vmatpush2.bf16.msra.mxu0 %v5679_v17 }
 0x280   :  { %1354 = vmatprep.subr.bf16.mxu0 %v5678_v41 }
 0x281   :  { %1841 = vmatpush2.bf16.msra.mxu1 %v5711_v25 }
 0x282   :  { %1842 = vmatprep.subr.bf16.mxu1 %v5710_v6  ;;  %v2604_v6 = vld [vmem:[#allocation17 + $0x198] sm:$0xff] }
 0x283   :  { %1355 = vmatpush2.bf16.msra.mxu0 %v5677_v39  ;;  %v2120_v39 = vld [vmem:[#allocation17 + $0x1b0] sm:$0xff] }
 0x284   :  { %1356 = vmatprep.subr.bf16.mxu0 %v5676_v33 }
 0x285   :  { %1843 = vmatpush2.bf16.msra.mxu1 %v5709_v26  ;;  %v2605_v26 = vld [vmem:[#allocation17 + $0x1b8] sm:$0xff] }
 0x286   :  { %1844 = vmatprep.subr.bf16.mxu1 %v5708_v38 }
 0x287   :  { %1357 = vmatpush2.bf16.msra.mxu0 %v5675_v31 }
 0x288   :  { %2299 = vmatprep.subr.bf16.mxu0 %v5738_v2  ;;  %v5768_v2 = vcombine.high %v2604_v6, %v2605_v26 }
 0x289   :  { %1845 = vmatpush2.bf16.msra.mxu1 %v5707_v18  ;;  %v5736_v18 = vcombine.high %v2119_v8, %v2120_v39 }
 0x28a   :  { %2784 = vmatprep.subr.bf16.mxu1 %v5770_v22  ;;  %v2117_v22 = vld [vmem:[#allocation17 + $0x150] sm:$0xff] }
 0x2a6   :  { %v736_v5 = vpop.permute.xlu1 %735  ;;  %v734_v27 = vpop.permute.xlu0 %733 }
 0x2a7   :  { %766 = vst [vmem:[#allocation25 + $0x8] sm:$0xff] %v736_v5  ;;  %765 = vst [vmem:[#allocation25] sm:$0xff] %v734_v27 }
 0x2aa   :  { %v738_v30 = vpop.permute.xlu1 %737  ;;  %v742_v14 = vpop.permute.xlu0 %741 }
 0x2ab   :  { %767 = vst [vmem:[#allocation25 + $0x10] sm:$0xff] %v738_v30  ;;  %769 = vst [vmem:[#allocation25 + $0x20] sm:$0xff] %v742_v14  ;;  %v2118_v14 = vld [vmem:[#allocation17 + $0x170] sm:$0xff] }
 0x2ae   :  { %v740_v47 = vpop.permute.xlu1 %739  ;;  %v746_v29 = vpop.permute.xlu0 %745 }
 0x2af   :  { %768 = vst [vmem:[#allocation25 + $0x18] sm:$0xff] %v740_v47  ;;  %771 = vst [vmem:[#allocation25 + $0x30] sm:$0xff] %v746_v29  ;;  %v2602_v47 = vld [vmem:[#allocation17 + $0x158] sm:$0xff] }
 0x2b0   :  { %v2603_v29 = vld [vmem:[#allocation17 + $0x178] sm:$0xff] }
 0x2b2   :  { %v744_v62 = vpop.permute.xlu1 %743 }
 0x2b3   :  { %770 = vst [vmem:[#allocation25 + $0x28] sm:$0xff] %v744_v62 }
 0x2b6   :  { %v748_v24 = vpop.permute.xlu1 %747 }
 0x2b7   :  { %772 = vst [vmem:[#allocation25 + $0x38] sm:$0xff] %v748_v24 }
 0x2c6   :  { %v752_v1 = vpop.permute.xlu1 %751  ;;  %v750_v54 = vpop.permute.xlu0 %749 }
 0x2c7   :  { %774 = vst [vmem:[#allocation25 + $0x48] sm:$0xff] %v752_v1  ;;  %773 = vst [vmem:[#allocation25 + $0x40] sm:$0xff] %v750_v54  ;;  %v5735_v54 = vcombine.low %v2119_v8, %v2120_v39  ;;  %v2599_v8 = vld [vmem:[#allocation17 + $0xf8] sm:$0xff] }
 0x2ca   :  { %v756_v7 = vpop.permute.xlu1 %755  ;;  %v754_v45 = vpop.permute.xlu0 %753 }
 0x2cb   :  { %776 = vst [vmem:[#allocation25 + $0x58] sm:$0xff] %v756_v7  ;;  %775 = vst [vmem:[#allocation25 + $0x50] sm:$0xff] %v754_v45  ;;  %v5767_v7 = vcombine.low %v2604_v6, %v2605_v26  ;;  %v5763_v6 = vcombine.low %v2600_v19, %v2601_v61 }
 0x2ce   :  { %v760_v55 = vpop.permute.xlu1 %759  ;;  %v758_v46 = vpop.permute.xlu0 %757 }
 0x2cf   :  { %778 = vst [vmem:[#allocation25 + $0x68] sm:$0xff] %v760_v55  ;;  %777 = vst [vmem:[#allocation25 + $0x60] sm:$0xff] %v758_v46  ;;  %v5734_v46 = vcombine.high %v2117_v22, %v2118_v14 }
 0x2d2   :  { %v764_v13 = vpop.permute.xlu1 %763  ;;  %v762_v32 = vpop.permute.xlu0 %761 }
 0x2d3   :  { %780 = vst [vmem:[#allocation25 + $0x78] sm:$0xff] %v764_v13  ;;  %779 = vst [vmem:[#allocation25 + $0x70] sm:$0xff] %v762_v32  ;;  %v5766_v13 = vcombine.high %v2602_v47, %v2603_v29  ;;  %v2115_v32 = vld [vmem:[#allocation17 + $0x110] sm:$0xff] }
 0x2f6   :  { %v919_v12 = vpop.f32.mrf.mxu1 }
 0x2f7   :  { %v1010_v20 = vmul.f32 %v7502_v16, %v919_v12 }
 0x2f8   :  { %v921_v60 = vpop.f32.mrf.mxu1 }
 0x2f9   :  { %v1011_v63 = vmul.f32 %v7499_v53, %v921_v60  ;;  %v1054_v48 = vadd.f32 %v7510_v59, %v1010_v20  ;;  %v2116_v60 = vld [vmem:[#allocation17 + $0x130] sm:$0xff] }
 0x2fa   :  { %v923_v40 = vpop.f32.mrf.mxu1  ;;  %v5731_v39 = vcombine.low %v2115_v32, %v2116_v60 }
 0x2fb   :  { %v1012_v23 = vmul.f32 %v7502_v16, %v923_v40  ;;  %v1055_v35 = vadd.f32 %v7506_v21, %v1011_v63  ;;  %v1086_v28 = vmax.f32 %v1054_v48, 0.0  ;;  %v5765_v40 = vcombine.low %v2602_v47, %v2603_v29 }
 0x2fc   :  { %v925_v56 = vpop.f32.mrf.mxu1 }
 0x2fd   :  { %v1056_v58 = vadd.f32 %v7510_v59, %v1012_v23  ;;  %v1013_v17 = vmul.f32 %v7499_v53, %v925_v56  ;;  %v1087_v10 = vmax.f32 %v1055_v35, 0.0  ;;  %v5732_v35 = vcombine.high %v2115_v32, %v2116_v60  ;;  %v2595_v60 = vld [vmem:[#allocation17 + $0x78] sm:$0xff] }
 0x2fe   :  { %v929_v49 = vpop.f32.mrf.mxu1 }
 0x2ff   :  { %v1057_v9 = vadd.f32 %v7506_v21, %v1013_v17  ;;  %v1088_v25 = vmax.f32 %v1056_v58, 0.0  ;;  %v1014_v15 = vmul.f32 %v7502_v16, %v929_v49  ;;  %v5764_v58 = vcombine.high %v2600_v19, %v2601_v61  ;;  %v2113_v17 = vld [vmem:[#allocation17 + $0xd0] sm:$0xff] }
 0x300   :  { %v931_v3 = vpop.f32.mrf.mxu1 }
 0x301   :  { %v1089_v41 = vmax.f32 %v1057_v9, 0.0  ;;  %v1015_v36 = vmul.f32 %v7499_v53, %v931_v3  ;;  %v7523_v34 = vpack.c.bf16 %v1088_v25, %v1086_v28  ;;  %v1058_v62 = vadd.f32 %v7510_v59, %v1014_v15  ;;  %v2114_v25 = vld [vmem:[#allocation17 + $0xf0] sm:$0xff]  ;;  %v2598_v3 = vld [vmem:[#allocation17 + $0xd8] sm:$0xff] }
 0x302   :  { %v933_v42 = vpop.f32.mrf.mxu1  ;;  %v5730_v15 = vcombine.high %v2113_v17, %v2114_v25  ;;  %v5729_v29 = vcombine.low %v2113_v17, %v2114_v25  ;;  %v2593_v25 = vld [vmem:[#allocation17 + $0x38] sm:$0xff] }
 0x303   :  { %v7520_v31 = vpack.c.bf16 %v1089_v41, %v1087_v10  ;;  %v1016_v33 = vmul.f32 %v7502_v16, %v933_v42  ;;  %v1059_v5 = vadd.f32 %v7506_v21, %v1015_v36  ;;  %v5762_v42 = vcombine.high %v2598_v3, %v2599_v8 }
 0x304   :  { %v935_v38 = vpop.f32.mrf.mxu1 }
 0x305   :  { %v1060_v27 = vadd.f32 %v7510_v59, %v1016_v33  ;;  %v1017_v30 = vmul.f32 %v7499_v53, %v935_v38  ;;  %1358 = vmatprep.mubr.bf16.mxu0 %v7520_v31  ;;  %1846 = vmatprep.mubr.bf16.mxu1 %v7520_v31  ;;  %v1091_v44 = vmax.f32 %v1059_v5, 0.0  ;;  %v2111_v33 = vld [vmem:[#allocation17 + $0x90] sm:$0xff]  ;;  %v2596_v5 = vld [vmem:[#allocation17 + $0x98] sm:$0xff] }
 0x306   :  { %v939_v24 = vpop.f32.mrf.mxu1  ;;  %1359 = vmatmul.mubr.bf16.vlgmr.msra.gmra.mxu0 %v7523_v34  ;;  %1847 = vmatmul.mubr.bf16.vlgmr.msra.gmra.mxu1 %v7523_v34 }
 0x307   :  { %v1061_v1 = vadd.f32 %v7506_v21, %v1017_v30  ;;  %2300 = vmatpush1.bf16.msra.mxu0 %v5737_v50  ;;  %2785 = vmatpush1.bf16.msra.mxu1 %v5769_v37  ;;  %v1092_v45 = vmax.f32 %v1060_v27, 0.0  ;;  %v1090_v50 = vmax.f32 %v1058_v62, 0.0  ;;  %v1018_v43 = vmul.f32 %v7502_v16, %v939_v24  ;;  %v2597_v27 = vld [vmem:[#allocation17 + $0xb8] sm:$0xff] }
 0x308   :  { %v941_v55 = vpop.f32.mrf.mxu1  ;;  %2301 = vmatprep.subr.bf16.mxu0 %v5736_v18  ;;  %2786 = vmatprep.subr.bf16.mxu1 %v5768_v2  ;;  %v5733_v37 = vcombine.low %v2117_v22, %v2118_v14  ;;  %v2112_v22 = vld [vmem:[#allocation17 + $0xb0] sm:$0xff] }
 0x309   :  { %v1093_v12 = vmax.f32 %v1061_v1, 0.0  ;;  %v1019_v11 = vmul.f32 %v7499_v53, %v941_v55  ;;  %v7545_v23 = vpack.c.bf16 %v1092_v45, %v1090_v50  ;;  %v1062_v10 = vadd.f32 %v7510_v59, %v1018_v43 }
 0x30a   :  { %v943_v57 = vpop.f32.mrf.mxu1  ;;  %v5761_v1 = vcombine.low %v2598_v3, %v2599_v8  ;;  %v5728_v45 = vcombine.high %v2111_v33, %v2112_v22  ;;  %v5760_v55 = vcombine.high %v2596_v5, %v2597_v27  ;;  %v5727_v43 = vcombine.low %v2111_v33, %v2112_v22  ;;  %v2137_v33 = vld [vmem:[#allocation17 + $0x3d0] sm:$0xff] }
 0x30b   :  { %v7542_v63 = vpack.c.bf16 %v1093_v12, %v1091_v44  ;;  %v1020_v20 = vmul.f32 %v7502_v16, %v943_v57  ;;  %2302 = vmatpush1.bf16.msra.mxu0 %v5735_v54  ;;  %2787 = vmatpush1.bf16.msra.mxu1 %v5767_v7  ;;  %v1063_v48 = vadd.f32 %v7506_v21, %v1019_v11  ;;  %v1094_v30 = vmax.f32 %v1062_v10, 0.0  ;;  %v2110_v12 = vld [vmem:[#allocation17 + $0x70] sm:$0xff]  ;;  %v2594_v11 = vld [vmem:[#allocation17 + $0x58] sm:$0xff] }
 0x30c   :  { %v945_v56 = vpop.f32.mrf.mxu1  ;;  %2303 = vmatprep.subr.bf16.mxu0 %v5734_v46  ;;  %2788 = vmatprep.subr.bf16.mxu1 %v5766_v13  ;;  %v2109_v46 = vld [vmem:[#allocation17 + $0x50] sm:$0xff]  ;;  %v5759_v57 = vcombine.low %v2596_v5, %v2597_v27  ;;  %v2622_v5 = vld [vmem:[#allocation17 + $0x3d8] sm:$0xff] }
 0x30d   :  { %v1064_v49 = vadd.f32 %v7510_v59, %v1020_v20  ;;  %v1021_v9 = vmul.f32 %v7499_v53, %v945_v56  ;;  %1368 = vmatprep.mubr.bf16.mxu0 %v7542_v63  ;;  %1856 = vmatprep.mubr.bf16.mxu1 %v7542_v63  ;;  %v1095_v38 = vmax.f32 %v1063_v48, 0.0  ;;  %v5758_v56 = vcombine.high %v2594_v11, %v2595_v60  ;;  %v2138_v22 = vld [vmem:[#allocation17 + $0x3f0] sm:$0xff]  ;;  %v2623_v27 = vld [vmem:[#allocation17 + $0x3f8] sm:$0xff] }
 0x30e   :  { %v949_v41 = vpop.f32.mrf.mxu1  ;;  %1369 = vmatmul.mubr.bf16.gmra.mxu0 %v7545_v23  ;;  %1857 = vmatmul.mubr.bf16.gmra.mxu1 %v7545_v23 }
 0x30f   :  { %v1065_v36 = vadd.f32 %v7506_v21, %v1021_v9  ;;  %2304 = vmatpush1.bf16.msra.mxu0 %v5733_v37  ;;  %2789 = vmatpush1.bf16.msra.mxu1 %v5765_v40  ;;  %v1096_v26 = vmax.f32 %v1064_v49, 0.0  ;;  %v1022_v14 = vmul.f32 %v7502_v16, %v949_v41  ;;  %v5726_v40 = vcombine.high %v2109_v46, %v2110_v12  ;;  %v2108_v49 = vld [vmem:[#allocation17 + $0x30] sm:$0xff]  ;;  %v2592_v9 = vld [vmem:[#allocation17 + $0x18] sm:$0xff] }
 0x310   :  { %v951_v28 = vpop.f32.mrf.mxu1  ;;  %2305 = vmatprep.subr.bf16.mxu0 %v5732_v35  ;;  %2790 = vmatprep.subr.bf16.mxu1 %v5764_v58  ;;  %v2107_v35 = vld [vmem:[#allocation17 + $0x10] sm:$0xff]  ;;  %v5725_v41 = vcombine.low %v2109_v46, %v2110_v12 }
 0x311   :  { %v1097_v18 = vmax.f32 %v1065_v36, 0.0  ;;  %v1023_v2 = vmul.f32 %v7499_v53, %v951_v28  ;;  %v7561_v54 = vpack.c.bf16 %v1096_v26, %v1094_v30  ;;  %v1066_v19 = vadd.f32 %v7510_v59, %v1022_v14  ;;  %v2135_v46 = vld [vmem:[#allocation17 + $0x390] sm:$0xff] }
 0x312   :  { %v953_v47 = vpop.f32.mrf.mxu1  ;;  %v2136_v12 = vld [vmem:[#allocation17 + $0x3b0] sm:$0xff] }
 0x313   :  { %v7558_v62 = vpack.c.bf16 %v1097_v18, %v1095_v38  ;;  %v1024_v24 = vmul.f32 %v7502_v16, %v953_v47  ;;  %2306 = vmatpush1.bf16.msra.mxu0 %v5731_v39  ;;  %2791 = vmatpush1.bf16.msra.mxu1 %v5763_v6  ;;  %v1067_v13 = vadd.f32 %v7506_v21, %v1023_v2  ;;  %v1098_v3 = vmax.f32 %v1066_v19, 0.0 }
 0x314   :  { %v955_v7 = vpop.f32.mrf.mxu1  ;;  %2307 = vmatprep.subr.bf16.mxu0 %v5730_v15  ;;  %2792 = vmatprep.subr.bf16.mxu1 %v5762_v42  ;;  %v5757_v6 = vcombine.low %v2594_v11, %v2595_v60  ;;  %v5724_v15 = vcombine.high %v2107_v35, %v2108_v49  ;;  %v5756_v42 = vcombine.high %v2592_v9, %v2593_v25  ;;  %v2620_v11 = vld [vmem:[#allocation17 + $0x398] sm:$0xff] }
 0x315   :  { %v1068_v32 = vadd.f32 %v7510_v59, %v1024_v24  ;;  %v1025_v44 = vmul.f32 %v7499_v53, %v955_v7  ;;  %1378 = vmatprep.mubr.bf16.mxu0 %v7558_v62  ;;  %1866 = vmatprep.mubr.bf16.mxu1 %v7558_v62  ;;  %v1099_v58 = vmax.f32 %v1067_v13, 0.0  ;;  %v5755_v24 = vcombine.low %v2592_v9, %v2593_v25  ;;  %v2621_v60 = vld [vmem:[#allocation17 + $0x3b8] sm:$0xff]  ;;  %v2134_v25 = vld [vmem:[#allocation17 + $0x370] sm:$0xff] }
 0x316   :  { %v959_v61 = vpop.f32.mrf.mxu1  ;;  %1379 = vmatmul.mubr.bf16.gmra.mxu0 %v7561_v54  ;;  %1867 = vmatmul.mubr.bf16.gmra.mxu1 %v7561_v54 }
 0x317   :  { %v1069_v50 = vadd.f32 %v7506_v21, %v1025_v44  ;;  %2308 = vmatpush1.bf16.msra.mxu0 %v5729_v29  ;;  %2793 = vmatpush1.bf16.msra.mxu1 %v5761_v1  ;;  %v1100_v37 = vmax.f32 %v1068_v32, 0.0  ;;  %v1026_v8 = vmul.f32 %v7502_v16, %v959_v61  ;;  %v5723_v29 = vcombine.low %v2107_v35, %v2108_v49 }
 0x318   :  { %v961_v20 = vpop.f32.mrf.mxu1  ;;  %2309 = vmatprep.subr.bf16.mxu0 %v5728_v45  ;;  %2794 = vmatprep.subr.bf16.mxu1 %v5760_v55  ;;  %v5754_v45 = vcombine.high %v2137_v33, %v2138_v22  ;;  %v5786_v55 = vcombine.high %v2622_v5, %v2623_v27  ;;  %v5752_v35 = vcombine.high %v2135_v46, %v2136_v12 }
 0x319   :  { %v1101_v17 = vmax.f32 %v1069_v50, 0.0  ;;  %v1027_v48 = vmul.f32 %v7499_v53, %v961_v20  ;;  %v7577_v26 = vpack.c.bf16 %v1100_v37, %v1098_v3  ;;  %v1070_v30 = vadd.f32 %v7510_v59, %v1026_v8  ;;  %v2618_v3 = vld [vmem:[#allocation17 + $0x358] sm:$0xff] }
 0x31a   :  { %v963_v10 = vpop.f32.mrf.mxu1  ;;  %v5785_v20 = vcombine.low %v2622_v5, %v2623_v27  ;;  %v2619_v8 = vld [vmem:[#allocation17 + $0x378] sm:$0xff]  ;;  %v2132_v27 = vld [vmem:[#allocation17 + $0x330] sm:$0xff] }
 0x31b   :  { %v7574_v36 = vpack.c.bf16 %v1101_v17, %v1099_v58  ;;  %v1028_v39 = vmul.f32 %v7502_v16, %v963_v10  ;;  %2310 = vmatpush1.bf16.msra.mxu0 %v5727_v43  ;;  %2795 = vmatpush1.bf16.msra.mxu1 %v5759_v57  ;;  %v1071_v38 = vadd.f32 %v7506_v21, %v1027_v48  ;;  %v1102_v19 = vmax.f32 %v1070_v30, 0.0  ;;  %v2133_v17 = vld [vmem:[#allocation17 + $0x350] sm:$0xff]  ;;  %v2616_v30 = vld [vmem:[#allocation17 + $0x318] sm:$0xff] }
 0x31c   :  { %v965_v28 = vpop.f32.mrf.mxu1  ;;  %2311 = vmatprep.subr.bf16.mxu0 %v5726_v40  ;;  %2796 = vmatprep.subr.bf16.mxu1 %v5758_v56  ;;  %v5753_v43 = vcombine.low %v2137_v33, %v2138_v22  ;;  %v5784_v58 = vcombine.high %v2620_v11, %v2621_v60  ;;  %v5750_v33 = vcombine.high %v2133_v17, %v2134_v25 }
 0x31d   :  { %v1072_v18 = vadd.f32 %v7510_v59, %v1028_v39  ;;  %v1029_v2 = vmul.f32 %v7499_v53, %v965_v28  ;;  %1388 = vmatprep.mubr.bf16.mxu0 %v7574_v36  ;;  %1876 = vmatprep.mubr.bf16.mxu1 %v7574_v36  ;;  %v1103_v13 = vmax.f32 %v1071_v38, 0.0  ;;  %v5783_v28 = vcombine.low %v2620_v11, %v2621_v60 }
 0x31e   :  { %v969_v14 = vpop.f32.mrf.mxu1  ;;  %1389 = vmatmul.mubr.bf16.gmra.mxu0 %v7577_v26  ;;  %1877 = vmatmul.mubr.bf16.gmra.mxu1 %v7577_v26  ;;  %v5782_v38 = vcombine.high %v2618_v3, %v2619_v8 }
 0x31f   :  { %v1073_v47 = vadd.f32 %v7506_v21, %v1029_v2  ;;  %2312 = vmatpush1.bf16.msra.mxu0 %v5725_v41  ;;  %2797 = vmatpush1.bf16.msra.mxu1 %v5757_v6  ;;  %v1104_v1 = vmax.f32 %v1072_v18, 0.0  ;;  %v1030_v61 = vmul.f32 %v7502_v16, %v969_v14  ;;  %v5751_v6 = vcombine.low %v2135_v46, %v2136_v12  ;;  %v2131_v18 = vld [vmem:[#allocation17 + $0x310] sm:$0xff]  ;;  %v2617_v14 = vld [vmem:[#allocation17 + $0x338] sm:$0xff] }
 0x320   :  { %v971_v7 = vpop.f32.mrf.mxu1  ;;  %2313 = vmatprep.subr.bf16.mxu0 %v5724_v15  ;;  %2798 = vmatprep.subr.bf16.mxu1 %v5756_v42  ;;  %v2129_v12 = vld [vmem:[#allocation17 + $0x2d0] sm:$0xff] }
 0x321   :  { %v1105_v32 = vmax.f32 %v1073_v47, 0.0  ;;  %v1031_v44 = vmul.f32 %v7499_v53, %v971_v7  ;;  %v7593_v40 = vpack.c.bf16 %v1104_v1, %v1102_v19  ;;  %v1074_v10 = vadd.f32 %v7510_v59, %v1030_v61  ;;  %v2130_v61 = vld [vmem:[#allocation17 + $0x2f0] sm:$0xff] }
 0x322   :  { %v973_v50 = vpop.f32.mrf.mxu1  ;;  %v5749_v1 = vcombine.low %v2133_v17, %v2134_v25  ;;  %v2127_v25 = vld [vmem:[#allocation17 + $0x290] sm:$0xff] }
 0x323   :  { %v7590_v57 = vpack.c.bf16 %v1105_v32, %v1103_v13  ;;  %v1032_v37 = vmul.f32 %v7502_v16, %v973_v50  ;;  %2314 = vmatpush1.bf16.msra.mxu0 %v5723_v29  ;;  %2799 = vmatpush1.bf16.msra.mxu1 %v5755_v24  ;;  %v1075_v48 = vadd.f32 %v7506_v21, %v1031_v44  ;;  %v1106_v47 = vmax.f32 %v1074_v10, 0.0  ;;  %v2614_v50 = vld [vmem:[#allocation17 + $0x2d8] sm:$0xff] }
 0x324   :  { %v975_v56 = vpop.f32.mrf.mxu1  ;;  %2315 = vmatprep.subr.bf16.mxu0 %v5754_v45  ;;  %2800 = vmatprep.subr.bf16.mxu1 %v5786_v55  ;;  %v5781_v55 = vcombine.low %v2618_v3, %v2619_v8  ;;  %v5748_v32 = vcombine.high %v2131_v18, %v2132_v27  ;;  %v5780_v44 = vcombine.high %v2616_v30, %v2617_v14 }
 0x325   :  { %v1076_v49 = vadd.f32 %v7510_v59, %v1032_v37  ;;  %v1033_v9 = vmul.f32 %v7499_v53, %v975_v56  ;;  %1398 = vmatprep.mubr.bf16.mxu0 %v7590_v57  ;;  %1886 = vmatprep.mubr.bf16.mxu1 %v7590_v57  ;;  %v1107_v2 = vmax.f32 %v1075_v48, 0.0 }
 0x326   :  { %v979_v41 = vpop.f32.mrf.mxu1  ;;  %1399 = vmatmul.mubr.bf16.gmra.mxu0 %v7593_v40  ;;  %1887 = vmatmul.mubr.bf16.gmra.mxu1 %v7593_v40 }
 0x327   :  { %v1077_v39 = vadd.f32 %v7506_v21, %v1033_v9  ;;  %2316 = vmatpush2.bf16.msra.mxu0 %v5753_v43  ;;  %2801 = vmatpush2.bf16.msra.mxu1 %v5785_v20  ;;  %v1108_v15 = vmax.f32 %v1076_v49, 0.0  ;;  %v1034_v29 = vmul.f32 %v7502_v16, %v979_v41  ;;  %v2615_v43 = vld [vmem:[#allocation17 + $0x2f8] sm:$0xff]  ;;  %v5746_v49 = vcombine.high %v2129_v12, %v2130_v61  ;;  %v2128_v41 = vld [vmem:[#allocation17 + $0x2b0] sm:$0xff] }
 0x328   :  { %v981_v42 = vpop.f32.mrf.mxu1  ;;  %2317 = vmatprep.subr.bf16.mxu0 %v5752_v35  ;;  %2802 = vmatprep.subr.bf16.mxu1 %v5784_v58  ;;  %v5747_v35 = vcombine.low %v2131_v18, %v2132_v27  ;;  %v5779_v58 = vcombine.low %v2616_v30, %v2617_v14  ;;  %v5778_v9 = vcombine.high %v2614_v50, %v2615_v43  ;;  %v2125_v14 = vld [vmem:[#allocation17 + $0x250] sm:$0xff] }
 0x329   :  { %v1109_v22 = vmax.f32 %v1077_v39, 0.0  ;;  %v1035_v5 = vmul.f32 %v7499_v53, %v981_v42  ;;  %v7609_v46 = vpack.c.bf16 %v1108_v15, %v1106_v47  ;;  %v1078_v37 = vadd.f32 %v7510_v59, %v1034_v29  ;;  %v2612_v39 = vld [vmem:[#allocation17 + $0x298] sm:$0xff] }
 0x32a   :  { %v983_v24 = vpop.f32.mrf.mxu1  ;;  %v5744_v27 = vcombine.high %v2127_v25, %v2128_v41 }
 0x32b   :  { %v7606_v7 = vpack.c.bf16 %v1109_v22, %v1107_v2  ;;  %v1036_v45 = vmul.f32 %v7502_v16, %v983_v24  ;;  %2318 = vmatpush2.bf16.msra.mxu0 %v5751_v6  ;;  %2803 = vmatpush2.bf16.msra.mxu1 %v5783_v28  ;;  %v1079_v11 = vadd.f32 %v7506_v21, %v1035_v5  ;;  %v2613_v6 = vld [vmem:[#allocation17 + $0x2b8] sm:$0xff]  ;;  %v1110_v28 = vmax.f32 %v1078_v37, 0.0 }
 0x32c   :  { %v985_v13 = vpop.f32.mrf.mxu1  ;;  %2319 = vmatprep.subr.bf16.mxu0 %v5750_v33  ;;  %2804 = vmatprep.subr.bf16.mxu1 %v5782_v38  ;;  %v5745_v33 = vcombine.low %v2129_v12, %v2130_v61  ;;  %v5777_v2 = vcombine.low %v2614_v50, %v2615_v43  ;;  %v5776_v30 = vcombine.high %v2612_v39, %v2613_v6  ;;  %v2123_v61 = vld [vmem:[#allocation17 + $0x210] sm:$0xff]  ;;  %v2608_v43 = vld [vmem:[#allocation17 + $0x218] sm:$0xff] }
 0x32d   :  { %v1080_v60 = vadd.f32 %v7510_v59, %v1036_v45  ;;  %v1037_v19 = vmul.f32 %v7499_v53, %v985_v13  ;;  %1408 = vmatprep.mubr.bf16.mxu0 %v7606_v7  ;;  %1896 = vmatprep.mubr.bf16.mxu1 %v7606_v7  ;;  %v1111_v3 = vmax.f32 %v1079_v11, 0.0  ;;  %v2611_v45 = vld [vmem:[#allocation17 + $0x278] sm:$0xff] }
 0x32e   :  { %v989_v20 = vpop.f32.mrf.mxu1  ;;  %1409 = vmatmul.mubr.bf16.gmra.mxu0 %v7609_v46  ;;  %1897 = vmatmul.mubr.bf16.gmra.mxu1 %v7609_v46  ;;  %v2609_v37 = vld [vmem:[#allocation17 + $0x238] sm:$0xff] }
 0x32f   :  { %v1081_v56 = vadd.f32 %v7506_v21, %v1037_v19  ;;  %2320 = vmatpush2.bf16.msra.mxu0 %v5749_v1  ;;  %2805 = vmatpush2.bf16.msra.mxu1 %v5781_v55  ;;  %v1112_v17 = vmax.f32 %v1080_v60, 0.0  ;;  %v1038_v15 = vmul.f32 %v7502_v16, %v989_v20  ;;  %v2610_v1 = vld [vmem:[#allocation17 + $0x258] sm:$0xff] }
 0x330   :  { %v991_v48 = vpop.f32.mrf.mxu1  ;;  %2321 = vmatprep.subr.bf16.mxu0 %v5748_v32  ;;  %2806 = vmatprep.subr.bf16.mxu1 %v5780_v44  ;;  %v5743_v32 = vcombine.low %v2127_v25, %v2128_v41  ;;  %v5775_v44 = vcombine.low %v2612_v39, %v2613_v6  ;;  %v5774_v11 = vcombine.high %v2610_v1, %v2611_v45 }
 0x331   :  { %v1113_v8 = vmax.f32 %v1081_v56, 0.0  ;;  %v1039_v10 = vmul.f32 %v7499_v53, %v991_v48  ;;  %v7625_v22 = vpack.c.bf16 %v1112_v17, %v1110_v28  ;;  %v1082_v55 = vadd.f32 %v7510_v59, %v1038_v15 }
 0x332   :  { %v993_v42 = vpop.f32.mrf.mxu1  ;;  %v5773_v56 = vcombine.low %v2610_v1, %v2611_v45  ;;  %v5772_v17 = vcombine.high %v2608_v43, %v2609_v37  ;;  %v7041_v28 = vmov 1966171168  }
 0x333   :  { %v7622_v38 = vpack.c.bf16 %v1113_v8, %v1111_v3  ;;  %v1040_v18 = vmul.f32 %v7502_v16, %v993_v42  ;;  %2322 = vmatpush2.bf16.msra.mxu0 %v5747_v35  ;;  %2807 = vmatpush2.bf16.msra.mxu1 %v5779_v58  ;;  %v1083_v47 = vadd.f32 %v7506_v21, %v1039_v10  ;;  %v2126_v16 = vld [vmem:[#allocation17 + $0x270] sm:$0xff]  ;;  %v1114_v50 = vmax.f32 %v1082_v55, 0.0  ;;  %v1483_v3 = vld [vmem:[%s8309_s9] sm:$0x3]  ;;  %v1971_v8 = vld [vmem:[%s8309_s9 + $0x2] sm:$0x3] }
 0x334   :  { %v995_v5 = vpop.f32.mrf.mxu1  ;;  %2323 = vmatprep.subr.bf16.mxu0 %v5746_v49  ;;  %2808 = vmatprep.subr.bf16.mxu1 %v5778_v9  ;;  %v5742_v12 = vcombine.high %v2125_v14, %v2126_v16  ;;  %v5771_v49 = vcombine.low %v2608_v43, %v2609_v37  ;;  %v7688_v15 = vunpack.c.l.s4 %v7041_v28 }
 0x335   :  { %v1084_v29 = vadd.f32 %v7510_v59, %v1040_v18  ;;  %v1041_v24 = vmul.f32 %v7499_v53, %v995_v5  ;;  %1418 = vmatprep.mubr.bf16.mxu0 %v7622_v38  ;;  %1906 = vmatprep.mubr.bf16.mxu1 %v7622_v38  ;;  %v1115_v60 = vmax.f32 %v1083_v47, 0.0  ;;  %v2124_v59 = vld [vmem:[#allocation17 + $0x230] sm:$0xff]  ;;  %v7696_v18 = vrot.slane %v1971_v8, %v7496_v4 }
 0x336   :  { %1419 = vmatmul.mubr.bf16.gmra.mxu0 %v7625_v22  ;;  %1907 = vmatmul.mubr.bf16.gmra.mxu1 %v7625_v22  ;;  %v5740_v58 = vcombine.high %v2123_v61, %v2124_v59  ;;  %v5739_v48 = vcombine.low %v2123_v61, %v2124_v59  ;;  %v1558_v1 = vunpack.c.0.s8 %v7688_v15 }
 0x337   :  { %v1085_v13 = vadd.f32 %v7506_v21, %v1041_v24  ;;  %2324 = vmatpush2.bf16.msra.mxu0 %v5745_v33  ;;  %2809 = vmatpush2.bf16.msra.mxu1 %v5777_v2  ;;  %v1116_v53 = vmax.f32 %v1084_v29, 0.0  ;;  %v5741_v21 = vcombine.low %v2125_v14, %v2126_v16  ;;  %v7692_v33 = vrot.slane %v1483_v3, %v7496_v4 }
 0x338   :  { %2325 = vmatprep.subr.bf16.mxu0 %v5744_v27  ;;  %2810 = vmatprep.subr.bf16.mxu1 %v5776_v30  ;;  %v7700_v27 = vrot.slane %v1483_v3, %v7493_v51  ;;  %v7704_v14 = vrot.slane %v1971_v8, %v7493_v51 }
 0x339   :  { %v1117_v19 = vmax.f32 %v1085_v13, 0.0  ;;  %v1132_v35 = vpack.c.bf16 %v1116_v53, %v1114_v50 }
 0x33b   :  { %v1133_v20 = vpack.c.bf16 %v1117_v19, %v1115_v60  ;;  %2326 = vmatpush2.bf16.msra.mxu0 %v5743_v32  ;;  %2811 = vmatpush2.bf16.msra.mxu1 %v5775_v44 }
 0x33c   :  { %2327 = vmatprep.subr.bf16.mxu0 %v5742_v12  ;;  %2812 = vmatprep.subr.bf16.mxu1 %v5774_v11 }
 0x33d   :  { %1428 = vmatprep.mubr.bf16.mxu0 %v1133_v20  ;;  %1916 = vmatprep.mubr.bf16.mxu1 %v1133_v20 }
 0x33e   :  { %1429 = vmatmul.mubr.bf16.gmra.mxu0 %v1132_v35  ;;  %1917 = vmatmul.mubr.bf16.gmra.mxu1 %v1132_v35 }
 0x33f   :  { %2328 = vmatpush2.bf16.msra.mxu0 %v5741_v21  ;;  %2813 = vmatpush2.bf16.msra.mxu1 %v5773_v56 }
 0x340   :  { %2331 = vmatprep.mubr.bf16.mxu0 %v7520_v31  ;;  %2816 = vmatprep.mubr.bf16.mxu1 %v7520_v31 }
 0x341   :  { %2329 = vmatprep.subr.bf16.mxu0 %v5740_v58  ;;  %2814 = vmatprep.subr.bf16.mxu1 %v5772_v17 }
 0x343   :  { %2330 = vmatpush2.bf16.msra.mxu0 %v5739_v48  ;;  %2815 = vmatpush2.bf16.msra.mxu1 %v5771_v49 }
 0x346   :  { %2332 = vmatmul.mubr.bf16.vlgmr.msra.gmra.mxu0 %v7523_v34  ;;  %2817 = vmatmul.mubr.bf16.vlgmr.msra.gmra.mxu1 %v7523_v34 }
 0x347   :  { %2341 = vmatprep.mubr.bf16.mxu0 %v7542_v63  ;;  %2826 = vmatprep.mubr.bf16.mxu1 %v7542_v63 }
 0x34e   :  { %2342 = vmatmul.mubr.bf16.gmra.mxu0 %v7545_v23  ;;  %2827 = vmatmul.mubr.bf16.gmra.mxu1 %v7545_v23 }
 0x34f   :  { %2351 = vmatprep.mubr.bf16.mxu0 %v7558_v62  ;;  %2836 = vmatprep.mubr.bf16.mxu1 %v7558_v62 }
 0x356   :  { %2352 = vmatmul.mubr.bf16.gmra.mxu0 %v7561_v54  ;;  %2837 = vmatmul.mubr.bf16.gmra.mxu1 %v7561_v54 }
 0x357   :  { %2361 = vmatprep.mubr.bf16.mxu0 %v7574_v36  ;;  %2846 = vmatprep.mubr.bf16.mxu1 %v7574_v36  ;;  %v1439_v36 = vld [vmem:[%s8308_s8] sm:$0x3] }
 0x358   :  { %v7683_v10 = vrot.slane %v1439_v36, %v7493_v51 }
 0x35e   :  { %2362 = vmatmul.mubr.bf16.gmra.mxu0 %v7577_v26  ;;  %2847 = vmatmul.mubr.bf16.gmra.mxu1 %v7577_v26  ;;  %v1927_v26 = vld [vmem:[%s8308_s8 + $0x2] sm:$0x3] }
 0x35f   :  { %2371 = vmatprep.mubr.bf16.mxu0 %v7590_v57  ;;  %2856 = vmatprep.mubr.bf16.mxu1 %v7590_v57  ;;  %v7686_v41 = vrot.slane %v1927_v26, %v7493_v51 }
 0x366   :  { %2372 = vmatmul.mubr.bf16.gmra.mxu0 %v7593_v40  ;;  %2857 = vmatmul.mubr.bf16.gmra.mxu1 %v7593_v40 }
 0x367   :  { %2381 = vmatprep.mubr.bf16.mxu0 %v7606_v7  ;;  %2866 = vmatprep.mubr.bf16.mxu1 %v7606_v7  ;;  %v7671_v7 = vrot.slane %v1439_v36, %v7496_v4 }
 0x36e   :  { %2382 = vmatmul.mubr.bf16.gmra.mxu0 %v7609_v46  ;;  %2867 = vmatmul.mubr.bf16.gmra.mxu1 %v7609_v46  ;;  %v7674_v46 = vrot.slane %v1927_v26, %v7496_v4 }
 0x36f   :  { %2391 = vmatprep.mubr.bf16.mxu0 %v7622_v38  ;;  %2876 = vmatprep.mubr.bf16.mxu1 %v7622_v38 }
 0x376   :  { %2392 = vmatmul.mubr.bf16.gmra.mxu0 %v7625_v22  ;;  %2877 = vmatmul.mubr.bf16.gmra.mxu1 %v7625_v22 }
 0x377   :  { %2401 = vmatprep.mubr.bf16.mxu0 %v1133_v20  ;;  %2886 = vmatprep.mubr.bf16.mxu1 %v1133_v20 }
 0x37e   :  { %2402 = vmatmul.mubr.bf16.gmra.mxu0 %v1132_v35  ;;  %2887 = vmatmul.mubr.bf16.gmra.mxu1 %v1132_v35 }
 0x3c6   :  { %v1360_v31 = vpop.f32.mrf.mxu0  ;;  %v1848_v34 = vpop.f32.mrf.mxu1 }
 0x3c7   :  { %v1451_v42 = vmul.f32 %v7671_v7, %v1360_v31  ;;  %v1939_v38 = vmul.f32 %v7674_v46, %v1848_v34 }
 0x3c8   :  { %v1362_v63 = vpop.f32.mrf.mxu0  ;;  %v1850_v23 = vpop.f32.mrf.mxu1 }
 0x3c9   :  { %v1452_v5 = vmul.f32 %v7683_v10, %v1362_v63  ;;  %v1940_v30 = vmul.f32 %v7686_v41, %v1850_v23  ;;  %v7712_v13 = vadd.f32 %v7692_v33, %v1451_v42  ;;  %v7715_v32 = vadd.f32 %v7696_v18, %v1939_v38 }
 0x3ca   :  { %v1364_v62 = vpop.f32.mrf.mxu0  ;;  %v1852_v54 = vpop.f32.mrf.mxu1 }
 0x3cb   :  { %v1453_v44 = vmul.f32 %v7671_v7, %v1364_v62  ;;  %v1941_v53 = vmul.f32 %v7674_v46, %v1852_v54  ;;  %v7720_v60 = vadd.f32 %v7700_v27, %v1452_v5  ;;  %v7723_v19 = vadd.f32 %v7704_v14, %v1940_v30 }
 0x3cc   :  { %v1366_v57 = vpop.f32.mrf.mxu0  ;;  %v1854_v40 = vpop.f32.mrf.mxu1 }
 0x3cd   :  { %v1454_v59 = vmul.f32 %v7683_v10, %v1366_v57  ;;  %v1942_v43 = vmul.f32 %v7686_v41, %v1854_v40  ;;  %v7740_v49 = vadd.f32 %v7692_v33, %v1453_v44  ;;  %v7743_v31 = vadd.f32 %v7696_v18, %v1941_v53 }
 0x3ce   :  { %v1370_v9 = vpop.f32.mrf.mxu0  ;;  %v1858_v25 = vpop.f32.mrf.mxu1 }
 0x3cf   :  { %v1455_v47 = vmul.f32 %v7671_v7, %v1370_v9  ;;  %v1943_v29 = vmul.f32 %v7674_v46, %v1858_v25  ;;  %v7752_v40 = vadd.f32 %v7700_v27, %v1454_v59  ;;  %v7755_v9 = vadd.f32 %v7704_v14, %v1942_v43 }
 0x3d0   :  { %v1372_v39 = vpop.f32.mrf.mxu0  ;;  %v1860_v6 = vpop.f32.mrf.mxu1 }
 0x3d1   :  { %v1456_v45 = vmul.f32 %v7683_v10, %v1372_v39  ;;  %v1944_v55 = vmul.f32 %v7686_v41, %v1860_v6  ;;  %v1499_v37 = vadd.f32 %v7692_v33, %v1455_v47  ;;  %v1987_v20 = vadd.f32 %v7696_v18, %v1943_v29 }
 0x3d2   :  { %v1374_v2 = vpop.f32.mrf.mxu0  ;;  %v1862_v22 = vpop.f32.mrf.mxu1 }
 0x3d3   :  { %v1457_v61 = vmul.f32 %v7671_v7, %v1374_v2  ;;  %v1945_v50 = vmul.f32 %v7674_v46, %v1862_v22  ;;  %v7732_v35 = vadd.f32 %v7700_v27, %v1456_v45  ;;  %v7735_v58 = vadd.f32 %v7704_v14, %v1944_v55 }
 0x3d4   :  { %v1376_v24 = vpop.f32.mrf.mxu0  ;;  %v1864_v16 = vpop.f32.mrf.mxu1  ;;  %v1527_v25 = vmax.f32 %v7712_v13, %v1499_v37  ;;  %v2015_v3 = vmax.f32 %v7715_v32, %v1987_v20 }
 0x3d5   :  { %v1458_v17 = vmul.f32 %v7683_v10, %v1376_v24  ;;  %v1946_v48 = vmul.f32 %v7686_v41, %v1864_v16  ;;  %v1501_v54 = vadd.f32 %v7692_v33, %v1457_v61  ;;  %v1989_v36 = vadd.f32 %v7696_v18, %v1945_v50 }
 0x3d6   :  { %v1380_v12 = vpop.f32.mrf.mxu0  ;;  %v1868_v11 = vpop.f32.mrf.mxu1  ;;  %v1540_v6 = vmax.f32 %v7720_v60, %v7732_v35  ;;  %v2028_v28 = vmax.f32 %v7723_v19, %v7735_v58 }
 0x3d7   :  { %v1459_v34 = vmul.f32 %v7671_v7, %v1380_v12  ;;  %v1947_v63 = vmul.f32 %v7674_v46, %v1868_v11  ;;  %v7764_v42 = vadd.f32 %v7700_v27, %v1458_v17  ;;  %v7767_v38 = vadd.f32 %v7704_v14, %v1946_v48 }
 0x3d8   :  { %v1382_v21 = vpop.f32.mrf.mxu0  ;;  %v1870_v56 = vpop.f32.mrf.mxu1  ;;  %v1528_v24 = vmax.f32 %v7740_v49, %v1501_v54  ;;  %v2016_v16 = vmax.f32 %v7743_v31, %v1989_v36 }
 0x3d9   :  { %v1503_v2 = vadd.f32 %v7692_v33, %v1459_v34  ;;  %v1991_v22 = vadd.f32 %v7696_v18, %v1947_v63  ;;  %v1460_v5 = vmul.f32 %v7683_v10, %v1382_v21  ;;  %v1948_v30 = vmul.f32 %v7686_v41, %v1870_v56 }
 0x3da   :  { %v1384_v23 = vpop.f32.mrf.mxu0  ;;  %v1872_v62 = vpop.f32.mrf.mxu1  ;;  %v1541_v61 = vmax.f32 %v7752_v40, %v7764_v42  ;;  %v2029_v50 = vmax.f32 %v7755_v9, %v7767_v38 }
 0x3db   :  { %v1461_v26 = vmul.f32 %v7671_v7, %v1384_v23  ;;  %v1949_v57 = vmul.f32 %v7674_v46, %v1872_v62  ;;  %v1529_v37 = vmax.f32 %v1527_v25, %v1503_v2  ;;  %v2017_v20 = vmax.f32 %v2015_v3, %v1991_v22 }
 0x3dc   :  { %v1386_v8 = vpop.f32.mrf.mxu0  ;;  %v1874_v39 = vpop.f32.mrf.mxu1  ;;  %v1504_v21 = vadd.f32 %v7700_v27, %v1460_v5  ;;  %v1992_v56 = vadd.f32 %v7704_v14, %v1948_v30 }
 0x3dd   :  { %v1505_v45 = vadd.f32 %v7692_v33, %v1461_v26  ;;  %v1993_v55 = vadd.f32 %v7696_v18, %v1949_v57  ;;  %v1462_v13 = vmul.f32 %v7683_v10, %v1386_v8  ;;  %v1950_v32 = vmul.f32 %v7686_v41, %v1874_v39 }
 0x3de   :  { %v1390_v47 = vpop.f32.mrf.mxu0  ;;  %v1878_v29 = vpop.f32.mrf.mxu1 }
 0x3df   :  { %v1463_v44 = vmul.f32 %v7671_v7, %v1390_v47  ;;  %v1951_v53 = vmul.f32 %v7674_v46, %v1878_v29 }
 0x3e0   :  { %v1392_v12 = vpop.f32.mrf.mxu0  ;;  %v1880_v11 = vpop.f32.mrf.mxu1 }
 0x3e1   :  { %v1464_v59 = vmul.f32 %v7683_v10, %v1392_v12  ;;  %v1952_v43 = vmul.f32 %v7686_v41, %v1880_v11  ;;  %v1507_v49 = vadd.f32 %v7692_v33, %v1463_v44  ;;  %v1995_v31 = vadd.f32 %v7696_v18, %v1951_v53 }
 0x3e2   :  { %v1394_v17 = vpop.f32.mrf.mxu0  ;;  %v1882_v48 = vpop.f32.mrf.mxu1 }
 0x3e3   :  { %v1465_v34 = vmul.f32 %v7671_v7, %v1394_v17  ;;  %v1953_v63 = vmul.f32 %v7674_v46, %v1882_v48 }
 0x3e4   :  { %6923 = shalt.err (!%p6920_p12)  }
 0x3e5   :  { %189 = dma.hbm_to_vmem [thread:$0]  %s8314_s14, 32768, %s187_s0, [#allocation4]  ;;  %v1530_v23 = vmax.f32 %v1528_v24, %v1505_v45  ;;  %v2018_v62 = vmax.f32 %v2016_v16, %v1993_v55  ;;  %v1506_v54 = vadd.f32 %v7700_v27, %v1462_v13  ;;  %v1994_v36 = vadd.f32 %v7704_v14, %v1950_v32  ;;  %v1396_v26 = vpop.f32.mrf.mxu0  ;;  %v1884_v57 = vpop.f32.mrf.mxu1 }
 0x3e6   :  { %s6932_s21 = scalar_lea.vmem %s199_s20, 8192  ;;  %p6937_p0 = scmp.lt.s32.totalorder %s199_s20, %s199_s20 }
 0x3e7   :  { %p6933_p13 = scmp.ne.s32.totalorder %s199_s20, %s6932_s21  ;;  %p6938_p1 = scmp.lt.s32.totalorder %s6932_s21, %s6932_s21 }
 0x3e9   :  { %p6939_p2 = por %p6938_p1, %p6937_p0 }
 0x3eb   :  { %p6940_p3 = pnand %p6939_p2, %p6933_p13 }
 0x3ed   :  { %6943 = shalt.err (!%p6940_p3)  }
 0x3ee   :  { %201 = dma.hbm_to_vmem [thread:$0]  %s8315_s15, 8192, %s199_s20, [#allocation4 + $0x1]  ;;  %v1508_v40 = vadd.f32 %v7700_v27, %v1464_v59  ;;  %v1996_v9 = vadd.f32 %v7704_v14, %v1952_v43  ;;  %v1509_v25 = vadd.f32 %v7692_v33, %v1465_v34  ;;  %v1997_v3 = vadd.f32 %v7696_v18, %v1953_v63  ;;  %v1400_v2 = vpop.f32.mrf.mxu0  ;;  %v1888_v22 = vpop.f32.mrf.mxu1  ;;  %v7818_v13 = vld [vmem:[%s8308_s8 + $0x4] sm:$0x3]  ;;  %v7823_v32 = vld [vmem:[%s8308_s8 + $0x6] sm:$0x3] }
 0x3ef   :  { %v1542_v8 = vmax.f32 %v1540_v6, %v1504_v21  ;;  %v2030_v39 = vmax.f32 %v2028_v28, %v1992_v56  ;;  %v1466_v42 = vmul.f32 %v7683_v10, %v1396_v26  ;;  %v1954_v38 = vmul.f32 %v7686_v41, %v1884_v57  ;;  %v7830_v59 = vld [vmem:[%s8309_s9 + $0x4] sm:$0x3]  ;;  %v7835_v43 = vld [vmem:[%s8309_s9 + $0x6] sm:$0x3] }
 0x3f0   :  { %v1531_v5 = vmax.f32 %v1529_v37, %v1507_v49  ;;  %v2019_v30 = vmax.f32 %v2017_v20, %v1995_v31  ;;  %v1532_v47 = vmax.f32 %v1530_v23, %v1509_v25  ;;  %v2020_v29 = vmax.f32 %v2018_v62, %v1997_v3  ;;  %v1402_v35 = vpop.f32.mrf.mxu0  ;;  %v1890_v6 = vpop.f32.mrf.mxu1 }
 0x3f1   :  { %v1543_v24 = vmax.f32 %v1541_v61, %v1506_v54  ;;  %v2031_v16 = vmax.f32 %v2029_v50, %v1994_v36  ;;  %v1510_v45 = vadd.f32 %v7700_v27, %v1466_v42  ;;  %v1998_v60 = vadd.f32 %v7704_v14, %v1954_v38 }
 0x3f2   :  { %v1544_v19 = vmax.f32 %v1542_v8, %v1508_v40  ;;  %v2032_v58 = vmax.f32 %v2030_v39, %v1996_v9  ;;  %v1533_v28 = vmax.f32 %v1531_v5, %v1532_v47  ;;  %v2021_v55 = vmax.f32 %v2019_v30, %v2020_v29  ;;  %v1404_v61 = vpop.f32.mrf.mxu0  ;;  %v1892_v50 = vpop.f32.mrf.mxu1 }
 0x3f3   :  { %v1545_v44 = vmax.f32 %v1543_v24, %v1510_v45  ;;  %v2033_v53 = vmax.f32 %v2031_v16, %v1998_v60  ;;  %v1467_v12 = vmul.f32 %v7671_v7, %v1400_v2  ;;  %v1955_v11 = vmul.f32 %v7674_v46, %v1888_v22 }
 0x3f4   :  { %v7840_v37 = vsub.s32 %v1558_v1, %v7490_v52  ;;  %v1534_v20 = vrot.slane %v1533_v28, 4  ;;  %v2022_v21 = vrot.slane %v2021_v55, 4  ;;  %v1406_v48 = vpop.f32.mrf.mxu0  ;;  %v1894_v49 = vpop.f32.mrf.mxu1  ;;  %v7844_v31 = vrot.slane %v7818_v13, %v7496_v4 }
 0x3f5   :  { %v1546_v56 = vmax.f32 %v1544_v19, %v1545_v44  ;;  %v2034_v17 = vmax.f32 %v2032_v58, %v2033_v53  ;;  %v7848_v34 = vrot.slane %v7823_v32, %v7496_v4  ;;  %v7852_v15 = vrot.slane %v7830_v59, %v7496_v4 }
 0x3f6   :  { %v1535_v63 = vmax.f32 %v1533_v28, %v1534_v20  ;;  %v2023_v23 = vmax.f32 %v2021_v55, %v2022_v21  ;;  %v7856_v1 = vrot.slane %v7835_v43, %v7496_v4  ;;  %v7859_v36 = vadd.f32 %v7692_v33, %v1467_v12  ;;  %v1410_v57 = vpop.f32.mrf.mxu0  ;;  %v1898_v40 = vpop.f32.mrf.mxu1 }
 0x3f7   :  { %v1547_v62 = vrot.slane %v1546_v56, 4  ;;  %v2035_v54 = vrot.slane %v2034_v17, 4  ;;  %v7862_v26 = vadd.f32 %v7696_v18, %v1955_v11  ;;  %v1468_v3 = vmul.f32 %v7683_v10, %v1402_v35 }
 0x3f8   :  { %v1536_v9 = vrot.slane %v1535_v63, 2  ;;  %v2024_v25 = vrot.slane %v2023_v23, 2  ;;  %v1956_v8 = vmul.f32 %v7686_v41, %v1890_v6  ;;  %v1469_v38 = vmul.f32 %v7671_v7, %v1404_v61  ;;  %v1412_v22 = vpop.f32.mrf.mxu0  ;;  %v1900_v5 = vpop.f32.mrf.mxu1 }
 0x3f9   :  { %v1548_v39 = vmax.f32 %v1546_v56, %v1547_v62  ;;  %v2036_v42 = vmax.f32 %v2034_v17, %v2035_v54  ;;  %v1957_v2 = vmul.f32 %v7674_v46, %v1892_v50  ;;  %v1471_v29 = vmul.f32 %v7671_v7, %v1410_v57 }
 0x3fa   :  { %v1537_v30 = vmax.f32 %v1535_v63, %v1536_v9  ;;  %v2025_v47 = vmax.f32 %v2023_v23, %v2024_v25  ;;  %v1959_v24 = vmul.f32 %v7674_v46, %v1898_v40  ;;  %v1472_v60 = vmul.f32 %v7683_v10, %v1412_v22  ;;  %v1414_v6 = vpop.f32.mrf.mxu0  ;;  %v1902_v19 = vpop.f32.mrf.mxu1 }
 0x3fb   :  { %v1549_v16 = vrot.slane %v1548_v39, 2  ;;  %v2037_v45 = vrot.slane %v2036_v42, 2  ;;  %v1960_v35 = vmul.f32 %v7686_v41, %v1900_v5  ;;  %v7873_v55 = vadd.f32 %v7700_v27, %v1468_v3 }
 0x3fc   :  { %v1538_v58 = vrot.slane %v1537_v30, 1  ;;  %v2026_v28 = vrot.slane %v2025_v47, 1  ;;  %v7876_v44 = vadd.f32 %v7704_v14, %v1956_v8  ;;  %v7879_v11 = vadd.f32 %v7692_v33, %v1469_v38  ;;  %v1416_v50 = vpop.f32.mrf.mxu0  ;;  %v1904_v20 = vpop.f32.mrf.mxu1 }
 0x3fd   :  { %v1550_v53 = vmax.f32 %v1548_v39, %v1549_v16  ;;  %v2038_v12 = vmax.f32 %v2036_v42, %v2037_v45  ;;  %v7882_v61 = vadd.f32 %v7696_v18, %v1957_v2  ;;  %vm7885_vm1 = vcmp.lt.s32.totalorder %v449_v0, 256 }
 0x3fe   :  { %v1470_v56 = vmul.f32 %v7683_v10, %v1406_v48  ;;  %v1958_v17 = vmul.f32 %v7686_v41, %v1894_v49  ;;  %v7892_v63 = vadd.f32 %v7692_v33, %v1471_v29  ;;  %v7895_v23 = vadd.f32 %v7696_v18, %v1959_v24  ;;  %v1420_v40 = vpop.f32.mrf.mxu0  ;;  %v1908_v9 = vpop.f32.mrf.mxu1 }
 0x3ff   :  { %v1551_v62 = vrot.slane %v1550_v53, 1  ;;  %v2039_v54 = vrot.slane %v2038_v12, 1  ;;  %v7898_v57 = vadd.f32 %v7700_v27, %v1472_v60  ;;  %v7901_v0 = vadd.f32 %v7704_v14, %v1960_v35 }
 0x400   :  { %v1539_v25 = vmax.f32 %v1537_v30, %v1538_v58  ;;  %v2027_v48 = vmax.f32 %v2025_v47, %v2026_v28  ;;  %v1473_v49 = vmul.f32 %v7671_v7, %v1414_v6  ;;  %v1961_v3 = vmul.f32 %v7674_v46, %v1902_v19  ;;  %v1422_v2 = vpop.f32.mrf.mxu0  ;;  %v1910_v22 = vpop.f32.mrf.mxu1 }
 0x401   :  { %v1552_v8 = vmax.f32 %v1550_v53, %v1551_v62  ;;  %v2040_v39 = vmax.f32 %v2038_v12, %v2039_v54  ;;  %v1474_v42 = vmul.f32 %v7683_v10, %v1416_v50  ;;  %v1962_v38 = vmul.f32 %v7686_v41, %v1904_v20 }
 0x402   :  { %v7908_v5 = vadd.f32 %v7700_v27, %v1470_v56  ;;  %v7911_v29 = vadd.f32 %v7704_v14, %v1958_v17  ;;  %v1475_v30 = vmul.f32 %v7671_v7, %v1420_v40  ;;  %v1963_v47 = vmul.f32 %v7674_v46, %v1908_v9  ;;  %v1424_v35 = vpop.f32.mrf.mxu0  ;;  %v1912_v6 = vpop.f32.mrf.mxu1 }
 0x403   :  { %v1555_v24 = vcombine.low %v1539_v25, %v1552_v8  ;;  %v2043_v16 = vcombine.low %v2027_v48, %v2040_v39  ;;  %v1576_v45 = vmax.f32 %v7859_v36, %v7892_v63  ;;  %v2061_v60 = vmax.f32 %v7862_v26, %v7895_v23 }
 0x404   :  { %v1589_v19 = vmax.f32 %v7873_v55, %v7898_v57  ;;  %v2074_v58 = vmax.f32 %v7876_v44, %v7901_v0  ;;  %v1517_v28 = vadd.f32 %v7692_v33, %v1473_v49  ;;  %v2005_v53 = vadd.f32 %v7696_v18, %v1961_v3  ;;  %v1426_v20 = vpop.f32.mrf.mxu0  ;;  %v1914_v56 = vpop.f32.mrf.mxu1 }
 0x405   :  { %v1562_v12 = vrot.slane %v1555_v24, %v7840_v37  ;;  %v2050_v50 = vrot.slane %v2043_v16, %v7840_v37  ;;  %v1518_v36 = vadd.f32 %v7700_v27, %v1474_v42  ;;  %v2006_v26 = vadd.f32 %v7704_v14, %v1962_v38 }
 0x406   :  { %v1519_v17 = vadd.f32 %v7692_v33, %v1475_v30  ;;  %v2007_v55 = vadd.f32 %v7696_v18, %v1963_v47  ;;  %v1477_v44 = vmul.f32 %v7671_v7, %v1424_v35  ;;  %v1965_v63 = vmul.f32 %v7674_v46, %v1912_v6  ;;  %v1430_v0 = vpop.f32.mrf.mxu0  ;;  %v1918_v40 = vpop.f32.mrf.mxu1 }
 0x407   :  { %v1569_v23 = vrot.slane %v1562_v12, %v7840_v37  ;;  %v2057_v62 = vrot.slane %v2050_v50, %v7840_v37  ;;  %v1476_v54 = vmul.f32 %v7683_v10, %v1422_v2  ;;  %v1964_v57 = vmul.f32 %v7686_v41, %v1910_v22 }
 0x408   :  { %v1577_v9 = vmax.f32 %v7879_v11, %v1517_v28  ;;  %v2062_v25 = vmax.f32 %v7882_v61, %v2005_v53  ;;  %v1478_v48 = vmul.f32 %v7683_v10, %v1426_v20  ;;  %v1966_v49 = vmul.f32 %v7686_v41, %v1914_v56  ;;  %v1432_v42 = vpop.f32.mrf.mxu0  ;;  %v1920_v61 = vpop.f32.mrf.mxu1 }
 0x409   :  { %1575 = vst.msk [vmem:[#allocation23] ss:$2 sm:$0x3] %vm7885_vm1, %v1569_v23  ;;  %2060 = vst.msk [vmem:[#allocation23 + $0x4] ss:$2 sm:$0x3] %vm7885_vm1, %v2057_v62  ;;  %v1521_v3 = vadd.f32 %v7692_v33, %v1477_v44  ;;  %v2009_v8 = vadd.f32 %v7696_v18, %v1965_v63  ;;  %v1479_v39 = vmul.f32 %v7671_v7, %v1430_v0 }
 0x40a   :  { %v1967_v11 = vmul.f32 %v7674_v46, %v1918_v40  ;;  %v1590_v38 = vmax.f32 %v7908_v5, %v1518_v36  ;;  %v2075_v2 = vmax.f32 %v7911_v29, %v2006_v26  ;;  %v1480_v22 = vmul.f32 %v7683_v10, %v1432_v42  ;;  %v1434_v6 = vpop.f32.mrf.mxu0  ;;  %v1922_v28 = vpop.f32.mrf.mxu1 }
 0x40b   :  { %v1968_v30 = vmul.f32 %v7686_v41, %v1920_v61  ;;  %v1578_v47 = vmax.f32 %v1576_v45, %v1519_v17  ;;  %v2063_v24 = vmax.f32 %v2061_v60, %v2007_v55  ;;  %v1520_v16 = vadd.f32 %v7700_v27, %v1476_v54 }
 0x40c   :  { %v2008_v35 = vadd.f32 %v7704_v14, %v1964_v57  ;;  %v1523_v53 = vadd.f32 %v7692_v33, %v1479_v39  ;;  %v2011_v12 = vadd.f32 %v7696_v18, %v1967_v11  ;;  %v1481_v5 = vmul.f32 %v7671_v7, %v1434_v6  ;;  %v1436_v60 = vpop.f32.mrf.mxu0  ;;  %v1924_v20 = vpop.f32.mrf.mxu1 }
 0x40d   :  { %v1969_v29 = vmul.f32 %v7674_v46, %v1922_v28  ;;  %v1579_v50 = vmax.f32 %v1577_v9, %v1521_v3  ;;  %v2064_v36 = vmax.f32 %v2062_v25, %v2009_v8  ;;  %v1522_v26 = vadd.f32 %v7700_v27, %v1478_v48 }
 0x40e   :  { %v2010_v45 = vadd.f32 %v7704_v14, %v1966_v49  ;;  %v1524_v56 = vadd.f32 %v7700_v27, %v1480_v22  ;;  %v2012_v17 = vadd.f32 %v7704_v14, %v1968_v30  ;;  %v1525_v55 = vadd.f32 %v7692_v33, %v1481_v5  ;;  %v2333_v62 = vpop.f32.mrf.mxu0  ;;  %v2818_v54 = vpop.f32.mrf.mxu1 }
 0x40f   :  { %v2013_v44 = vadd.f32 %v7696_v18, %v1969_v29  ;;  %v1591_v63 = vmax.f32 %v1589_v19, %v1520_v16  ;;  %v2076_v7 = vmax.f32 %v2074_v58, %v2008_v35  ;;  %v1482_v46 = vmul.f32 %v7683_v10, %v1436_v60 }
 0x410   :  { %v1970_v23 = vmul.f32 %v7686_v41, %v1924_v20  ;;  %v1580_v57 = vmax.f32 %v1578_v47, %v1523_v53  ;;  %v2065_v0 = vmax.f32 %v2063_v24, %v2011_v12  ;;  %v1581_v40 = vmax.f32 %v1579_v50, %v1525_v55  ;;  %v2335_v3 = vpop.f32.mrf.mxu0  ;;  %v2820_v18 = vpop.f32.mrf.mxu1 }
 0x411   :  { %v2066_v9 = vmax.f32 %v2064_v36, %v2013_v44  ;;  %v1592_v25 = vmax.f32 %v1590_v38, %v1522_v26  ;;  %v2077_v48 = vmax.f32 %v2075_v2, %v2010_v45  ;;  %v1526_v49 = vadd.f32 %v7700_v27, %v1482_v46 }
 0x412   :  { %v2014_v33 = vadd.f32 %v7704_v14, %v1970_v23  ;;  %v1593_v19 = vmax.f32 %v1591_v63, %v1524_v56  ;;  %v2078_v58 = vmax.f32 %v2076_v7, %v2012_v17  ;;  %v1582_v8 = vmax.f32 %v1580_v57, %v1581_v40  ;;  %v2337_v61 = vpop.f32.mrf.mxu0  ;;  %v2822_v22 = vpop.f32.mrf.mxu1 }
 0x413   :  { %v2067_v10 = vmax.f32 %v2065_v0, %v2066_v9  ;;  %v1594_v39 = vmax.f32 %v1592_v25, %v1526_v49  ;;  %v2424_v11 = vmul.f32 %v7844_v31, %v2333_v62  ;;  %v2909_v42 = vmul.f32 %v7848_v34, %v2818_v54 }
 0x414   :  { %v2079_v41 = vmax.f32 %v2077_v48, %v2014_v33  ;;  %v1583_v38 = vrot.slane %v1582_v8, 4  ;;  %v7973_v27 = vrot.slane %v7818_v13, %v7493_v51  ;;  %v7977_v14 = vrot.slane %v7823_v32, %v7493_v51  ;;  %v2339_v24 = vpop.f32.mrf.mxu0  ;;  %v2824_v16 = vpop.f32.mrf.mxu1 }
 0x415   :  { %v2068_v2 = vrot.slane %v2067_v10, 4  ;;  %v1595_v30 = vmax.f32 %v1593_v19, %v1594_v39  ;;  %v7981_v28 = vrot.slane %v7830_v59, %v7493_v51  ;;  %v7985_v53 = vrot.slane %v7835_v43, %v7493_v51 }
 0x416   :  { %v2080_v47 = vmax.f32 %v2078_v58, %v2079_v41  ;;  %v1584_v35 = vmax.f32 %v1582_v8, %v1583_v38  ;;  %v7988_v5 = vadd.f32 %v7852_v15, %v2424_v11  ;;  %v7991_v32 = vadd.f32 %v7856_v1, %v2909_v42  ;;  %v2343_v29 = vpop.f32.mrf.mxu0  ;;  %v2828_v50 = vpop.f32.mrf.mxu1 }
 0x417   :  { %v2069_v6 = vmax.f32 %v2067_v10, %v2068_v2  ;;  %v1596_v13 = vrot.slane %v1595_v30, 4  ;;  %v2425_v45 = vmul.f32 %v7973_v27, %v2335_v3  ;;  %v2910_v59 = vmul.f32 %v7977_v14, %v2820_v18 }
 0x418   :  { %v2081_v12 = vrot.slane %v2080_v47, 4  ;;  %v1585_v36 = vrot.slane %v1584_v35, 2  ;;  %v2426_v43 = vmul.f32 %v7844_v31, %v2337_v61  ;;  %v2911_v56 = vmul.f32 %v7848_v34, %v2822_v22  ;;  %v2345_v17 = vpop.f32.mrf.mxu0  ;;  %v2830_v55 = vpop.f32.mrf.mxu1 }
 0x419   :  { %v2070_v26 = vrot.slane %v2069_v6, 2  ;;  %v1597_v60 = vmax.f32 %v1595_v30, %v1596_v13  ;;  %v2428_v7 = vmul.f32 %v7844_v31, %v2343_v29  ;;  %v2913_v46 = vmul.f32 %v7848_v34, %v2828_v50 }
 0x41a   :  { %v2082_v20 = vmax.f32 %v2080_v47, %v2081_v12  ;;  %v1586_v44 = vmax.f32 %v1584_v35, %v1585_v36  ;;  %v2429_v54 = vmul.f32 %v7973_v27, %v2345_v17  ;;  %v2914_v57 = vmul.f32 %v7977_v14, %v2830_v55  ;;  %v2347_v0 = vpop.f32.mrf.mxu0  ;;  %v2832_v40 = vpop.f32.mrf.mxu1 }
 0x41b   :  { %v2071_v63 = vmax.f32 %v2069_v6, %v2070_v26  ;;  %v1598_v23 = vrot.slane %v1597_v60, 2  ;;  %v8002_v48 = vadd.f32 %v7981_v28, %v2425_v45  ;;  %v8005_v49 = vadd.f32 %v7985_v53, %v2910_v59 }
 0x41c   :  { %v2083_v62 = vrot.slane %v2082_v20, 2  ;;  %v1587_v9 = vrot.slane %v1586_v44, 1  ;;  %v8008_v18 = vadd.f32 %v7852_v15, %v2426_v43  ;;  %v8011_v19 = vadd.f32 %v7856_v1, %v2911_v56  ;;  %v2349_v58 = vpop.f32.mrf.mxu0  ;;  %v2834_v8 = vpop.f32.mrf.mxu1 }
 0x41d   :  { %v2072_v25 = vrot.slane %v2071_v63, 1  ;;  %v1599_v33 = vmax.f32 %v1597_v60, %v1598_v23  ;;  %v2427_v10 = vmul.f32 %v7973_v27, %v2339_v24  ;;  %v2912_v39 = vmul.f32 %v7977_v14, %v2824_v16 }
 0x41e   :  { %v2084_v3 = vmax.f32 %v2082_v20, %v2083_v62  ;;  %v8016_v41 = vadd.f32 %v7852_v15, %v2428_v7  ;;  %v8019_v11 = vadd.f32 %v7856_v1, %v2913_v46  ;;  %v8022_v22 = vadd.f32 %v7981_v28, %v2429_v54  ;;  %v2353_v2 = vpop.f32.mrf.mxu0  ;;  %v2838_v30 = vpop.f32.mrf.mxu1 }
 0x41f   :  { %v1600_v42 = vrot.slane %v1599_v33, 1  ;;  %v8025_v38 = vadd.f32 %v7985_v53, %v2914_v57  ;;  %v1588_v47 = vmax.f32 %v1586_v44, %v1587_v9  ;;  %v2073_v24 = vmax.f32 %v2071_v63, %v2072_v25 }
 0x420   :  { %v2085_v61 = vrot.slane %v2084_v3, 1  ;;  %v2430_v16 = vmul.f32 %v7844_v31, %v2347_v0  ;;  %v2915_v35 = vmul.f32 %v7848_v34, %v2832_v40  ;;  %v2431_v12 = vmul.f32 %v7973_v27, %v2349_v58  ;;  %v2355_v50 = vpop.f32.mrf.mxu0  ;;  %v2840_v36 = vpop.f32.mrf.mxu1 }
 0x421   :  { %v1601_v6 = vmax.f32 %v1599_v33, %v1600_v42  ;;  %v2916_v29 = vmul.f32 %v7977_v14, %v2834_v8  ;;  %v8032_v26 = vadd.f32 %v7981_v28, %v2427_v10  ;;  %v8035_v45 = vadd.f32 %v7985_v53, %v2912_v39 }
 0x422   :  { %v2086_v13 = vmax.f32 %v2084_v3, %v2085_v61  ;;  %v2432_v59 = vmul.f32 %v7844_v31, %v2353_v2  ;;  %v2917_v60 = vmul.f32 %v7848_v34, %v2838_v30  ;;  %v2500_v56 = vmax.f32 %v7988_v5, %v8016_v41  ;;  %v2357_v55 = vpop.f32.mrf.mxu0  ;;  %v2842_v44 = vpop.f32.mrf.mxu1 }
 0x423   :  { %v1604_v20 = vcombine.low %v1588_v47, %v1601_v6  ;;  %v2985_v17 = vmax.f32 %v7991_v32, %v8019_v11  ;;  %v2513_v63 = vmax.f32 %v8002_v48, %v8022_v22  ;;  %v2998_v7 = vmax.f32 %v8005_v49, %v8025_v38 }
 0x424   :  { %v2089_v43 = vcombine.low %v2073_v24, %v2086_v13  ;;  %v2474_v46 = vadd.f32 %v7852_v15, %v2430_v16  ;;  %v2959_v23 = vadd.f32 %v7856_v1, %v2915_v35  ;;  %v2475_v5 = vadd.f32 %v7981_v28, %v2431_v12  ;;  %v2359_v57 = vpop.f32.mrf.mxu0  ;;  %v2844_v0 = vpop.f32.mrf.mxu1 }
 0x425   :  { %v1611_v62 = vrot.slane %v1604_v20, %v7840_v37  ;;  %v2960_v32 = vadd.f32 %v7985_v53, %v2916_v29  ;;  %v2476_v40 = vadd.f32 %v7852_v15, %v2432_v59  ;;  %v2961_v9 = vadd.f32 %v7856_v1, %v2917_v60 }
 0x426   :  { %v2096_v54 = vrot.slane %v2089_v43, %v7840_v37  ;;  %v2434_v25 = vmul.f32 %v7844_v31, %v2357_v55  ;;  %v2919_v48 = vmul.f32 %v7848_v34, %v2842_v44  ;;  %v2433_v3 = vmul.f32 %v7973_v27, %v2355_v50  ;;  %v2363_v8 = vpop.f32.mrf.mxu0  ;;  %v2848_v10 = vpop.f32.mrf.mxu1 }
 0x427   :  { %v1618_v49 = vrot.slane %v1611_v62, %v7840_v37  ;;  %v2918_v58 = vmul.f32 %v7977_v14, %v2840_v36  ;;  %v2501_v39 = vmax.f32 %v8008_v18, %v2474_v46  ;;  %v2986_v41 = vmax.f32 %v8011_v19, %v2959_v23 }
 0x428   :  { %v2103_v33 = vrot.slane %v2096_v54, %v7840_v37  ;;  %v2435_v11 = vmul.f32 %v7973_v27, %v2359_v57  ;;  %v2920_v42 = vmul.f32 %v7977_v14, %v2844_v0  ;;  %v2478_v61 = vadd.f32 %v7852_v15, %v2434_v25  ;;  %v2365_v2 = vpop.f32.mrf.mxu0  ;;  %v2850_v19 = vpop.f32.mrf.mxu1 }
 0x429   :  { %1621 = vst.msk [vmem:[#allocation23 + $0x1] ss:$2 sm:$0x3] %vm7885_vm1, %v1618_v49  ;;  %v2963_v22 = vadd.f32 %v7856_v1, %v2919_v48  ;;  %v2436_v38 = vmul.f32 %v7844_v31, %v2363_v8  ;;  %v2921_v18 = vmul.f32 %v7848_v34, %v2848_v10  ;;  %v2514_v30 = vmax.f32 %v8032_v26, %v2475_v5 }
 0x42a   :  { %2106 = vst.msk [vmem:[#allocation23 + $0x5] ss:$2 sm:$0x3] %vm7885_vm1, %v2103_v33  ;;  %v2999_v47 = vmax.f32 %v8035_v45, %v2960_v32  ;;  %v2437_v24 = vmul.f32 %v7973_v27, %v2365_v2  ;;  %v2922_v16 = vmul.f32 %v7977_v14, %v2850_v19  ;;  %v2502_v35 = vmax.f32 %v2500_v56, %v2476_v40  ;;  %v2367_v29 = vpop.f32.mrf.mxu0  ;;  %v2852_v50 = vpop.f32.mrf.mxu1 }
 0x42b   :  { %v2987_v6 = vmax.f32 %v2985_v17, %v2961_v9  ;;  %v2477_v13 = vadd.f32 %v7981_v28, %v2433_v3  ;;  %v2962_v12 = vadd.f32 %v7985_v53, %v2918_v58  ;;  %v2480_v36 = vadd.f32 %v7852_v15, %v2436_v38 }
 0x42c   :  { %v2965_v59 = vadd.f32 %v7856_v1, %v2921_v18  ;;  %v2438_v26 = vmul.f32 %v7844_v31, %v2367_v29  ;;  %v2923_v45 = vmul.f32 %v7848_v34, %v2852_v50  ;;  %v2503_v60 = vmax.f32 %v2501_v39, %v2478_v61  ;;  %v2369_v17 = vpop.f32.mrf.mxu0  ;;  %v2854_v55 = vpop.f32.mrf.mxu1 }
 0x42d   :  { %v2988_v20 = vmax.f32 %v2986_v41, %v2963_v22  ;;  %v2479_v43 = vadd.f32 %v7981_v28, %v2435_v11  ;;  %v2964_v56 = vadd.f32 %v7985_v53, %v2920_v42  ;;  %v2481_v44 = vadd.f32 %v7981_v28, %v2437_v24 }
 0x42e   :  { %v2966_v46 = vadd.f32 %v7985_v53, %v2922_v16  ;;  %v2482_v23 = vadd.f32 %v7852_v15, %v2438_v26  ;;  %v2967_v62 = vadd.f32 %v7856_v1, %v2923_v45  ;;  %v2515_v54 = vmax.f32 %v2513_v63, %v2477_v13  ;;  %v2373_v0 = vpop.f32.mrf.mxu0  ;;  %v2858_v40 = vpop.f32.mrf.mxu1 }
 0x42f   :  { %v3000_v5 = vmax.f32 %v2998_v7, %v2962_v12  ;;  %v2439_v32 = vmul.f32 %v7973_v27, %v2369_v17  ;;  %v2924_v57 = vmul.f32 %v7977_v14, %v2854_v55  ;;  %v2504_v9 = vmax.f32 %v2502_v35, %v2480_v36 }
 0x430   :  { %v2989_v25 = vmax.f32 %v2987_v6, %v2965_v59  ;;  %v2505_v48 = vmax.f32 %v2503_v60, %v2482_v23  ;;  %v2990_v49 = vmax.f32 %v2988_v20, %v2967_v62  ;;  %v2516_v33 = vmax.f32 %v2514_v30, %v2479_v43  ;;  %v2375_v10 = vpop.f32.mrf.mxu0  ;;  %v2860_v39 = vpop.f32.mrf.mxu1 }
 0x431   :  { %v3001_v3 = vmax.f32 %v2999_v47, %v2964_v56  ;;  %v2483_v58 = vadd.f32 %v7981_v28, %v2439_v32  ;;  %v2968_v8 = vadd.f32 %v7985_v53, %v2924_v57  ;;  %v2517_v63 = vmax.f32 %v2515_v54, %v2481_v44 }
 0x432   :  { %v3002_v7 = vmax.f32 %v3000_v5, %v2966_v46  ;;  %v2506_v41 = vmax.f32 %v2504_v9, %v2505_v48  ;;  %v2991_v11 = vmax.f32 %v2989_v25, %v2990_v49  ;;  %v2440_v22 = vmul.f32 %v7844_v31, %v2373_v0  ;;  %v2377_v18 = vpop.f32.mrf.mxu0  ;;  %v2862_v2 = vpop.f32.mrf.mxu1 }
 0x433   :  { %v2518_v42 = vmax.f32 %v2516_v33, %v2483_v58  ;;  %v3003_v61 = vmax.f32 %v3001_v3, %v2968_v8  ;;  %v2925_v38 = vmul.f32 %v7848_v34, %v2858_v40  ;;  %v2441_v20 = vmul.f32 %v7973_v27, %v2375_v10 }
 0x434   :  { %v2507_v19 = vrot.slane %v2506_v41, 4  ;;  %v2992_v30 = vrot.slane %v2991_v11, 4  ;;  %v2379_v16 = vpop.f32.mrf.mxu0  ;;  %v2864_v35 = vpop.f32.mrf.mxu1  ;;  %v8096_v50 = vadd.f32 %v7852_v15, %v2440_v22  ;;  %v2926_v43 = vmul.f32 %v7977_v14, %v2860_v39 }
 0x435   :  { %v2519_v47 = vmax.f32 %v2517_v63, %v2518_v42  ;;  %v3004_v24 = vmax.f32 %v3002_v7, %v3003_v61  ;;  %v8099_v36 = vadd.f32 %v7856_v1, %v2925_v38  ;;  %v2442_v55 = vmul.f32 %v7844_v31, %v2377_v18 }
 0x436   :  { %v2508_v6 = vmax.f32 %v2506_v41, %v2507_v19  ;;  %v2993_v13 = vmax.f32 %v2991_v11, %v2992_v30  ;;  %v2383_v59 = vpop.f32.mrf.mxu0  ;;  %v2868_v26 = vpop.f32.mrf.mxu1  ;;  %v2927_v44 = vmul.f32 %v7848_v34, %v2862_v2  ;;  %v2443_v40 = vmul.f32 %v7973_v27, %v2379_v16 }
 0x437   :  { %v2520_v12 = vrot.slane %v2519_v47, 4  ;;  %v3005_v29 = vrot.slane %v3004_v24, 4  ;;  %v2444_v5 = vmul.f32 %v7844_v31, %v2383_v59  ;;  %v2929_v32 = vmul.f32 %v7848_v34, %v2868_v26 }
 0x438   :  { %v2509_v45 = vrot.slane %v2508_v6, 2  ;;  %v2994_v60 = vrot.slane %v2993_v13, 2  ;;  %v2385_v46 = vpop.f32.mrf.mxu0  ;;  %v2870_v23 = vpop.f32.mrf.mxu1  ;;  %v2928_v9 = vmul.f32 %v7977_v14, %v2864_v35  ;;  %v8110_v49 = vadd.f32 %v7981_v28, %v2441_v20 }
 0x439   :  { %v2521_v56 = vmax.f32 %v2519_v47, %v2520_v12  ;;  %v3006_v17 = vmax.f32 %v3004_v24, %v3005_v29  ;;  %v8113_v33 = vadd.f32 %v7985_v53, %v2926_v43  ;;  %v2445_v3 = vmul.f32 %v7973_v27, %v2385_v46 }
 0x43a   :  { %v2510_v62 = vmax.f32 %v2508_v6, %v2509_v45  ;;  %v2995_v54 = vmax.f32 %v2993_v13, %v2994_v60  ;;  %v2387_v25 = vpop.f32.mrf.mxu0  ;;  %v2872_v48 = vpop.f32.mrf.mxu1  ;;  %v2930_v58 = vmul.f32 %v7977_v14, %v2870_v23  ;;  %v8118_v11 = vadd.f32 %v7852_v15, %v2442_v55 }
 0x43b   :  { %v2522_v57 = vrot.slane %v2521_v56, 2  ;;  %v3007_v0 = vrot.slane %v3006_v17, 2  ;;  %v8121_v42 = vadd.f32 %v7856_v1, %v2927_v44  ;;  %v8124_v61 = vadd.f32 %v7852_v15, %v2444_v5 }
 0x43c   :  { %v2511_v8 = vrot.slane %v2510_v62, 1  ;;  %v2996_v10 = vrot.slane %v2995_v54, 1  ;;  %v2389_v7 = vpop.f32.mrf.mxu0  ;;  %v2874_v41 = vpop.f32.mrf.mxu1  ;;  %v8127_v22 = vadd.f32 %v7856_v1, %v2929_v32  ;;  %v8130_v2 = vadd.f32 %v7981_v28, %v2443_v40 }
 0x43d   :  { %v2523_v39 = vmax.f32 %v2521_v56, %v2522_v57  ;;  %v3008_v63 = vmax.f32 %v3006_v17, %v3007_v0  ;;  %v8133_v19 = vadd.f32 %v7985_v53, %v2928_v9  ;;  %v8136_v24 = vadd.f32 %v7981_v28, %v2445_v3 }
 0x43e   :  { %v2393_v30 = vpop.f32.mrf.mxu0  ;;  %v2878_v47 = vpop.f32.mrf.mxu1  ;;  %v8139_v16 = vadd.f32 %v7985_v53, %v2930_v58  ;;  %v2446_v35 = vmul.f32 %v7844_v31, %v2387_v25  ;;  %v2931_v6 = vmul.f32 %v7848_v34, %v2872_v48  ;;  %v2512_v13 = vmax.f32 %v2510_v62, %v2511_v8 }
 0x43f   :  { %v2524_v38 = vrot.slane %v2523_v39, 1  ;;  %v3009_v18 = vrot.slane %v3008_v63, 1  ;;  %v2997_v12 = vmax.f32 %v2995_v54, %v2996_v10  ;;  %v2546_v60 = vmax.f32 %v8096_v50, %v8124_v61 }
 0x440   :  { %v2395_v26 = vpop.f32.mrf.mxu0  ;;  %v2880_v45 = vpop.f32.mrf.mxu1  ;;  %v3031_v20 = vmax.f32 %v8099_v36, %v8127_v22  ;;  %v2447_v43 = vmul.f32 %v7973_v27, %v2389_v7  ;;  %v2932_v56 = vmul.f32 %v7977_v14, %v2874_v41  ;;  %v2448_v44 = vmul.f32 %v7844_v31, %v2393_v30 }
 0x441   :  { %v2525_v29 = vmax.f32 %v2523_v39, %v2524_v38  ;;  %v3010_v59 = vmax.f32 %v3008_v63, %v3009_v18  ;;  %v2933_v46 = vmul.f32 %v7848_v34, %v2878_v47  ;;  %v2490_v54 = vadd.f32 %v7852_v15, %v2446_v35 }
 0x442   :  { %v2397_v23 = vpop.f32.mrf.mxu0  ;;  %v2882_v62 = vpop.f32.mrf.mxu1  ;;  %v2975_v5 = vadd.f32 %v7856_v1, %v2931_v6  ;;  %v2449_v50 = vmul.f32 %v7973_v27, %v2395_v26  ;;  %v2934_v36 = vmul.f32 %v7977_v14, %v2880_v45  ;;  %v2559_v0 = vmax.f32 %v8110_v49, %v8136_v24 }
 0x443   :  { %v2528_v17 = vcombine.low %v2512_v13, %v2525_v29  ;;  %v3013_v55 = vcombine.low %v2997_v12, %v3010_v59  ;;  %v3044_v40 = vmax.f32 %v8113_v33, %v8139_v16  ;;  %v2491_v48 = vadd.f32 %v7981_v28, %v2447_v43 }
 0x444   :  { %v2399_v9 = vpop.f32.mrf.mxu0  ;;  %v2884_v25 = vpop.f32.mrf.mxu1  ;;  %v2976_v3 = vadd.f32 %v7985_v53, %v2932_v56  ;;  %v2450_v58 = vmul.f32 %v7844_v31, %v2397_v23  ;;  %v2935_v8 = vmul.f32 %v7848_v34, %v2882_v62  ;;  %v2492_v63 = vadd.f32 %v7852_v15, %v2448_v44 }
 0x445   :  { %v2535_v32 = vrot.slane %v2528_v17, %v7840_v37  ;;  %v3020_v57 = vrot.slane %v3013_v55, %v7840_v37  ;;  %v2977_v49 = vadd.f32 %v7856_v1, %v2933_v46  ;;  %v2547_v41 = vmax.f32 %v8118_v11, %v2490_v54 }
 0x446   :  { %v2403_v7 = vpop.f32.mrf.mxu0  ;;  %v2888_v33 = vpop.f32.mrf.mxu1  ;;  %v3032_v61 = vmax.f32 %v8121_v42, %v2975_v5  ;;  %v2493_v22 = vadd.f32 %v7981_v28, %v2449_v50  ;;  %v2978_v38 = vadd.f32 %v7985_v53, %v2934_v36  ;;  %v2451_v18 = vmul.f32 %v7973_v27, %v2399_v9 }
 0x447   :  { %v2542_v10 = vrot.slane %v2535_v32, %v7840_v37  ;;  %v3027_v39 = vrot.slane %v3020_v57, %v7840_v37  ;;  %v2936_v30 = vmul.f32 %v7977_v14, %v2884_v25  ;;  %v2452_v47 = vmul.f32 %v7844_v31, %v2403_v7 }
 0x448   :  { %v2937_v11 = vmul.f32 %v7848_v34, %v2888_v33  ;;  %v2405_v24 = vpop.f32.mrf.mxu0  ;;  %v2890_v42 = vpop.f32.mrf.mxu1  ;;  %v2560_v16 = vmax.f32 %v8130_v2, %v2491_v48  ;;  %v3045_v35 = vmax.f32 %v8133_v19, %v2976_v3  ;;  %v2494_v6 = vadd.f32 %v7852_v15, %v2450_v58 }
 0x449   :  { %2545 = vst.msk [vmem:[#allocation23 + $0x8] ss:$2 sm:$0x3] %vm7885_vm1, %v2542_v10  ;;  %3030 = vst.msk [vmem:[#allocation23 + $0xc] ss:$2 sm:$0x3] %vm7885_vm1, %v3027_v39  ;;  %v2979_v13 = vadd.f32 %v7856_v1, %v2935_v8  ;;  %v2548_v12 = vmax.f32 %v2546_v60, %v2492_v63  ;;  %v3033_v29 = vmax.f32 %v3031_v20, %v2977_v49 }
 0x44a   :  { %v2453_v59 = vmul.f32 %v7973_v27, %v2405_v24  ;;  %v2938_v26 = vmul.f32 %v7977_v14, %v2890_v42  ;;  %v2407_v45 = vpop.f32.mrf.mxu0  ;;  %v2892_v43 = vpop.f32.mrf.mxu1  ;;  %v2496_v56 = vadd.f32 %v7852_v15, %v2452_v47  ;;  %v2981_v17 = vadd.f32 %v7856_v1, %v2937_v11 }
 0x44b   :  { %v2454_v2 = vmul.f32 %v7844_v31, %v2407_v45  ;;  %v2939_v19 = vmul.f32 %v7848_v34, %v2892_v43  ;;  %v2561_v55 = vmax.f32 %v2559_v0, %v2493_v22  ;;  %v3046_v44 = vmax.f32 %v3044_v40, %v2978_v38 }
 0x44c   :  { %v2495_v46 = vadd.f32 %v7981_v28, %v2451_v18  ;;  %v2980_v60 = vadd.f32 %v7985_v53, %v2936_v30  ;;  %v2409_v20 = vpop.f32.mrf.mxu0  ;;  %v2894_v23 = vpop.f32.mrf.mxu1  ;;  %v2549_v62 = vmax.f32 %v2547_v41, %v2494_v6  ;;  %v3034_v54 = vmax.f32 %v3032_v61, %v2979_v13 }
 0x44d   :  { %v2498_v5 = vadd.f32 %v7852_v15, %v2454_v2  ;;  %v2983_v50 = vadd.f32 %v7856_v1, %v2939_v19  ;;  %v2497_v36 = vadd.f32 %v7981_v28, %v2453_v59  ;;  %v2982_v31 = vadd.f32 %v7985_v53, %v2938_v26 }
 0x44e   :  { %v2455_v34 = vmul.f32 %v7973_v27, %v2409_v20  ;;  %v2940_v32 = vmul.f32 %v7977_v14, %v2894_v23  ;;  %v2550_v57 = vmax.f32 %v2548_v12, %v2496_v56  ;;  %v3035_v0 = vmax.f32 %v3033_v29, %v2981_v17 }
 0x44f   :  { %v2551_v40 = vmax.f32 %v2549_v62, %v2498_v5  ;;  %v3036_v9 = vmax.f32 %v3034_v54, %v2983_v50  ;;  %v2562_v25 = vmax.f32 %v2560_v16, %v2495_v46  ;;  %v3047_v48 = vmax.f32 %v3045_v35, %v2980_v60 }
 0x450   :  { %v2499_v3 = vadd.f32 %v7981_v28, %v2455_v34  ;;  %v2984_v15 = vadd.f32 %v7985_v53, %v2940_v32  ;;  %v2563_v8 = vmax.f32 %v2561_v55, %v2497_v36  ;;  %v3048_v10 = vmax.f32 %v3046_v44, %v2982_v31 }
 0x451   :  { %v2552_v58 = vmax.f32 %v2550_v57, %v2551_v40  ;;  %v3037_v1 = vmax.f32 %v3035_v0, %v3036_v9 }
 0x452   :  { %v2564_v39 = vmax.f32 %v2562_v25, %v2499_v3  ;;  %v3049_v63 = vmax.f32 %v3047_v48, %v2984_v15 }
 0x453   :  { %v2553_v49 = vrot.slane %v2552_v58, 4  ;;  %v3038_v27 = vrot.slane %v3037_v1, 4 }
 0x454   :  { %v2565_v7 = vmax.f32 %v2563_v8, %v2564_v39  ;;  %v3050_v14 = vmax.f32 %v3048_v10, %v3049_v63 }
 0x455   :  { %v2554_v33 = vmax.f32 %v2552_v58, %v2553_v49  ;;  %v3039_v41 = vmax.f32 %v3037_v1, %v3038_v27 }
 0x456   :  { %v2566_v61 = vrot.slane %v2565_v7, 4  ;;  %v3051_v22 = vrot.slane %v3050_v14, 4 }
 0x457   :  { %v2555_v38 = vrot.slane %v2554_v33, 2  ;;  %v3040_v18 = vrot.slane %v3039_v41, 2 }
 0x458   :  { %v2567_v30 = vmax.f32 %v2565_v7, %v2566_v61  ;;  %v3052_v28 = vmax.f32 %v3050_v14, %v3051_v22 }
 0x459   :  { %v2556_v47 = vmax.f32 %v2554_v33, %v2555_v38  ;;  %v3041_v53 = vmax.f32 %v3039_v41, %v3040_v18 }
 0x45a   :  { %v2568_v11 = vrot.slane %v2567_v30, 2  ;;  %v3053_v24 = vrot.slane %v3052_v28, 2 }
 0x45b   :  { %v2557_v42 = vrot.slane %v2556_v47, 1  ;;  %v3042_v16 = vrot.slane %v3041_v53, 1 }
 0x45c   :  { %v2569_v35 = vmax.f32 %v2567_v30, %v2568_v11  ;;  %v3054_v6 = vmax.f32 %v3052_v28, %v3053_v24 }
 0x45d   :  { %v2558_v29 = vmax.f32 %v2556_v47, %v2557_v42  ;;  %v3043_v59 = vmax.f32 %v3041_v53, %v3042_v16 }
 0x45e   :  { %v2570_v13 = vrot.slane %v2569_v35, 1  ;;  %v3055_v12 = vrot.slane %v3054_v6, 1 }
 0x460   :  { %v2571_v26 = vmax.f32 %v2569_v35, %v2570_v13  ;;  %v3056_v45 = vmax.f32 %v3054_v6, %v3055_v12 }
 0x462   :  { %v2574_v43 = vcombine.low %v2558_v29, %v2571_v26  ;;  %v3059_v56 = vcombine.low %v3043_v59, %v3056_v45 }
 0x464   :  { %v2581_v17 = vrot.slane %v2574_v43, %v7840_v37  ;;  %v3066_v2 = vrot.slane %v3059_v56, %v7840_v37 }
 0x466   :  { %v2588_v19 = vrot.slane %v2581_v17, %v7840_v37  ;;  %v3073_v55 = vrot.slane %v3066_v2, %v7840_v37 }
 0x468   :  { %2591 = vst.msk [vmem:[#allocation23 + $0x9] ss:$2 sm:$0x3] %vm7885_vm1, %v2588_v19  ;;  %3076 = vst.msk [vmem:[#allocation23 + $0xd] ss:$2 sm:$0x3] %vm7885_vm1, %v3073_v55 }
 0x469   :  { %7016 = dma.done.wait [#allocation4], 32768 }
 0x46a   :  { %7017 = vsyncadd [#allocation4], 4294934528  ;;  %v6222_v44 = vld [vmem:[#allocation2 + $0xe4] ss:$16 sps:$4 sm:$0xff]   ;;  %v6226_v60 = vld [vmem:[#allocation2 + $0xe0] ss:$16 sps:$4 sm:$0xff]  }
 0x46b   :  { %v6224_v46 = vld [vmem:[#allocation2 + $0x2e4] ss:$16 sps:$4 sm:$0xff]   ;;  %4671 = vmatprep.subr.bf16.mxu0 %v6222_v44  ;;  %v6227_v20 = vld [vmem:[#allocation2 + $0x2e0] ss:$16 sps:$4 sm:$0xff]   ;;  %v7044_v22 = vmov 1983009808  }
 0x46c   :  { %4712 = vmatprep.subr.bf16.mxu1 %v6224_v46  ;;  %v6228_v23 = vld [vmem:[#allocation2 + $0xc4] ss:$16 sps:$4 sm:$0xff]   ;;  %4672 = vmatpush1.bf16.msra.mxu0 %v6226_v60  ;;  %v6232_v54 = vld [vmem:[#allocation2 + $0xc0] ss:$16 sps:$4 sm:$0xff]   ;;  %v3087_v38 = vunpack.c.l.s4 %v7044_v22 }
 0x46d   :  { %4713 = vmatpush1.bf16.msra.mxu1 %v6227_v20  ;;  %v6230_v62 = vld [vmem:[#allocation2 + $0x2c4] ss:$16 sps:$4 sm:$0xff]   ;;  %4673 = vmatprep.subr.bf16.mxu0 %v6228_v23  ;;  %v6233_v37 = vld [vmem:[#allocation2 + $0x2c0] ss:$16 sps:$4 sm:$0xff]  }
 0x46e   :  { %4714 = vmatprep.subr.bf16.mxu1 %v6230_v62  ;;  %v6234_v5 = vld [vmem:[#allocation2 + $0xa4] ss:$16 sps:$4 sm:$0xff]   ;;  %v6238_v21 = vld [vmem:[#allocation2 + $0xa0] ss:$16 sps:$4 sm:$0xff]   ;;  %v3088_v47 = vunpack.c.0.s8 %v3087_v38 }
 0x46f   :  { %v6236_v50 = vld [vmem:[#allocation2 + $0x2a4] ss:$16 sps:$4 sm:$0xff]   ;;  %v6239_v36 = vld [vmem:[#allocation2 + $0x2a0] ss:$16 sps:$4 sm:$0xff]  }
 0x470   :  { %4674 = vmatpush1.bf16.msra.mxu0 %v6232_v54  ;;  %v6240_v31 = vld [vmem:[#allocation2 + $0x84] ss:$16 sps:$4 sm:$0xff]   ;;  %v6244_v32 = vld [vmem:[#allocation2 + $0x80] ss:$16 sps:$4 sm:$0xff]   ;;  %v8210_v35 = vsub.s32 %v3088_v47, %v7490_v52 }
 0x471   :  { %4715 = vmatpush1.bf16.msra.mxu1 %v6233_v37  ;;  %4675 = vmatprep.subr.bf16.mxu0 %v6234_v5  ;;  %v6242_v34 = vld [vmem:[#allocation2 + $0x284] ss:$16 sps:$4 sm:$0xff]   ;;  %v6245_v57 = vld [vmem:[#allocation2 + $0x280] ss:$16 sps:$4 sm:$0xff]  }
 0x472   :  { %4716 = vmatprep.subr.bf16.mxu1 %v6236_v50  ;;  %v6246_v0 = vld [vmem:[#allocation2 + $0x64] ss:$16 sps:$4 sm:$0xff]   ;;  %v6250_v9 = vld [vmem:[#allocation2 + $0x60] ss:$16 sps:$4 sm:$0xff]  }
 0x473   :  { %v6248_v40 = vld [vmem:[#allocation2 + $0x264] ss:$16 sps:$4 sm:$0xff]   ;;  %v6251_v25 = vld [vmem:[#allocation2 + $0x260] ss:$16 sps:$4 sm:$0xff]  }
 0x474   :  { %4676 = vmatpush1.bf16.msra.mxu0 %v6238_v21  ;;  %v6252_v48 = vld [vmem:[#allocation2 + $0x44] ss:$16 sps:$4 sm:$0xff]   ;;  %v6256_v15 = vld [vmem:[#allocation2 + $0x40] ss:$16 sps:$4 sm:$0xff]  }
 0x475   :  { %4717 = vmatpush1.bf16.msra.mxu1 %v6239_v36  ;;  %4677 = vmatprep.subr.bf16.mxu0 %v6240_v31  ;;  %v6254_v3 = vld [vmem:[#allocation2 + $0x244] ss:$16 sps:$4 sm:$0xff]   ;;  %v6257_v58 = vld [vmem:[#allocation2 + $0x240] ss:$16 sps:$4 sm:$0xff]  }
 0x476   :  { %4718 = vmatprep.subr.bf16.mxu1 %v6242_v34  ;;  %v6258_v1 = vld [vmem:[#allocation2 + $0x24] ss:$16 sps:$4 sm:$0xff]   ;;  %v6262_v10 = vld [vmem:[#allocation2 + $0x20] ss:$16 sps:$4 sm:$0xff]  }
 0x477   :  { %v6260_v8 = vld [vmem:[#allocation2 + $0x224] ss:$16 sps:$4 sm:$0xff]   ;;  %v6263_v39 = vld [vmem:[#allocation2 + $0x220] ss:$16 sps:$4 sm:$0xff]  }
 0x478   :  { %4678 = vmatpush1.bf16.msra.mxu0 %v6244_v32  ;;  %v6264_v63 = vld [vmem:[#allocation2 + $0x4] ss:$16 sps:$4 sm:$0xff]   ;;  %v6268_v27 = vld [vmem:[#allocation2] ss:$16 sps:$4 sm:$0xff]  }
 0x479   :  { %4719 = vmatpush1.bf16.msra.mxu1 %v6245_v57  ;;  %4679 = vmatprep.subr.bf16.mxu0 %v6246_v0  ;;  %v6266_v49 = vld [vmem:[#allocation2 + $0x204] ss:$16 sps:$4 sm:$0xff]   ;;  %v6269_v7 = vld [vmem:[#allocation2 + $0x200] ss:$16 sps:$4 sm:$0xff]  }
 0x47a   :  { %4720 = vmatprep.subr.bf16.mxu1 %v6248_v40  ;;  %v6270_v14 = vld [vmem:[#allocation2 + $0x1e4] ss:$16 sps:$4 sm:$0xff]   ;;  %v6274_v41 = vld [vmem:[#allocation2 + $0x1e0] ss:$16 sps:$4 sm:$0xff]  }
 0x47b   :  { %v6272_v33 = vld [vmem:[#allocation2 + $0x3e4] ss:$16 sps:$4 sm:$0xff]   ;;  %v6275_v61 = vld [vmem:[#allocation2 + $0x3e0] ss:$16 sps:$4 sm:$0xff]  }
 0x47c   :  { %4680 = vmatpush1.bf16.msra.mxu0 %v6250_v9  ;;  %v6276_v18 = vld [vmem:[#allocation2 + $0x1c4] ss:$16 sps:$4 sm:$0xff]   ;;  %v6280_v28 = vld [vmem:[#allocation2 + $0x1c0] ss:$16 sps:$4 sm:$0xff]  }
 0x47d   :  { %4721 = vmatpush1.bf16.msra.mxu1 %v6251_v25  ;;  %4681 = vmatprep.subr.bf16.mxu0 %v6252_v48  ;;  %v6278_v30 = vld [vmem:[#allocation2 + $0x3c4] ss:$16 sps:$4 sm:$0xff]   ;;  %v6281_v53 = vld [vmem:[#allocation2 + $0x3c0] ss:$16 sps:$4 sm:$0xff]  }
 0x47e   :  { %4722 = vmatprep.subr.bf16.mxu1 %v6254_v3  ;;  %v6282_v11 = vld [vmem:[#allocation2 + $0x1a4] ss:$16 sps:$4 sm:$0xff]   ;;  %v6286_v42 = vld [vmem:[#allocation2 + $0x1a0] ss:$16 sps:$4 sm:$0xff]  }
 0x47f   :  { %v6284_v24 = vld [vmem:[#allocation2 + $0x3a4] ss:$16 sps:$4 sm:$0xff]   ;;  %v6287_v16 = vld [vmem:[#allocation2 + $0x3a0] ss:$16 sps:$4 sm:$0xff]  }
 0x480   :  { %4682 = vmatpush1.bf16.msra.mxu0 %v6256_v15  ;;  %v6288_v6 = vld [vmem:[#allocation2 + $0x184] ss:$16 sps:$4 sm:$0xff]   ;;  %v6292_v29 = vld [vmem:[#allocation2 + $0x180] ss:$16 sps:$4 sm:$0xff]  }
 0x481   :  { %4723 = vmatpush1.bf16.msra.mxu1 %v6257_v58  ;;  %4683 = vmatprep.subr.bf16.mxu0 %v6258_v1  ;;  %v6290_v13 = vld [vmem:[#allocation2 + $0x384] ss:$16 sps:$4 sm:$0xff]   ;;  %v6293_v45 = vld [vmem:[#allocation2 + $0x380] ss:$16 sps:$4 sm:$0xff]  }
 0x482   :  { %4724 = vmatprep.subr.bf16.mxu1 %v6260_v8  ;;  %v3081_v12 = vld [vmem:[#allocation23] sm:$0xff] }
 0x483   :  { %v3092_v59 = vrot.slane %v3081_v12, %v8210_v35  ;;  %v3085_v26 = vcombine.high %v3081_v12, %v3081_v12  ;;  %v6294_v43 = vld [vmem:[#allocation2 + $0x164] ss:$16 sps:$4 sm:$0xff]   ;;  %v6298_v19 = vld [vmem:[#allocation2 + $0x160] ss:$16 sps:$4 sm:$0xff]  }
 0x484   :  { %4684 = vmatpush1.bf16.msra.mxu0 %v6262_v10  ;;  %v6296_v56 = vld [vmem:[#allocation2 + $0x364] ss:$16 sps:$4 sm:$0xff]   ;;  %v6299_v46 = vld [vmem:[#allocation2 + $0x360] ss:$16 sps:$4 sm:$0xff]  }
 0x485   :  { %4725 = vmatpush1.bf16.msra.mxu1 %v6263_v39  ;;  %4685 = vmatprep.subr.bf16.mxu0 %v6264_v63  ;;  %v3100_v17 = vcombine.high %v3092_v59, %v3092_v59  ;;  %v3099_v2 = vrot.slane %v3085_v26, %v8210_v35  ;;  %v6300_v60 = vld [vmem:[#allocation2 + $0x144] ss:$16 sps:$4 sm:$0xff]   ;;  %v6304_v62 = vld [vmem:[#allocation2 + $0x140] ss:$16 sps:$4 sm:$0xff]   ;;  %v8220_v40 = vpack.c.bf16 %v3092_v59, %v3092_v59 }
 0x486   :  { %4726 = vmatprep.subr.bf16.mxu1 %v6266_v49  ;;  %v6302_v20 = vld [vmem:[#allocation2 + $0x344] ss:$16 sps:$4 sm:$0xff]   ;;  %v6305_v54 = vld [vmem:[#allocation2 + $0x340] ss:$16 sps:$4 sm:$0xff]  }
 0x487   :  { %v8214_v55 = vpack.c.bf16 %v3100_v17, %v3100_v17  ;;  %v3101_v44 = vcombine.high %v3099_v2, %v3099_v2  ;;  %v6306_v37 = vld [vmem:[#allocation2 + $0x124] ss:$16 sps:$4 sm:$0xff]   ;;  %v6310_v50 = vld [vmem:[#allocation2 + $0x120] ss:$16 sps:$4 sm:$0xff]   ;;  %v8222_v9 = vpack.c.bf16 %v3099_v2, %v3099_v2 }
 0x488   :  { %4686 = vmatpush1.bf16.msra.mxu0 %v6268_v27  ;;  %v6308_v5 = vld [vmem:[#allocation2 + $0x324] ss:$16 sps:$4 sm:$0xff]   ;;  %v6311_v21 = vld [vmem:[#allocation2 + $0x320] ss:$16 sps:$4 sm:$0xff]  }
 0x489   :  { %4727 = vmatpush1.bf16.msra.mxu1 %v6269_v7  ;;  %4687 = vmatprep.subr.bf16.mxu0 %v6270_v14  ;;  %v8216_v23 = vpack.c.bf16 %v3101_v44, %v3101_v44  ;;  %v6312_v36 = vld [vmem:[#allocation2 + $0x104] ss:$16 sps:$4 sm:$0xff]   ;;  %v6316_v34 = vld [vmem:[#allocation2 + $0x100] ss:$16 sps:$4 sm:$0xff]  }
 0x48a   :  { %4728 = vmatprep.subr.bf16.mxu1 %v6272_v33  ;;  %4703 = vmatprep.mubr.bf16.mxu0 %v8214_v55  ;;  %v6314_v31 = vld [vmem:[#allocation2 + $0x304] ss:$16 sps:$4 sm:$0xff]   ;;  %v6317_v32 = vld [vmem:[#allocation2 + $0x300] ss:$16 sps:$4 sm:$0xff]  }
 0x48b   :  { %4744 = vmatprep.mubr.bf16.mxu1 %v8216_v23  ;;  %v6321_v57 = vld [vmem:[#allocation2 + $0x4e4] ss:$16 sps:$4 sm:$0xff]   ;;  %v6319_v25 = vld [vmem:[#allocation2 + $0x4e0] ss:$16 sps:$4 sm:$0xff]  }
 0x48c   :  { %4688 = vmatpush2.bf16.msra.mxu0 %v6274_v41  ;;  %v6324_v0 = vld [vmem:[#allocation2 + $0x6e4] ss:$16 sps:$4 sm:$0xff]   ;;  %v6322_v48 = vld [vmem:[#allocation2 + $0x6e0] ss:$16 sps:$4 sm:$0xff]  }
 0x48d   :  { %4729 = vmatpush2.bf16.msra.mxu1 %v6275_v61  ;;  %4689 = vmatprep.subr.bf16.mxu0 %v6276_v18  ;;  %v6327_v3 = vld [vmem:[#allocation2 + $0x4c4] ss:$16 sps:$4 sm:$0xff]   ;;  %v6325_v58 = vld [vmem:[#allocation2 + $0x4c0] ss:$16 sps:$4 sm:$0xff]  }
 0x48e   :  { %4730 = vmatprep.subr.bf16.mxu1 %v6278_v30  ;;  %v6330_v15 = vld [vmem:[#allocation2 + $0x6c4] ss:$16 sps:$4 sm:$0xff]   ;;  %v6328_v1 = vld [vmem:[#allocation2 + $0x6c0] ss:$16 sps:$4 sm:$0xff]  }
 0x48f   :  { %v6333_v8 = vld [vmem:[#allocation2 + $0x4a4] ss:$16 sps:$4 sm:$0xff]   ;;  %v6331_v39 = vld [vmem:[#allocation2 + $0x4a0] ss:$16 sps:$4 sm:$0xff]  }
 0x490   :  { %4690 = vmatpush2.bf16.msra.mxu0 %v6280_v28  ;;  %v6336_v10 = vld [vmem:[#allocation2 + $0x6a4] ss:$16 sps:$4 sm:$0xff]   ;;  %v6334_v63 = vld [vmem:[#allocation2 + $0x6a0] ss:$16 sps:$4 sm:$0xff]  }
 0x491   :  { %4731 = vmatpush2.bf16.msra.mxu1 %v6281_v53  ;;  %4691 = vmatprep.subr.bf16.mxu0 %v6282_v11  ;;  %v6339_v49 = vld [vmem:[#allocation2 + $0x484] ss:$16 sps:$4 sm:$0xff]   ;;  %v6337_v7 = vld [vmem:[#allocation2 + $0x480] ss:$16 sps:$4 sm:$0xff]  }
 0x492   :  { %4732 = vmatprep.subr.bf16.mxu1 %v6284_v24  ;;  %v6342_v27 = vld [vmem:[#allocation2 + $0x684] ss:$16 sps:$4 sm:$0xff]   ;;  %v6340_v14 = vld [vmem:[#allocation2 + $0x680] ss:$16 sps:$4 sm:$0xff]  }
 0x493   :  { %v6345_v33 = vld [vmem:[#allocation2 + $0x464] ss:$16 sps:$4 sm:$0xff]   ;;  %v6343_v61 = vld [vmem:[#allocation2 + $0x460] ss:$16 sps:$4 sm:$0xff]  }
 0x494   :  { %4692 = vmatpush2.bf16.msra.mxu0 %v6286_v42  ;;  %v6348_v41 = vld [vmem:[#allocation2 + $0x664] ss:$16 sps:$4 sm:$0xff]   ;;  %v6346_v22 = vld [vmem:[#allocation2 + $0x660] ss:$16 sps:$4 sm:$0xff]  }
 0x495   :  { %4733 = vmatpush2.bf16.msra.mxu1 %v6287_v16  ;;  %4693 = vmatprep.subr.bf16.mxu0 %v6288_v6  ;;  %v6351_v38 = vld [vmem:[#allocation2 + $0x444] ss:$16 sps:$4 sm:$0xff]   ;;  %v6349_v30 = vld [vmem:[#allocation2 + $0x440] ss:$16 sps:$4 sm:$0xff]  }
 0x496   :  { %4734 = vmatprep.subr.bf16.mxu1 %v6290_v13  ;;  %v6354_v18 = vld [vmem:[#allocation2 + $0x644] ss:$16 sps:$4 sm:$0xff]   ;;  %v6352_v28 = vld [vmem:[#allocation2 + $0x640] ss:$16 sps:$4 sm:$0xff]  }
 0x497   :  { %v6357_v47 = vld [vmem:[#allocation2 + $0x424] ss:$16 sps:$4 sm:$0xff]   ;;  %v3082_v11 = vld [vmem:[#allocation23 + $0x8] sm:$0xff] }
 0x498   :  { %4694 = vmatpush2.bf16.msra.mxu0 %v6292_v29  ;;  %v6360_v53 = vld [vmem:[#allocation2 + $0x624] ss:$16 sps:$4 sm:$0xff]   ;;  %v8227_v24 = vrot.slane %v3082_v11, %v8210_v35  ;;  %v3102_v42 = vcombine.high %v3082_v11, %v3082_v11  ;;  %v6355_v16 = vld [vmem:[#allocation2 + $0x420] ss:$16 sps:$4 sm:$0xff]   ;;  %v6433_v11 = vld [vmem:[#allocation2 + $0x2ac] ss:$16 sps:$4 sm:$0xff]  }
 0x499   :  { %4735 = vmatpush2.bf16.msra.mxu1 %v6293_v45  ;;  %4695 = vmatprep.subr.bf16.mxu0 %v6294_v43  ;;  %v6358_v6 = vld [vmem:[#allocation2 + $0x620] ss:$16 sps:$4 sm:$0xff]   ;;  %v6363_v29 = vld [vmem:[#allocation2 + $0x404] ss:$16 sps:$4 sm:$0xff]  }
 0x49a   :  { %4736 = vmatprep.subr.bf16.mxu1 %v6296_v56  ;;  %v3117_v13 = vcombine.high %v8227_v24, %v8227_v24  ;;  %v8232_v12 = vrot.slane %v3102_v42, %v8210_v35  ;;  %v6366_v59 = vld [vmem:[#allocation2 + $0x604] ss:$16 sps:$4 sm:$0xff]   ;;  %v6361_v43 = vld [vmem:[#allocation2 + $0x400] ss:$16 sps:$4 sm:$0xff]   ;;  %v6431_v42 = vld [vmem:[#allocation2 + $0x2a8] ss:$16 sps:$4 sm:$0xff]  }
 0x49b   :  { %v6364_v56 = vld [vmem:[#allocation2 + $0x600] ss:$16 sps:$4 sm:$0xff]   ;;  %v6369_v2 = vld [vmem:[#allocation2 + $0x5e4] ss:$16 sps:$4 sm:$0xff]  }
 0x49c   :  { %4696 = vmatpush2.bf16.msra.mxu0 %v6298_v19  ;;  %v8234_v26 = vpack.c.bf16 %v3117_v13, %v3117_v13  ;;  %v3118_v45 = vcombine.high %v8232_v12, %v8232_v12  ;;  %v6372_v35 = vld [vmem:[#allocation2 + $0x7e4] ss:$16 sps:$4 sm:$0xff]   ;;  %v6367_v19 = vld [vmem:[#allocation2 + $0x5e0] ss:$16 sps:$4 sm:$0xff]   ;;  %v6434_v13 = vld [vmem:[#allocation2 + $0x88] ss:$16 sps:$4 sm:$0xff]  }
 0x49d   :  { %4737 = vmatpush2.bf16.msra.mxu1 %v6299_v46  ;;  %4697 = vmatprep.subr.bf16.mxu0 %v6300_v60  ;;  %v6370_v44 = vld [vmem:[#allocation2 + $0x7e0] ss:$16 sps:$4 sm:$0xff]   ;;  %v6375_v46 = vld [vmem:[#allocation2 + $0x5c4] ss:$16 sps:$4 sm:$0xff]  }
 0x49e   :  { %4738 = vmatprep.subr.bf16.mxu1 %v6302_v20  ;;  %v8238_v17 = vpack.c.bf16 %v3118_v45, %v3118_v45  ;;  %v6378_v60 = vld [vmem:[#allocation2 + $0x7c4] ss:$16 sps:$4 sm:$0xff]   ;;  %v6373_v20 = vld [vmem:[#allocation2 + $0x5c0] ss:$16 sps:$4 sm:$0xff]   ;;  %v6448_v45 = vld [vmem:[#allocation2 + $0x4c] ss:$16 sps:$4 sm:$0xff]  }
 0x4a0   :  { %4698 = vmatpush2.bf16.msra.mxu0 %v6304_v62  ;;  %v6376_v62 = vld [vmem:[#allocation2 + $0x7c0] ss:$16 sps:$4 sm:$0xff]  }
 0x4a1   :  { %4739 = vmatpush2.bf16.msra.mxu1 %v6305_v54  ;;  %4699 = vmatprep.subr.bf16.mxu0 %v6306_v37  ;;  %v6381_v54 = vld [vmem:[#allocation2 + $0x5a4] ss:$16 sps:$4 sm:$0xff]  }
 0x4a2   :  { %4740 = vmatprep.subr.bf16.mxu1 %v6308_v5  ;;  %v6384_v37 = vld [vmem:[#allocation2 + $0x7a4] ss:$16 sps:$4 sm:$0xff]   ;;  %v6379_v5 = vld [vmem:[#allocation2 + $0x5a0] ss:$16 sps:$4 sm:$0xff]  }
 0x4a4   :  { %4700 = vmatpush2.bf16.msra.mxu0 %v6310_v50  ;;  %v6382_v50 = vld [vmem:[#allocation2 + $0x7a0] ss:$16 sps:$4 sm:$0xff]  }
 0x4a5   :  { %4741 = vmatpush2.bf16.msra.mxu1 %v6311_v21  ;;  %4701 = vmatprep.subr.bf16.mxu0 %v6312_v36  ;;  %v6387_v21 = vld [vmem:[#allocation2 + $0x584] ss:$16 sps:$4 sm:$0xff]  }
 0x4a6   :  { %4742 = vmatprep.subr.bf16.mxu1 %v6314_v31  ;;  %v6390_v36 = vld [vmem:[#allocation2 + $0x784] ss:$16 sps:$4 sm:$0xff]   ;;  %v6385_v31 = vld [vmem:[#allocation2 + $0x580] ss:$16 sps:$4 sm:$0xff]  }
 0x4a8   :  { %4702 = vmatpush2.bf16.msra.mxu0 %v6316_v34  ;;  %v6388_v34 = vld [vmem:[#allocation2 + $0x780] ss:$16 sps:$4 sm:$0xff]  }
 0x4a9   :  { %4743 = vmatpush2.bf16.msra.mxu1 %v6317_v32  ;;  %4753 = vmatprep.subr.bf16.mxu0 %v6321_v57  ;;  %v6393_v32 = vld [vmem:[#allocation2 + $0x564] ss:$16 sps:$4 sm:$0xff]  }
 0x4aa   :  { %4794 = vmatprep.subr.bf16.mxu1 %v6324_v0  ;;  %v6396_v57 = vld [vmem:[#allocation2 + $0x764] ss:$16 sps:$4 sm:$0xff]   ;;  %v6391_v0 = vld [vmem:[#allocation2 + $0x560] ss:$16 sps:$4 sm:$0xff]  }
 0x4ab   :  { %4704 = vmatmul.mubr.bf16.vlgmr.msra.gmra.mxu0 %v8220_v40 }
 0x4ac   :  { %4745 = vmatmul.mubr.bf16.vlgmr.msra.gmra.mxu1 %v8222_v9  ;;  %4754 = vmatpush1.bf16.msra.mxu0 %v6319_v25  ;;  %v6394_v25 = vld [vmem:[#allocation2 + $0x760] ss:$16 sps:$4 sm:$0xff]  }
 0x4ad   :  { %4795 = vmatpush1.bf16.msra.mxu1 %v6322_v48  ;;  %4755 = vmatprep.subr.bf16.mxu0 %v6327_v3  ;;  %v6399_v48 = vld [vmem:[#allocation2 + $0x544] ss:$16 sps:$4 sm:$0xff]  }
 0x4ae   :  { %4796 = vmatprep.subr.bf16.mxu1 %v6330_v15  ;;  %4785 = vmatprep.mubr.bf16.mxu0 %v8234_v26  ;;  %v6402_v3 = vld [vmem:[#allocation2 + $0x744] ss:$16 sps:$4 sm:$0xff]   ;;  %v6397_v15 = vld [vmem:[#allocation2 + $0x540] ss:$16 sps:$4 sm:$0xff]  }
 0x4af   :  { %4826 = vmatprep.mubr.bf16.mxu1 %v8238_v17 }
 0x4b0   :  { %4756 = vmatpush1.bf16.msra.mxu0 %v6325_v58  ;;  %v6400_v58 = vld [vmem:[#allocation2 + $0x740] ss:$16 sps:$4 sm:$0xff]  }
 0x4b1   :  { %4797 = vmatpush1.bf16.msra.mxu1 %v6328_v1  ;;  %4757 = vmatprep.subr.bf16.mxu0 %v6333_v8  ;;  %v6405_v1 = vld [vmem:[#allocation2 + $0x524] ss:$16 sps:$4 sm:$0xff]  }
 0x4b2   :  { %4798 = vmatprep.subr.bf16.mxu1 %v6336_v10  ;;  %v6408_v8 = vld [vmem:[#allocation2 + $0x724] ss:$16 sps:$4 sm:$0xff]   ;;  %v6403_v10 = vld [vmem:[#allocation2 + $0x520] ss:$16 sps:$4 sm:$0xff]  }
 0x4b4   :  { %4758 = vmatpush1.bf16.msra.mxu0 %v6331_v39  ;;  %v6406_v39 = vld [vmem:[#allocation2 + $0x720] ss:$16 sps:$4 sm:$0xff]  }
 0x4b5   :  { %4799 = vmatpush1.bf16.msra.mxu1 %v6334_v63  ;;  %4759 = vmatprep.subr.bf16.mxu0 %v6339_v49  ;;  %v6411_v63 = vld [vmem:[#allocation2 + $0x504] ss:$16 sps:$4 sm:$0xff]  }
 0x4b6   :  { %4800 = vmatprep.subr.bf16.mxu1 %v6342_v27  ;;  %v6414_v49 = vld [vmem:[#allocation2 + $0x704] ss:$16 sps:$4 sm:$0xff]   ;;  %v6409_v27 = vld [vmem:[#allocation2 + $0x500] ss:$16 sps:$4 sm:$0xff]  }
 0x4b8   :  { %4760 = vmatpush1.bf16.msra.mxu0 %v6337_v7  ;;  %v6412_v7 = vld [vmem:[#allocation2 + $0x700] ss:$16 sps:$4 sm:$0xff]  }
 0x4b9   :  { %4801 = vmatpush1.bf16.msra.mxu1 %v6340_v14  ;;  %4761 = vmatprep.subr.bf16.mxu0 %v6345_v33  ;;  %v6418_v14 = vld [vmem:[#allocation2 + $0xec] ss:$16 sps:$4 sm:$0xff]  }
 0x4ba   :  { %4802 = vmatprep.subr.bf16.mxu1 %v6348_v41  ;;  %v6421_v33 = vld [vmem:[#allocation2 + $0x2ec] ss:$16 sps:$4 sm:$0xff]   ;;  %v8244_v41 = vpack.c.bf16 %v8227_v24, %v8227_v24  ;;  %v6428_v24 = vld [vmem:[#allocation2 + $0xa8] ss:$16 sps:$4 sm:$0xff]  }
 0x4bc   :  { %4762 = vmatpush1.bf16.msra.mxu0 %v6343_v61  ;;  %v8248_v61 = vpack.c.bf16 %v8232_v12, %v8232_v12  ;;  %v6437_v12 = vld [vmem:[#allocation2 + $0x288] ss:$16 sps:$4 sm:$0xff]  }
 0x4bd   :  { %4803 = vmatpush1.bf16.msra.mxu1 %v6346_v22  ;;  %4763 = vmatprep.subr.bf16.mxu0 %v6351_v38  ;;  %v6416_v22 = vld [vmem:[#allocation2 + $0xe8] ss:$16 sps:$4 sm:$0xff]  }
 0x4be   :  { %4804 = vmatprep.subr.bf16.mxu1 %v6354_v18  ;;  %v6419_v38 = vld [vmem:[#allocation2 + $0x2e8] ss:$16 sps:$4 sm:$0xff]   ;;  %v6424_v18 = vld [vmem:[#allocation2 + $0xcc] ss:$16 sps:$4 sm:$0xff]  }
 0x4c0   :  { %4764 = vmatpush1.bf16.msra.mxu0 %v6349_v30  ;;  %v6427_v30 = vld [vmem:[#allocation2 + $0x2cc] ss:$16 sps:$4 sm:$0xff]  }
 0x4c1   :  { %4805 = vmatpush1.bf16.msra.mxu1 %v6352_v28  ;;  %4765 = vmatprep.subr.bf16.mxu0 %v6357_v47  ;;  %v6422_v28 = vld [vmem:[#allocation2 + $0xc8] ss:$16 sps:$4 sm:$0xff]  }
 0x4c2   :  { %4806 = vmatprep.subr.bf16.mxu1 %v6360_v53  ;;  %v6425_v47 = vld [vmem:[#allocation2 + $0x2c8] ss:$16 sps:$4 sm:$0xff]   ;;  %v6430_v53 = vld [vmem:[#allocation2 + $0xac] ss:$16 sps:$4 sm:$0xff]  }
 0x4c4   :  { %4766 = vmatpush1.bf16.msra.mxu0 %v6355_v16  ;;  %v6436_v16 = vld [vmem:[#allocation2 + $0x8c] ss:$16 sps:$4 sm:$0xff]  }
 0x4c5   :  { %4807 = vmatpush1.bf16.msra.mxu1 %v6358_v6  ;;  %4767 = vmatprep.subr.bf16.mxu0 %v6363_v29  ;;  %v6439_v6 = vld [vmem:[#allocation2 + $0x28c] ss:$16 sps:$4 sm:$0xff]  }
 0x4c6   :  { %4808 = vmatprep.subr.bf16.mxu1 %v6366_v59  ;;  %v6442_v29 = vld [vmem:[#allocation2 + $0x6c] ss:$16 sps:$4 sm:$0xff]  }
 0x4c7   :  { %v6445_v59 = vld [vmem:[#allocation2 + $0x26c] ss:$16 sps:$4 sm:$0xff]  }
 0x4c8   :  { %4768 = vmatpush1.bf16.msra.mxu0 %v6361_v43  ;;  %v6451_v43 = vld [vmem:[#allocation2 + $0x24c] ss:$16 sps:$4 sm:$0xff]  }
 0x4c9   :  { %4809 = vmatpush1.bf16.msra.mxu1 %v6364_v56  ;;  %4769 = vmatprep.subr.bf16.mxu0 %v6369_v2  ;;  %v6446_v56 = vld [vmem:[#allocation2 + $0x48] ss:$16 sps:$4 sm:$0xff]  }
 0x4ca   :  { %4810 = vmatprep.subr.bf16.mxu1 %v6372_v35  ;;  %v6449_v2 = vld [vmem:[#allocation2 + $0x248] ss:$16 sps:$4 sm:$0xff]   ;;  %v6454_v35 = vld [vmem:[#allocation2 + $0x2c] ss:$16 sps:$4 sm:$0xff]  }
 0x4cc   :  { %4770 = vmatpush2.bf16.msra.mxu0 %v6367_v19  ;;  %v6457_v19 = vld [vmem:[#allocation2 + $0x22c] ss:$16 sps:$4 sm:$0xff]  }
 0x4cd   :  { %4811 = vmatpush2.bf16.msra.mxu1 %v6370_v44  ;;  %4771 = vmatprep.subr.bf16.mxu0 %v6375_v46  ;;  %v6452_v44 = vld [vmem:[#allocation2 + $0x28] ss:$16 sps:$4 sm:$0xff]  }
 0x4ce   :  { %4812 = vmatprep.subr.bf16.mxu1 %v6378_v60  ;;  %v6455_v46 = vld [vmem:[#allocation2 + $0x228] ss:$16 sps:$4 sm:$0xff]   ;;  %v6460_v60 = vld [vmem:[#allocation2 + $0xc] ss:$16 sps:$4 sm:$0xff]  }
 0x4d0   :  { %4772 = vmatpush2.bf16.msra.mxu0 %v6373_v20  ;;  %v6463_v20 = vld [vmem:[#allocation2 + $0x20c] ss:$16 sps:$4 sm:$0xff]  }
 0x4d1   :  { %4813 = vmatpush2.bf16.msra.mxu1 %v6376_v62  ;;  %4773 = vmatprep.subr.bf16.mxu0 %v6381_v54  ;;  %v6458_v62 = vld [vmem:[#allocation2 + $0x8] ss:$16 sps:$4 sm:$0xff]  }
 0x4d2   :  { %4814 = vmatprep.subr.bf16.mxu1 %v6384_v37  ;;  %v6461_v54 = vld [vmem:[#allocation2 + $0x208] ss:$16 sps:$4 sm:$0xff]   ;;  %v6466_v37 = vld [vmem:[#allocation2 + $0x1ec] ss:$16 sps:$4 sm:$0xff]  }
 0x4d4   :  { %4774 = vmatpush2.bf16.msra.mxu0 %v6379_v5  ;;  %v6469_v5 = vld [vmem:[#allocation2 + $0x3ec] ss:$16 sps:$4 sm:$0xff]  }
 0x4d5   :  { %4815 = vmatpush2.bf16.msra.mxu1 %v6382_v50  ;;  %4775 = vmatprep.subr.bf16.mxu0 %v6387_v21  ;;  %v6464_v50 = vld [vmem:[#allocation2 + $0x1e8] ss:$16 sps:$4 sm:$0xff]  }
 0x4d6   :  { %4816 = vmatprep.subr.bf16.mxu1 %v6390_v36  ;;  %v6467_v21 = vld [vmem:[#allocation2 + $0x3e8] ss:$16 sps:$4 sm:$0xff]   ;;  %v6472_v36 = vld [vmem:[#allocation2 + $0x1cc] ss:$16 sps:$4 sm:$0xff]  }
 0x4d8   :  { %4776 = vmatpush2.bf16.msra.mxu0 %v6385_v31  ;;  %v6475_v31 = vld [vmem:[#allocation2 + $0x3cc] ss:$16 sps:$4 sm:$0xff]  }
 0x4d9   :  { %4817 = vmatpush2.bf16.msra.mxu1 %v6388_v34  ;;  %4777 = vmatprep.subr.bf16.mxu0 %v6393_v32  ;;  %v6470_v34 = vld [vmem:[#allocation2 + $0x1c8] ss:$16 sps:$4 sm:$0xff]  }
 0x4da   :  { %4818 = vmatprep.subr.bf16.mxu1 %v6396_v57  ;;  %v6473_v32 = vld [vmem:[#allocation2 + $0x3c8] ss:$16 sps:$4 sm:$0xff]   ;;  %v6478_v57 = vld [vmem:[#allocation2 + $0x1ac] ss:$16 sps:$4 sm:$0xff]  }
 0x4dc   :  { %4778 = vmatpush2.bf16.msra.mxu0 %v6391_v0  ;;  %v6481_v0 = vld [vmem:[#allocation2 + $0x3ac] ss:$16 sps:$4 sm:$0xff]  }
 0x4dd   :  { %4819 = vmatpush2.bf16.msra.mxu1 %v6394_v25  ;;  %4779 = vmatprep.subr.bf16.mxu0 %v6399_v48  ;;  %v6476_v25 = vld [vmem:[#allocation2 + $0x1a8] ss:$16 sps:$4 sm:$0xff]  }
 0x4de   :  { %4820 = vmatprep.subr.bf16.mxu1 %v6402_v3  ;;  %v6479_v48 = vld [vmem:[#allocation2 + $0x3a8] ss:$16 sps:$4 sm:$0xff]   ;;  %v6484_v3 = vld [vmem:[#allocation2 + $0x18c] ss:$16 sps:$4 sm:$0xff]  }
 0x4e0   :  { %4780 = vmatpush2.bf16.msra.mxu0 %v6397_v15  ;;  %v6487_v15 = vld [vmem:[#allocation2 + $0x38c] ss:$16 sps:$4 sm:$0xff]  }
 0x4e1   :  { %4821 = vmatpush2.bf16.msra.mxu1 %v6400_v58  ;;  %4781 = vmatprep.subr.bf16.mxu0 %v6405_v1  ;;  %v6482_v58 = vld [vmem:[#allocation2 + $0x188] ss:$16 sps:$4 sm:$0xff]  }
 0x4e2   :  { %4822 = vmatprep.subr.bf16.mxu1 %v6408_v8  ;;  %v6485_v1 = vld [vmem:[#allocation2 + $0x388] ss:$16 sps:$4 sm:$0xff]   ;;  %v6490_v8 = vld [vmem:[#allocation2 + $0x16c] ss:$16 sps:$4 sm:$0xff]  }
 0x4e4   :  { %4782 = vmatpush2.bf16.msra.mxu0 %v6403_v10  ;;  %v6493_v10 = vld [vmem:[#allocation2 + $0x36c] ss:$16 sps:$4 sm:$0xff]  }
 0x4e5   :  { %4823 = vmatpush2.bf16.msra.mxu1 %v6406_v39  ;;  %4783 = vmatprep.subr.bf16.mxu0 %v6411_v63  ;;  %v6488_v39 = vld [vmem:[#allocation2 + $0x168] ss:$16 sps:$4 sm:$0xff]  }
 0x4e6   :  { %4824 = vmatprep.subr.bf16.mxu1 %v6414_v49  ;;  %v6491_v63 = vld [vmem:[#allocation2 + $0x368] ss:$16 sps:$4 sm:$0xff]   ;;  %v6496_v49 = vld [vmem:[#allocation2 + $0x14c] ss:$16 sps:$4 sm:$0xff]  }
 0x4e8   :  { %4784 = vmatpush2.bf16.msra.mxu0 %v6409_v27  ;;  %v6499_v27 = vld [vmem:[#allocation2 + $0x34c] ss:$16 sps:$4 sm:$0xff]  }
 0x4e9   :  { %4825 = vmatpush2.bf16.msra.mxu1 %v6412_v7  ;;  %4835 = vmatprep.subr.bf16.mxu0 %v6418_v14  ;;  %v6494_v7 = vld [vmem:[#allocation2 + $0x148] ss:$16 sps:$4 sm:$0xff]  }
 0x4ea   :  { %4876 = vmatprep.subr.bf16.mxu1 %v6421_v33  ;;  %v6497_v14 = vld [vmem:[#allocation2 + $0x348] ss:$16 sps:$4 sm:$0xff]   ;;  %v6502_v33 = vld [vmem:[#allocation2 + $0x12c] ss:$16 sps:$4 sm:$0xff]  }
 0x4eb   :  { %4786 = vmatmul.mubr.bf16.vlgmr.msra.gmra.mxu0 %v8244_v41 }
 0x4ec   :  { %4827 = vmatmul.mubr.bf16.vlgmr.msra.gmra.mxu1 %v8248_v61  ;;  %4836 = vmatpush1.bf16.msra.mxu0 %v6416_v22  ;;  %v6505_v22 = vld [vmem:[#allocation2 + $0x32c] ss:$16 sps:$4 sm:$0xff]  }
 0x4ed   :  { %4877 = vmatpush1.bf16.msra.mxu1 %v6419_v38  ;;  %4837 = vmatprep.subr.bf16.mxu0 %v6424_v18  ;;  %v6500_v38 = vld [vmem:[#allocation2 + $0x128] ss:$16 sps:$4 sm:$0xff]  }
 0x4ee   :  { %4878 = vmatprep.subr.bf16.mxu1 %v6427_v30  ;;  %4867 = vmatprep.mubr.bf16.mxu0 %v8214_v55  ;;  %v6440_v55 = vld [vmem:[#allocation2 + $0x68] ss:$16 sps:$4 sm:$0xff]   ;;  %v6508_v30 = vld [vmem:[#allocation2 + $0x10c] ss:$16 sps:$4 sm:$0xff]  }
 0x4ef   :  { %4908 = vmatprep.mubr.bf16.mxu1 %v8216_v23  ;;  %v6443_v23 = vld [vmem:[#allocation2 + $0x268] ss:$16 sps:$4 sm:$0xff]  }
 0x4f0   :  { %4838 = vmatpush1.bf16.msra.mxu0 %v6422_v28  ;;  %v6503_v18 = vld [vmem:[#allocation2 + $0x328] ss:$16 sps:$4 sm:$0xff]   ;;  %v6511_v28 = vld [vmem:[#allocation2 + $0x30c] ss:$16 sps:$4 sm:$0xff]  }
 0x4f1   :  { %4879 = vmatpush1.bf16.msra.mxu1 %v6425_v47  ;;  %4839 = vmatprep.subr.bf16.mxu0 %v6430_v53  ;;  %v6506_v47 = vld [vmem:[#allocation2 + $0x108] ss:$16 sps:$4 sm:$0xff]  }
 0x4f2   :  { %4880 = vmatprep.subr.bf16.mxu1 %v6433_v11  ;;  %v6509_v53 = vld [vmem:[#allocation2 + $0x308] ss:$16 sps:$4 sm:$0xff]   ;;  %v6514_v11 = vld [vmem:[#allocation2 + $0x4ec] ss:$16 sps:$4 sm:$0xff]  }
 0x4f4   :  { %4840 = vmatpush1.bf16.msra.mxu0 %v6428_v24  ;;  %v6517_v24 = vld [vmem:[#allocation2 + $0x6ec] ss:$16 sps:$4 sm:$0xff]  }
 0x4f5   :  { %4881 = vmatpush1.bf16.msra.mxu1 %v6431_v42  ;;  %4841 = vmatprep.subr.bf16.mxu0 %v6436_v16  ;;  %v6512_v42 = vld [vmem:[#allocation2 + $0x4e8] ss:$16 sps:$4 sm:$0xff]  }
 0x4f6   :  { %4882 = vmatprep.subr.bf16.mxu1 %v6439_v6  ;;  %v6515_v16 = vld [vmem:[#allocation2 + $0x6e8] ss:$16 sps:$4 sm:$0xff]   ;;  %v6520_v6 = vld [vmem:[#allocation2 + $0x4cc] ss:$16 sps:$4 sm:$0xff]  }
 0x4f8   :  { %4842 = vmatpush1.bf16.msra.mxu0 %v6434_v13  ;;  %v6523_v13 = vld [vmem:[#allocation2 + $0x6cc] ss:$16 sps:$4 sm:$0xff]  }
 0x4f9   :  { %4883 = vmatpush1.bf16.msra.mxu1 %v6437_v12  ;;  %4843 = vmatprep.subr.bf16.mxu0 %v6442_v29  ;;  %v6518_v12 = vld [vmem:[#allocation2 + $0x4c8] ss:$16 sps:$4 sm:$0xff]  }
 0x4fa   :  { %4884 = vmatprep.subr.bf16.mxu1 %v6445_v59  ;;  %v6521_v29 = vld [vmem:[#allocation2 + $0x6c8] ss:$16 sps:$4 sm:$0xff]   ;;  %v6526_v59 = vld [vmem:[#allocation2 + $0x4ac] ss:$16 sps:$4 sm:$0xff]  }
 0x4fc   :  { %4844 = vmatpush1.bf16.msra.mxu0 %v6440_v55  ;;  %v6529_v55 = vld [vmem:[#allocation2 + $0x6ac] ss:$16 sps:$4 sm:$0xff]  }
 0x4fd   :  { %4885 = vmatpush1.bf16.msra.mxu1 %v6443_v23  ;;  %4845 = vmatprep.subr.bf16.mxu0 %v6448_v45  ;;  %v6524_v23 = vld [vmem:[#allocation2 + $0x4a8] ss:$16 sps:$4 sm:$0xff]  }
 0x4fe   :  { %4886 = vmatprep.subr.bf16.mxu1 %v6451_v43  ;;  %v6527_v45 = vld [vmem:[#allocation2 + $0x6a8] ss:$16 sps:$4 sm:$0xff]  }
 0x4ff   :  { %v6530_v43 = vld [vmem:[#allocation2 + $0x488] ss:$16 sps:$4 sm:$0xff]  }
 0x500   :  { %4846 = vmatpush1.bf16.msra.mxu0 %v6446_v56  ;;  %v6533_v56 = vld [vmem:[#allocation2 + $0x688] ss:$16 sps:$4 sm:$0xff]  }
 0x501   :  { %4887 = vmatpush1.bf16.msra.mxu1 %v6449_v2  ;;  %4847 = vmatprep.subr.bf16.mxu0 %v6454_v35  ;;  %v6538_v2 = vld [vmem:[#allocation2 + $0x46c] ss:$16 sps:$4 sm:$0xff]  }
 0x502   :  { %4888 = vmatprep.subr.bf16.mxu1 %v6457_v19  ;;  %v6541_v35 = vld [vmem:[#allocation2 + $0x66c] ss:$16 sps:$4 sm:$0xff]  }
 0x503   :  { %v6544_v19 = vld [vmem:[#allocation2 + $0x44c] ss:$16 sps:$4 sm:$0xff]  }
 0x504   :  { %4848 = vmatpush1.bf16.msra.mxu0 %v6452_v44  ;;  %v6547_v44 = vld [vmem:[#allocation2 + $0x64c] ss:$16 sps:$4 sm:$0xff]  }
 0x505   :  { %4889 = vmatpush1.bf16.msra.mxu1 %v6455_v46  ;;  %4849 = vmatprep.subr.bf16.mxu0 %v6460_v60  ;;  %v6542_v46 = vld [vmem:[#allocation2 + $0x448] ss:$16 sps:$4 sm:$0xff]  }
 0x506   :  { %4890 = vmatprep.subr.bf16.mxu1 %v6463_v20  ;;  %v6545_v60 = vld [vmem:[#allocation2 + $0x648] ss:$16 sps:$4 sm:$0xff]   ;;  %v6550_v20 = vld [vmem:[#allocation2 + $0x42c] ss:$16 sps:$4 sm:$0xff]  }
 0x508   :  { %4850 = vmatpush1.bf16.msra.mxu0 %v6458_v62  ;;  %v6553_v62 = vld [vmem:[#allocation2 + $0x62c] ss:$16 sps:$4 sm:$0xff]  }
 0x509   :  { %4891 = vmatpush1.bf16.msra.mxu1 %v6461_v54  ;;  %4851 = vmatprep.subr.bf16.mxu0 %v6466_v37  ;;  %v6548_v54 = vld [vmem:[#allocation2 + $0x428] ss:$16 sps:$4 sm:$0xff]  }
 0x50a   :  { %4892 = vmatprep.subr.bf16.mxu1 %v6469_v5  ;;  %v6551_v37 = vld [vmem:[#allocation2 + $0x628] ss:$16 sps:$4 sm:$0xff]   ;;  %v6556_v5 = vld [vmem:[#allocation2 + $0x40c] ss:$16 sps:$4 sm:$0xff]  }
 0x50c   :  { %4852 = vmatpush2.bf16.msra.mxu0 %v6464_v50  ;;  %v6559_v50 = vld [vmem:[#allocation2 + $0x60c] ss:$16 sps:$4 sm:$0xff]  }
 0x50d   :  { %4893 = vmatpush2.bf16.msra.mxu1 %v6467_v21  ;;  %4853 = vmatprep.subr.bf16.mxu0 %v6472_v36  ;;  %v6554_v21 = vld [vmem:[#allocation2 + $0x408] ss:$16 sps:$4 sm:$0xff]  }
 0x50e   :  { %4894 = vmatprep.subr.bf16.mxu1 %v6475_v31  ;;  %v6557_v36 = vld [vmem:[#allocation2 + $0x608] ss:$16 sps:$4 sm:$0xff]   ;;  %v6562_v31 = vld [vmem:[#allocation2 + $0x5ec] ss:$16 sps:$4 sm:$0xff]  }
 0x510   :  { %4854 = vmatpush2.bf16.msra.mxu0 %v6470_v34  ;;  %v6565_v34 = vld [vmem:[#allocation2 + $0x7ec] ss:$16 sps:$4 sm:$0xff]  }
 0x511   :  { %4895 = vmatpush2.bf16.msra.mxu1 %v6473_v32  ;;  %4855 = vmatprep.subr.bf16.mxu0 %v6478_v57  ;;  %v6560_v32 = vld [vmem:[#allocation2 + $0x5e8] ss:$16 sps:$4 sm:$0xff]  }
 0x512   :  { %4896 = vmatprep.subr.bf16.mxu1 %v6481_v0  ;;  %v6563_v57 = vld [vmem:[#allocation2 + $0x7e8] ss:$16 sps:$4 sm:$0xff]   ;;  %v6568_v0 = vld [vmem:[#allocation2 + $0x5cc] ss:$16 sps:$4 sm:$0xff]  }
 0x514   :  { %4856 = vmatpush2.bf16.msra.mxu0 %v6476_v25  ;;  %v6571_v25 = vld [vmem:[#allocation2 + $0x7cc] ss:$16 sps:$4 sm:$0xff]  }
 0x515   :  { %4897 = vmatpush2.bf16.msra.mxu1 %v6479_v48  ;;  %4857 = vmatprep.subr.bf16.mxu0 %v6484_v3  ;;  %v6566_v48 = vld [vmem:[#allocation2 + $0x5c8] ss:$16 sps:$4 sm:$0xff]  }
 0x516   :  { %4898 = vmatprep.subr.bf16.mxu1 %v6487_v15  ;;  %v6569_v3 = vld [vmem:[#allocation2 + $0x7c8] ss:$16 sps:$4 sm:$0xff]   ;;  %v6574_v15 = vld [vmem:[#allocation2 + $0x5ac] ss:$16 sps:$4 sm:$0xff]  }
 0x518   :  { %4858 = vmatpush2.bf16.msra.mxu0 %v6482_v58  ;;  %v6577_v58 = vld [vmem:[#allocation2 + $0x7ac] ss:$16 sps:$4 sm:$0xff]  }
 0x519   :  { %4899 = vmatpush2.bf16.msra.mxu1 %v6485_v1  ;;  %4859 = vmatprep.subr.bf16.mxu0 %v6490_v8  ;;  %v6572_v1 = vld [vmem:[#allocation2 + $0x5a8] ss:$16 sps:$4 sm:$0xff]  }
 0x51a   :  { %4900 = vmatprep.subr.bf16.mxu1 %v6493_v10  ;;  %v6575_v8 = vld [vmem:[#allocation2 + $0x7a8] ss:$16 sps:$4 sm:$0xff]   ;;  %v6580_v10 = vld [vmem:[#allocation2 + $0x58c] ss:$16 sps:$4 sm:$0xff]  }
 0x51c   :  { %4860 = vmatpush2.bf16.msra.mxu0 %v6488_v39  ;;  %v6583_v39 = vld [vmem:[#allocation2 + $0x78c] ss:$16 sps:$4 sm:$0xff]  }
 0x51d   :  { %4901 = vmatpush2.bf16.msra.mxu1 %v6491_v63  ;;  %4861 = vmatprep.subr.bf16.mxu0 %v6496_v49  ;;  %v6578_v63 = vld [vmem:[#allocation2 + $0x588] ss:$16 sps:$4 sm:$0xff]  }
 0x51e   :  { %4902 = vmatprep.subr.bf16.mxu1 %v6499_v27  ;;  %v6581_v49 = vld [vmem:[#allocation2 + $0x788] ss:$16 sps:$4 sm:$0xff]   ;;  %v6586_v27 = vld [vmem:[#allocation2 + $0x56c] ss:$16 sps:$4 sm:$0xff]  }
 0x520   :  { %4862 = vmatpush2.bf16.msra.mxu0 %v6494_v7  ;;  %v6589_v7 = vld [vmem:[#allocation2 + $0x76c] ss:$16 sps:$4 sm:$0xff]  }
 0x521   :  { %4903 = vmatpush2.bf16.msra.mxu1 %v6497_v14  ;;  %4863 = vmatprep.subr.bf16.mxu0 %v6502_v33  ;;  %v6584_v14 = vld [vmem:[#allocation2 + $0x568] ss:$16 sps:$4 sm:$0xff]  }
 0x522   :  { %4904 = vmatprep.subr.bf16.mxu1 %v6505_v22  ;;  %v6587_v33 = vld [vmem:[#allocation2 + $0x768] ss:$16 sps:$4 sm:$0xff]   ;;  %v6592_v22 = vld [vmem:[#allocation2 + $0x54c] ss:$16 sps:$4 sm:$0xff]  }
 0x524   :  { %4864 = vmatpush2.bf16.msra.mxu0 %v6500_v38  ;;  %v6595_v38 = vld [vmem:[#allocation2 + $0x74c] ss:$16 sps:$4 sm:$0xff]  }
 0x525   :  { %4905 = vmatpush2.bf16.msra.mxu1 %v6503_v18  ;;  %4865 = vmatprep.subr.bf16.mxu0 %v6508_v30  ;;  %v6590_v18 = vld [vmem:[#allocation2 + $0x548] ss:$16 sps:$4 sm:$0xff]  }
 0x526   :  { %4906 = vmatprep.subr.bf16.mxu1 %v6511_v28  ;;  %v6593_v30 = vld [vmem:[#allocation2 + $0x748] ss:$16 sps:$4 sm:$0xff]   ;;  %v6598_v28 = vld [vmem:[#allocation2 + $0x52c] ss:$16 sps:$4 sm:$0xff]  }
 0x528   :  { %4866 = vmatpush2.bf16.msra.mxu0 %v6506_v47  ;;  %v6601_v47 = vld [vmem:[#allocation2 + $0x72c] ss:$16 sps:$4 sm:$0xff]  }
 0x529   :  { %4907 = vmatpush2.bf16.msra.mxu1 %v6509_v53  ;;  %4917 = vmatprep.subr.bf16.mxu0 %v6514_v11  ;;  %v6596_v53 = vld [vmem:[#allocation2 + $0x528] ss:$16 sps:$4 sm:$0xff]  }
 0x52a   :  { %4958 = vmatprep.subr.bf16.mxu1 %v6517_v24  ;;  %v6599_v11 = vld [vmem:[#allocation2 + $0x728] ss:$16 sps:$4 sm:$0xff]   ;;  %v6604_v24 = vld [vmem:[#allocation2 + $0x50c] ss:$16 sps:$4 sm:$0xff]  }
 0x52b   :  { %4868 = vmatmul.mubr.bf16.vlgmr.msra.gmra.mxu0 %v8220_v40  ;;  %v6532_v40 = vld [vmem:[#allocation2 + $0x48c] ss:$16 sps:$4 sm:$0xff]  }
 0x52c   :  { %4909 = vmatmul.mubr.bf16.vlgmr.msra.gmra.mxu1 %v8222_v9  ;;  %4918 = vmatpush1.bf16.msra.mxu0 %v6512_v42  ;;  %v6535_v9 = vld [vmem:[#allocation2 + $0x68c] ss:$16 sps:$4 sm:$0xff]  }
 0x52d   :  { %4959 = vmatpush1.bf16.msra.mxu1 %v6515_v16  ;;  %4919 = vmatprep.subr.bf16.mxu0 %v6520_v6  ;;  %v6607_v42 = vld [vmem:[#allocation2 + $0x70c] ss:$16 sps:$4 sm:$0xff]   ;;  %v6602_v16 = vld [vmem:[#allocation2 + $0x508] ss:$16 sps:$4 sm:$0xff]  }
 0x52e   :  { %4960 = vmatprep.subr.bf16.mxu1 %v6523_v13  ;;  %4949 = vmatprep.mubr.bf16.mxu0 %v8234_v26  ;;  %v6536_v26 = vld [vmem:[#allocation2 + $0x468] ss:$16 sps:$4 sm:$0xff]  }
 0x52f   :  { %4990 = vmatprep.mubr.bf16.mxu1 %v8238_v17  ;;  %v6539_v17 = vld [vmem:[#allocation2 + $0x668] ss:$16 sps:$4 sm:$0xff]  }
 0x530   :  { %4920 = vmatpush1.bf16.msra.mxu0 %v6518_v12  ;;  %v6605_v6 = vld [vmem:[#allocation2 + $0x708] ss:$16 sps:$4 sm:$0xff]  }
 0x531   :  { %4961 = vmatpush1.bf16.msra.mxu1 %v6521_v29  ;;  %4921 = vmatprep.subr.bf16.mxu0 %v6526_v59 }
 0x532   :  { %4962 = vmatprep.subr.bf16.mxu1 %v6529_v55 }
 0x534   :  { %4922 = vmatpush1.bf16.msra.mxu0 %v6524_v23 }
 0x535   :  { %4963 = vmatpush1.bf16.msra.mxu1 %v6527_v45  ;;  %4923 = vmatprep.subr.bf16.mxu0 %v6532_v40 }
 0x536   :  { %4964 = vmatprep.subr.bf16.mxu1 %v6535_v9 }
 0x538   :  { %4924 = vmatpush1.bf16.msra.mxu0 %v6530_v43 }
 0x539   :  { %4965 = vmatpush1.bf16.msra.mxu1 %v6533_v56  ;;  %4925 = vmatprep.subr.bf16.mxu0 %v6538_v2  ;;  %v4999_v56 = vld [vmem:[#allocation19] sm:$0xf] }
 0x53a   :  { %4966 = vmatprep.subr.bf16.mxu1 %v6541_v35 }
 0x53c   :  { %4926 = vmatpush1.bf16.msra.mxu0 %v6536_v26  ;;  %v5025_v26 = vld [vmem:[%s8311_s11] sm:$0xf] }
 0x53d   :  { %4967 = vmatpush1.bf16.msra.mxu1 %v6539_v17  ;;  %4927 = vmatprep.subr.bf16.mxu0 %v6544_v19 }
 0x53e   :  { %4968 = vmatprep.subr.bf16.mxu1 %v6547_v44 }
 0x540   :  { %4928 = vmatpush1.bf16.msra.mxu0 %v6542_v46  ;;  %v5030_v46 = vrot.slane %v5025_v26, %v7496_v4 }
 0x541   :  { %4969 = vmatpush1.bf16.msra.mxu1 %v6545_v60  ;;  %4929 = vmatprep.subr.bf16.mxu0 %v6550_v20  ;;  %v5008_v20 = vrot.slane %v4999_v56, %v7493_v51 }
 0x542   :  { %4970 = vmatprep.subr.bf16.mxu1 %v6553_v62 }
 0x544   :  { %4930 = vmatpush1.bf16.msra.mxu0 %v6548_v54 }
 0x545   :  { %4971 = vmatpush1.bf16.msra.mxu1 %v6551_v37  ;;  %4931 = vmatprep.subr.bf16.mxu0 %v6556_v5 }
 0x546   :  { %4972 = vmatprep.subr.bf16.mxu1 %v6559_v50  ;;  %v5034_v50 = vrot.slane %v5025_v26, %v7493_v51 }
 0x548   :  { %4932 = vmatpush1.bf16.msra.mxu0 %v6554_v21 }
 0x549   :  { %4973 = vmatpush1.bf16.msra.mxu1 %v6557_v36  ;;  %4933 = vmatprep.subr.bf16.mxu0 %v6562_v31 }
 0x54a   :  { %4974 = vmatprep.subr.bf16.mxu1 %v6565_v34 }
 0x54c   :  { %4934 = vmatpush2.bf16.msra.mxu0 %v6560_v32 }
 0x54d   :  { %4975 = vmatpush2.bf16.msra.mxu1 %v6563_v57  ;;  %4935 = vmatprep.subr.bf16.mxu0 %v6568_v0 }
 0x54e   :  { %4976 = vmatprep.subr.bf16.mxu1 %v6571_v25 }
 0x550   :  { %4936 = vmatpush2.bf16.msra.mxu0 %v6566_v48 }
 0x551   :  { %4977 = vmatpush2.bf16.msra.mxu1 %v6569_v3  ;;  %4937 = vmatprep.subr.bf16.mxu0 %v6574_v15 }
 0x552   :  { %4978 = vmatprep.subr.bf16.mxu1 %v6577_v58 }
 0x554   :  { %4938 = vmatpush2.bf16.msra.mxu0 %v6572_v1 }
 0x555   :  { %4979 = vmatpush2.bf16.msra.mxu1 %v6575_v8  ;;  %4939 = vmatprep.subr.bf16.mxu0 %v6580_v10 }
 0x556   :  { %4980 = vmatprep.subr.bf16.mxu1 %v6583_v39 }
 0x558   :  { %4940 = vmatpush2.bf16.msra.mxu0 %v6578_v63  ;;  %v5011_v63 = vsub.s32 2, %v7490_v52 }
 0x559   :  { %4981 = vmatpush2.bf16.msra.mxu1 %v6581_v49  ;;  %4941 = vmatprep.subr.bf16.mxu0 %v6586_v27  ;;  %v5015_v49 = vsub.s32 3, %v7490_v52 }
 0x55a   :  { %4982 = vmatprep.subr.bf16.mxu1 %v6589_v7 }
 0x55c   :  { %4942 = vmatpush2.bf16.msra.mxu0 %v6584_v14 }
 0x55d   :  { %4983 = vmatpush2.bf16.msra.mxu1 %v6587_v33  ;;  %4943 = vmatprep.subr.bf16.mxu0 %v6592_v22  ;;  %v5012_v22 = vrot.slane %v4999_v56, %v5011_v63 }
 0x55e   :  { %4984 = vmatprep.subr.bf16.mxu1 %v6595_v38 }
 0x560   :  { %4944 = vmatpush2.bf16.msra.mxu0 %v6590_v18 }
 0x561   :  { %4985 = vmatpush2.bf16.msra.mxu1 %v6593_v30  ;;  %4945 = vmatprep.subr.bf16.mxu0 %v6598_v28  ;;  %v5038_v28 = vrot.slane %v5025_v26, %v5011_v63 }
 0x562   :  { %4986 = vmatprep.subr.bf16.mxu1 %v6601_v47 }
 0x564   :  { %4946 = vmatpush2.bf16.msra.mxu0 %v6596_v53  ;;  %v5016_v53 = vrot.slane %v4999_v56, %v5015_v49 }
 0x565   :  { %4987 = vmatpush2.bf16.msra.mxu1 %v6599_v11  ;;  %4947 = vmatprep.subr.bf16.mxu0 %v6604_v24 }
 0x566   :  { %4988 = vmatprep.subr.bf16.mxu1 %v6607_v42 }
 0x568   :  { %4948 = vmatpush2.bf16.msra.mxu0 %v6602_v16 }
 0x569   :  { %4989 = vmatpush2.bf16.msra.mxu1 %v6605_v6  ;;  %v5042_v6 = vrot.slane %v5025_v26, %v5015_v49 }
 0x56b   :  { %v4705_v13 = vpop.f32.mrf.mxu0  ;;  %4950 = vmatmul.mubr.bf16.vlgmr.msra.gmra.mxu0 %v8244_v41  ;;  %v5004_v41 = vrot.slane %v4999_v56, %v7496_v4 }
 0x56c   :  { %v4746_v12 = vpop.f32.mrf.mxu1  ;;  %4991 = vmatmul.mubr.bf16.vlgmr.msra.gmra.mxu1 %v8248_v61 }
 0x56d   :  { %v4747_v29 = vadd.f32 %v4746_v12, %v4705_v13  ;;  %v4707_v59 = vpop.f32.mrf.mxu0 }
 0x56e   :  { %v4748_v55 = vpop.f32.mrf.mxu1 }
 0x56f   :  { %v4749_v23 = vadd.f32 %v4748_v55, %v4707_v59  ;;  %v4709_v45 = vpop.f32.mrf.mxu0 }
 0x570   :  { %v4750_v40 = vpop.f32.mrf.mxu1 }
 0x571   :  { %v4710_v9 = vpop.f32.mrf.mxu0 }
 0x572   :  { %v4751_v43 = vpop.f32.mrf.mxu1 }
 0x5ab   :  { %v4787_v2 = vpop.f32.mrf.mxu0 }
 0x5ac   :  { %v4828_v35 = vpop.f32.mrf.mxu1  ;;  %v4788_v17 = vadd.f32 %v4787_v2, %v4747_v29 }
 0x5ad   :  { %v4789_v19 = vpop.f32.mrf.mxu0 }
 0x5ae   :  { %v4830_v61 = vpop.f32.mrf.mxu1  ;;  %v4829_v44 = vadd.f32 %v4828_v35, %v4788_v17  ;;  %v4790_v60 = vadd.f32 %v4789_v19, %v4749_v23 }
 0x5af   :  { %v4791_v62 = vpop.f32.mrf.mxu0 }
 0x5b0   :  { %v4832_v54 = vpop.f32.mrf.mxu1  ;;  %v5021_v37 = vmul.f32 %v5004_v41, %v4829_v44  ;;  %v4831_v5 = vadd.f32 %v4830_v61, %v4790_v60 }
 0x5b1   :  { %v4792_v21 = vpop.f32.mrf.mxu0 }
 0x5b2   :  { %v4833_v36 = vpop.f32.mrf.mxu1  ;;  %v8267_v31 = vadd.f32 %v5030_v46, %v5021_v37  ;;  %v5022_v34 = vmul.f32 %v5008_v20, %v4831_v5 }
 0x5b4   :  { %v5051_v32 = vmax.f32 %v8267_v31, 0.0  ;;  %v5048_v57 = vadd.f32 %v5034_v50, %v5022_v34 }
 0x5b6   :  { %v5052_v0 = vmax.f32 %v5048_v57, 0.0 }
 0x5eb   :  { %v4869_v25 = vpop.f32.mrf.mxu0 }
 0x5ec   :  { %v4910_v48 = vpop.f32.mrf.mxu1 }
 0x5ed   :  { %v4911_v3 = vadd.f32 %v4910_v48, %v4869_v25  ;;  %v4871_v15 = vpop.f32.mrf.mxu0 }
 0x5ee   :  { %v4912_v58 = vpop.f32.mrf.mxu1 }
 0x5ef   :  { %v4873_v1 = vpop.f32.mrf.mxu0  ;;  %v4913_v14 = vadd.f32 %v4912_v58, %v4871_v15 }
 0x5f0   :  { %v4914_v8 = vpop.f32.mrf.mxu1 }
 0x5f1   :  { %v4874_v10 = vpop.f32.mrf.mxu0 }
 0x5f2   :  { %v4915_v39 = vpop.f32.mrf.mxu1 }
 0x62b   :  { %v4951_v27 = vpop.f32.mrf.mxu0 }
 0x62c   :  { %v4992_v7 = vpop.f32.mrf.mxu1  ;;  %v4952_v33 = vadd.f32 %v4951_v27, %v4911_v3 }
 0x62d   :  { %v4953_v38 = vpop.f32.mrf.mxu0 }
 0x62e   :  { %v4994_v18 = vpop.f32.mrf.mxu1  ;;  %v4993_v30 = vadd.f32 %v4992_v7, %v4952_v33  ;;  %v4954_v47 = vadd.f32 %v4953_v38, %v4913_v14 }
 0x62f   :  { %v4955_v11 = vpop.f32.mrf.mxu0 }
 0x630   :  { %v4996_v24 = vpop.f32.mrf.mxu1  ;;  %v5023_v42 = vmul.f32 %v5012_v22, %v4993_v30  ;;  %v4995_v16 = vadd.f32 %v4994_v18, %v4954_v47 }
 0x631   :  { %v4956_v13 = vpop.f32.mrf.mxu0 }
 0x632   :  { %v4997_v12 = vpop.f32.mrf.mxu1  ;;  %v8272_v29 = vadd.f32 %v5038_v28, %v5023_v42  ;;  %v5024_v52 = vmul.f32 %v5016_v53, %v4995_v16 }
 0x634   :  { %v5053_v59 = vmax.f32 %v8272_v29, 0.0  ;;  %v5050_v55 = vadd.f32 %v5042_v6, %v5024_v52 }
 0x636   :  { %v5054_v23 = vmax.f32 %v5050_v55, 0.0 }
 0x637   :  { %7018 = dma.done.wait [#allocation4 + $0x1], 8192 }
 0x638   :  { %7019 = vsyncadd [#allocation4 + $0x1], 4294959104  ;;  %v5060_v45 = vpack.c.bf16 %v5052_v0, %v5052_v0  ;;  %v5062_v40 = vpack.c.bf16 %v5054_v23, %v5054_v23  ;;  %v6608_v9 = vld [vmem:[#allocation3 + $0x74] ss:$8 sps:$4 sm:$0xff]   ;;  %v6612_v56 = vld [vmem:[#allocation3 + $0x70] ss:$8 sps:$4 sm:$0xff]  }
 0x639   :  { %v6610_v43 = vld [vmem:[#allocation3 + $0x174] ss:$8 sps:$4 sm:$0xff]   ;;  %5447 = vmatprep.subr.bf16.mxu0 %v6608_v9  ;;  %v6613_v2 = vld [vmem:[#allocation3 + $0x170] ss:$8 sps:$4 sm:$0xff]   ;;  %v6614_v35 = vld [vmem:[#allocation3 + $0x64] ss:$8 sps:$4 sm:$0xff]  }
 0x63a   :  { %5479 = vmatprep.mubr.bf16.mxu0 %v5060_v45  ;;  %5520 = vmatprep.mubr.bf16.mxu1 %v5062_v40  ;;  %v6616_v26 = vld [vmem:[#allocation3 + $0x164] ss:$8 sps:$4 sm:$0xff]   ;;  %v6618_v17 = vld [vmem:[#allocation3 + $0x60] ss:$8 sps:$4 sm:$0xff]   ;;  %v6620_v19 = vld [vmem:[#allocation3 + $0x54] ss:$8 sps:$4 sm:$0xff]  }
 0x63b   :  { %5488 = vmatprep.subr.bf16.mxu1 %v6610_v43  ;;  %5448 = vmatpush1.bf16.msra.mxu0 %v6612_v56  ;;  %v6619_v41 = vld [vmem:[#allocation3 + $0x160] ss:$8 sps:$4 sm:$0xff]   ;;  %v6622_v61 = vld [vmem:[#allocation3 + $0x154] ss:$8 sps:$4 sm:$0xff]   ;;  %v6624_v44 = vld [vmem:[#allocation3 + $0x50] ss:$8 sps:$4 sm:$0xff]  }
 0x63c   :  { %5489 = vmatpush1.bf16.msra.mxu1 %v6613_v2  ;;  %5449 = vmatprep.subr.bf16.mxu0 %v6614_v35  ;;  %v6625_v46 = vld [vmem:[#allocation3 + $0x150] ss:$8 sps:$4 sm:$0xff]   ;;  %v6626_v60 = vld [vmem:[#allocation3 + $0x44] ss:$8 sps:$4 sm:$0xff]   ;;  %v6630_v62 = vld [vmem:[#allocation3 + $0x40] ss:$8 sps:$4 sm:$0xff]  }
 0x63d   :  { %5490 = vmatprep.subr.bf16.mxu1 %v6616_v26  ;;  %v6628_v20 = vld [vmem:[#allocation3 + $0x144] ss:$8 sps:$4 sm:$0xff]   ;;  %v6631_v54 = vld [vmem:[#allocation3 + $0x140] ss:$8 sps:$4 sm:$0xff]   ;;  %v6632_v37 = vld [vmem:[#allocation3 + $0x34] ss:$8 sps:$4 sm:$0xff]  }
 0x63e   :  { %v6634_v5 = vld [vmem:[#allocation3 + $0x134] ss:$8 sps:$4 sm:$0xff]   ;;  %v6636_v50 = vld [vmem:[#allocation3 + $0x30] ss:$8 sps:$4 sm:$0xff]   ;;  %v6638_v36 = vld [vmem:[#allocation3 + $0x24] ss:$8 sps:$4 sm:$0xff]  }
 0x63f   :  { %5450 = vmatpush1.bf16.msra.mxu0 %v6618_v17  ;;  %v6637_v21 = vld [vmem:[#allocation3 + $0x130] ss:$8 sps:$4 sm:$0xff]   ;;  %v6640_v34 = vld [vmem:[#allocation3 + $0x124] ss:$8 sps:$4 sm:$0xff]   ;;  %v6642_v57 = vld [vmem:[#allocation3 + $0x20] ss:$8 sps:$4 sm:$0xff]   ;;  %v5059_v17 = vpack.c.bf16 %v5051_v32, %v5051_v32 }
 0x640   :  { %5491 = vmatpush1.bf16.msra.mxu1 %v6619_v41  ;;  %5451 = vmatprep.subr.bf16.mxu0 %v6620_v19  ;;  %v6643_v0 = vld [vmem:[#allocation3 + $0x120] ss:$8 sps:$4 sm:$0xff]   ;;  %v6644_v25 = vld [vmem:[#allocation3 + $0x14] ss:$8 sps:$4 sm:$0xff]   ;;  %v6648_v3 = vld [vmem:[#allocation3 + $0x10] ss:$8 sps:$4 sm:$0xff]   ;;  %v5061_v41 = vpack.c.bf16 %v5053_v59, %v5053_v59 }
 0x641   :  { %5492 = vmatprep.subr.bf16.mxu1 %v6622_v61  ;;  %v6646_v48 = vld [vmem:[#allocation3 + $0x114] ss:$8 sps:$4 sm:$0xff]   ;;  %v6649_v15 = vld [vmem:[#allocation3 + $0x110] ss:$8 sps:$4 sm:$0xff]   ;;  %v6650_v58 = vld [vmem:[#allocation3 + $0x4] ss:$8 sps:$4 sm:$0xff]  }
 0x642   :  { %v6652_v1 = vld [vmem:[#allocation3 + $0x104] ss:$8 sps:$4 sm:$0xff]   ;;  %v6654_v8 = vld [vmem:[#allocation3] ss:$8 sps:$4 sm:$0xff]   ;;  %v6656_v39 = vld [vmem:[#allocation3 + $0xf4] ss:$8 sps:$4 sm:$0xff]  }
 0x643   :  { %5452 = vmatpush1.bf16.msra.mxu0 %v6624_v44  ;;  %v6655_v10 = vld [vmem:[#allocation3 + $0x100] ss:$8 sps:$4 sm:$0xff]   ;;  %v6658_v63 = vld [vmem:[#allocation3 + $0x1f4] ss:$8 sps:$4 sm:$0xff]   ;;  %v6660_v49 = vld [vmem:[#allocation3 + $0xf0] ss:$8 sps:$4 sm:$0xff]  }
 0x644   :  { %5493 = vmatpush1.bf16.msra.mxu1 %v6625_v46  ;;  %5453 = vmatprep.subr.bf16.mxu0 %v6626_v60  ;;  %v6661_v27 = vld [vmem:[#allocation3 + $0x1f0] ss:$8 sps:$4 sm:$0xff]   ;;  %v6662_v7 = vld [vmem:[#allocation3 + $0xe4] ss:$8 sps:$4 sm:$0xff]   ;;  %v6666_v33 = vld [vmem:[#allocation3 + $0xe0] ss:$8 sps:$4 sm:$0xff]  }
 0x645   :  { %5494 = vmatprep.subr.bf16.mxu1 %v6628_v20  ;;  %v6664_v14 = vld [vmem:[#allocation3 + $0x1e4] ss:$8 sps:$4 sm:$0xff]   ;;  %v6667_v22 = vld [vmem:[#allocation3 + $0x1e0] ss:$8 sps:$4 sm:$0xff]   ;;  %v6668_v38 = vld [vmem:[#allocation3 + $0xd4] ss:$8 sps:$4 sm:$0xff]  }
 0x646   :  { %v6670_v18 = vld [vmem:[#allocation3 + $0x1d4] ss:$8 sps:$4 sm:$0xff]   ;;  %v6672_v30 = vld [vmem:[#allocation3 + $0xd0] ss:$8 sps:$4 sm:$0xff]   ;;  %v6674_v47 = vld [vmem:[#allocation3 + $0xc4] ss:$8 sps:$4 sm:$0xff]  }
 0x647   :  { %5454 = vmatpush1.bf16.msra.mxu0 %v6630_v62  ;;  %v6673_v28 = vld [vmem:[#allocation3 + $0x1d0] ss:$8 sps:$4 sm:$0xff]   ;;  %v6676_v53 = vld [vmem:[#allocation3 + $0x1c4] ss:$8 sps:$4 sm:$0xff]   ;;  %v6678_v11 = vld [vmem:[#allocation3 + $0xc0] ss:$8 sps:$4 sm:$0xff]  }
 0x648   :  { %5495 = vmatpush1.bf16.msra.mxu1 %v6631_v54  ;;  %5455 = vmatprep.subr.bf16.mxu0 %v6632_v37  ;;  %v6679_v24 = vld [vmem:[#allocation3 + $0x1c0] ss:$8 sps:$4 sm:$0xff]   ;;  %v6680_v42 = vld [vmem:[#allocation3 + $0xb4] ss:$8 sps:$4 sm:$0xff]   ;;  %v6684_v6 = vld [vmem:[#allocation3 + $0xb0] ss:$8 sps:$4 sm:$0xff]  }
 0x649   :  { %5496 = vmatprep.subr.bf16.mxu1 %v6634_v5  ;;  %v6682_v16 = vld [vmem:[#allocation3 + $0x1b4] ss:$8 sps:$4 sm:$0xff]   ;;  %v6685_v13 = vld [vmem:[#allocation3 + $0x1b0] ss:$8 sps:$4 sm:$0xff]   ;;  %v6686_v12 = vld [vmem:[#allocation3 + $0xa4] ss:$8 sps:$4 sm:$0xff]  }
 0x64a   :  { %v6688_v52 = vld [vmem:[#allocation3 + $0x1a4] ss:$8 sps:$4 sm:$0xff]   ;;  %v6690_v55 = vld [vmem:[#allocation3 + $0xa0] ss:$8 sps:$4 sm:$0xff]   ;;  %v6692_v45 = vld [vmem:[#allocation3 + $0x94] ss:$8 sps:$4 sm:$0xff]  }
 0x64b   :  { %5456 = vmatpush1.bf16.msra.mxu0 %v6636_v50  ;;  %v6691_v23 = vld [vmem:[#allocation3 + $0x1a0] ss:$8 sps:$4 sm:$0xff]   ;;  %v6694_v40 = vld [vmem:[#allocation3 + $0x194] ss:$8 sps:$4 sm:$0xff]   ;;  %v6696_v9 = vld [vmem:[#allocation3 + $0x90] ss:$8 sps:$4 sm:$0xff]  }
 0x64c   :  { %5497 = vmatpush1.bf16.msra.mxu1 %v6637_v21  ;;  %5457 = vmatprep.subr.bf16.mxu0 %v6638_v36  ;;  %v6697_v43 = vld [vmem:[#allocation3 + $0x190] ss:$8 sps:$4 sm:$0xff]   ;;  %v6698_v56 = vld [vmem:[#allocation3 + $0x84] ss:$8 sps:$4 sm:$0xff]   ;;  %v6702_v35 = vld [vmem:[#allocation3 + $0x80] ss:$8 sps:$4 sm:$0xff]  }
 0x64d   :  { %5498 = vmatprep.subr.bf16.mxu1 %v6640_v34  ;;  %v6700_v2 = vld [vmem:[#allocation3 + $0x184] ss:$8 sps:$4 sm:$0xff]   ;;  %v6703_v26 = vld [vmem:[#allocation3 + $0x180] ss:$8 sps:$4 sm:$0xff]   ;;  %s7045_s11 = smov [#allocation23]  }
 0x64e   :  { %s5587_s5 = sshll.u32 %s7045_s11, 4  ;;  %s5588_s5 = int_to_ptr.vmem [resolvable:$true] %s5587_s5 }
 0x64f   :  { %5458 = vmatpush1.bf16.msra.mxu0 %v6642_v57  ;;  %s6944_s27 = scalar_lea.vmem %s5588_s5, 256  ;;  %p6949_p5 = scmp.lt.s32.totalorder %s5588_s5, %s5588_s5 }
 0x650   :  { %5499 = vmatpush1.bf16.msra.mxu1 %v6643_v0  ;;  %5459 = vmatprep.subr.bf16.mxu0 %v6644_v25  ;;  %p6945_p4 = scmp.ne.s32.totalorder %s5588_s5, %s6944_s27  ;;  %p6950_p6 = scmp.lt.s32.totalorder %s6944_s27, %s6944_s27 }
 0x651   :  { %5500 = vmatprep.subr.bf16.mxu1 %v6646_v48 }
 0x652   :  { %p6951_p7 = por %p6950_p6, %p6949_p5 }
 0x653   :  { %5460 = vmatpush1.bf16.msra.mxu0 %v6648_v3 }
 0x654   :  { %5501 = vmatpush1.bf16.msra.mxu1 %v6649_v15  ;;  %5461 = vmatprep.subr.bf16.mxu0 %v6650_v58  ;;  %p6952_p8 = pnand %p6951_p7, %p6945_p4 }
 0x655   :  { %5502 = vmatprep.subr.bf16.mxu1 %v6652_v1 }
 0x657   :  { %5462 = vmatpush1.bf16.msra.mxu0 %v6654_v8 }
 0x658   :  { %5503 = vmatpush1.bf16.msra.mxu1 %v6655_v10  ;;  %5463 = vmatprep.subr.bf16.mxu0 %v6656_v39 }
 0x659   :  { %5504 = vmatprep.subr.bf16.mxu1 %v6658_v63 }
 0x65b   :  { %5464 = vmatpush2.bf16.msra.mxu0 %v6660_v49 }
 0x65c   :  { %5505 = vmatpush2.bf16.msra.mxu1 %v6661_v27  ;;  %5465 = vmatprep.subr.bf16.mxu0 %v6662_v7 }
 0x65d   :  { %5506 = vmatprep.subr.bf16.mxu1 %v6664_v14 }
 0x65f   :  { %5466 = vmatpush2.bf16.msra.mxu0 %v6666_v33 }
 0x660   :  { %5507 = vmatpush2.bf16.msra.mxu1 %v6667_v22  ;;  %5467 = vmatprep.subr.bf16.mxu0 %v6668_v38 }
 0x661   :  { %5508 = vmatprep.subr.bf16.mxu1 %v6670_v18 }
 0x663   :  { %5468 = vmatpush2.bf16.msra.mxu0 %v6672_v30 }
 0x664   :  { %5509 = vmatpush2.bf16.msra.mxu1 %v6673_v28  ;;  %5469 = vmatprep.subr.bf16.mxu0 %v6674_v47 }
 0x665   :  { %5510 = vmatprep.subr.bf16.mxu1 %v6676_v53 }
 0x667   :  { %5470 = vmatpush2.bf16.msra.mxu0 %v6678_v11 }
 0x668   :  { %5511 = vmatpush2.bf16.msra.mxu1 %v6679_v24  ;;  %5471 = vmatprep.subr.bf16.mxu0 %v6680_v42 }
 0x669   :  { %5512 = vmatprep.subr.bf16.mxu1 %v6682_v16 }
 0x66b   :  { %5472 = vmatpush2.bf16.msra.mxu0 %v6684_v6 }
 0x66c   :  { %5513 = vmatpush2.bf16.msra.mxu1 %v6685_v13  ;;  %5473 = vmatprep.subr.bf16.mxu0 %v6686_v12 }
 0x66d   :  { %5514 = vmatprep.subr.bf16.mxu1 %v6688_v52 }
 0x66f   :  { %5474 = vmatpush2.bf16.msra.mxu0 %v6690_v55 }
 0x670   :  { %5515 = vmatpush2.bf16.msra.mxu1 %v6691_v23  ;;  %5475 = vmatprep.subr.bf16.mxu0 %v6692_v45 }
 0x671   :  { %5516 = vmatprep.subr.bf16.mxu1 %v6694_v40 }
 0x673   :  { %5476 = vmatpush2.bf16.msra.mxu0 %v6696_v9 }
 0x674   :  { %5517 = vmatpush2.bf16.msra.mxu1 %v6697_v43  ;;  %5477 = vmatprep.subr.bf16.mxu0 %v6698_v56 }
 0x675   :  { %5518 = vmatprep.subr.bf16.mxu1 %v6700_v2 }
 0x677   :  { %5478 = vmatpush2.bf16.msra.mxu0 %v6702_v35 }
 0x678   :  { %5519 = vmatpush2.bf16.msra.mxu1 %v6703_v26 }
 0x67a   :  { %5480 = vmatmul.mubr.bf16.vlgmr.msra.gmra.mxu0 %v5059_v17 }
 0x67b   :  { %5521 = vmatmul.mubr.bf16.vlgmr.msra.gmra.mxu1 %v5061_v41 }
 0x67c   :  { %6955 = shalt.err (!%p6952_p8)
}
 0x67d   :  { %5590 = dma.vmem_to_hbm [thread:$0]  %s5588_s5, 256, %s8317_s17, [#allocation24]  }
 0x67e   :  { %s7046_s7 = smov [#allocation25]  }
 0x67f   :  { %s5596_s0 = sshll.u32 %s7046_s7, 4  ;;  %s5597_s0 = int_to_ptr.vmem [resolvable:$true] %s5596_s0 }
 0x680   :  { %s6964_s19 = scalar_lea.vmem %s5597_s0, 2048  ;;  %p6969_p10 = scmp.lt.s32.totalorder %s5597_s0, %s5597_s0 }
 0x681   :  { %p6965_p9 = scmp.ne.s32.totalorder %s5597_s0, %s6964_s19  ;;  %p6970_p11 = scmp.lt.s32.totalorder %s6964_s19, %s6964_s19 }
 0x683   :  { %p6971_p12 = por %p6970_p11, %p6969_p10 }
 0x685   :  { %p6972_p13 = pnand %p6971_p12, %p6965_p9 }
 0x687   :  { %6975 = shalt.err (!%p6972_p13)
}
 0x688   :  { %5602 = dma.vmem_to_hbm [thread:$0]  %s5597_s0, 2048, %s8318_s18, [#allocation24], %s7033_s23, %s7033_s23, %s7034_s26   ;;  %v5529_v31 = vld [vmem:[#allocation20] sm:$0x3] }
 0x689   :  { %v5543_v32 = vld [vmem:[%s8313_s13] sm:$0x3]  ;;  %v5534_v29 = vrot.slane %v5529_v31, %v7496_v4  ;;  %v5538_v46 = vrot.slane %v5529_v31, %v7493_v51  ;;  %s7047_s13 = smov [#allocation22]  }
 0x68a   :  { %v5548_v44 = vrot.slane %v5543_v32, %v7496_v4  ;;  %v5552_v37 = vrot.slane %v5543_v32, %v7493_v51  ;;  %s5577_s18 = sshll.u32 %s7047_s13, 4  ;;  %s5578_s18 = int_to_ptr.vmem [resolvable:$true] %s5577_s18 }
 0x68b   :  { %s6984_s23 = scalar_lea.vmem %s5578_s18, 64  ;;  %p6989_p1 = scmp.lt.s32.totalorder %s5578_s18, %s5578_s18 }
 0x68c   :  { %p6985_p0 = scmp.ne.s32.totalorder %s5578_s18, %s6984_s23  ;;  %p6990_p2 = scmp.lt.s32.totalorder %s6984_s23, %s6984_s23 }
 0x68e   :  { %p6991_p3 = por %p6990_p2, %p6989_p1 }
 0x690   :  { %p6992_p4 = pnand %p6991_p3, %p6985_p0 }
 0x73a   :  { %v5481_v59 = vpop.f32.mrf.mxu0 }
 0x73b   :  { %v5522_v19 = vpop.f32.mrf.mxu1 }
 0x73c   :  { %v5523_v61 = vadd.f32 %v5522_v19, %v5481_v59  ;;  %v5483_v60 = vpop.f32.mrf.mxu0 }
 0x73d   :  { %v5524_v20 = vpop.f32.mrf.mxu1 }
 0x73e   :  { %v5541_v62 = vmul.f32 %v5534_v29, %v5523_v61  ;;  %v5525_v54 = vadd.f32 %v5524_v20, %v5483_v60  ;;  %v5485_v5 = vpop.f32.mrf.mxu0 }
 0x73f   :  { %v5526_v50 = vpop.f32.mrf.mxu1 }
 0x740   :  { %v5555_v21 = vadd.f32 %v5548_v44, %v5541_v62  ;;  %v5542_v36 = vmul.f32 %v5538_v46, %v5525_v54  ;;  %v5486_v34 = vpop.f32.mrf.mxu0 }
 0x741   :  { %v5527_v57 = vpop.f32.mrf.mxu1 }
 0x742   :  { %v5556_v0 = vadd.f32 %v5552_v37, %v5542_v36  ;;  %v5557_v25 = vmax.f32 %v5555_v21, 0.0 }
 0x744   :  { %v5558_v48 = vmax.f32 %v5556_v0, 0.0 }
 0x746   :  { %v5561_v4 = vcombine.low %v5557_v25, %v5558_v48 }
 0x748   :  { %6107 = vst.sshfl [vmem:[#allocation22] sm:$0x33 pattern:$0x76325410] %v5561_v4 }
 0x749   :  { %6995 = shalt.err (!%p6992_p4)
}
 0x74a   :  { %5580 = dma.vmem_to_hbm [thread:$0]  %s5578_s18, 64, %s8316_s16, [#allocation7]  }
 0x74b   :  { %7020 = dma.done.wait [#allocation7], 64  }
 0x74c   :  { %7021 = vsyncadd [#allocation7], 4294967232 }
 0x74d   :  { %7022 = dma.done.wait [#allocation24], 2304  }
 0x74e   :  { %7023 = vsyncadd [#allocation24], 4294964992 }
 0x74f   :  { %5612 = vsyncpa [#allocation6], 1 }
 0x750   :  { %5613 = vsyncpa [#allocation9], 1 }
 0x751   :  { %5614 = vsyncpa [#allocation12], 1 }
 0x752   :  { %5615 = vsyncpa [#allocation15], 1 }
 0x753   :  { %5616 = vsyncpa [#allocation18], 1 }
 0x754   :  { %5617 = vsyncpa [#allocation21], 1 }
 0x755   :  { %5618 = vsyncpa [#allocation7], 1 }
 0x756   :  { %5619 = vsyncpa [#allocation24], 1 }
 0x757   :  { %5620 = vsyncmov [#allocation4] }
 0x75a   :  { %s5621_s21 = vpop.sfrf %5620 }
 0x75b   :  { %p6108_p5 = scmp.ne.s32.totalorder %s5621_s21, 0 }
 0x75d   :  { %5625 = shalt.err (%p6108_p5)  }
 0x75e   :  { %5627 = vsyncmov [#allocation4 + $0x1] }
 0x761   :  { %s5628_s22 = vpop.sfrf %5627 }
 0x762   :  { %p6109_p6 = scmp.ne.s32.totalorder %s5628_s22, 0 }
 0x764   :  { %5632 = shalt.err (%p6109_p6)  }

</bundles_post_ra>
